<compile_context>
chip_gen: v7x
topology: tpu7x:2x2x1
jax: 0.10.0
libtpu: 0.0.40
codegen_flags: <defaults>
</compile_context>

<pallas_src>
import functools
import math

import jax
import jax.numpy as jnp
from jax import lax
from jax.experimental import pallas as pl
from jax.experimental.pallas import tpu as pltpu


def _attn_dropout_kernel(q_ref, k_ref, v_ref, bits_ref, mask_ref, o_ref, *, drop_p):
    q = q_ref[...]          # (G, S, D) f32
    k = k_ref[...]          # (G, S, D) f32
    v = v_ref[...]          # (G, S, D) f32
    G, S, D = q.shape

    scale = 1.0 / math.sqrt(D)

    # scores = q @ k^T / sqrt(D) + mask
    # contract the last (D) axis of both operands, batched over G
    # (no explicit transpose of k -> no XLU / extra VMEM copy).
    s = lax.dot_general(
        q, k,
        dimension_numbers=(((2,), (2,)), ((0,), (0,))),
        preferred_element_type=jnp.float32,
    ) * scale
    s = s + mask_ref[...][None, :, :]

    # numerically stable softmax over the last axis
    m = jnp.max(s, axis=-1, keepdims=True)
    e = jnp.exp(s - m)
    denom = jnp.sum(e, axis=-1, keepdims=True)

    # fold the dropout rescale 1/(1-p) into the softmax reciprocal (EUP slot)
    inv = pl.reciprocal(denom, approx=True) * (1.0 / (1.0 - drop_p))

    # dropout(p, train=True): keep element iff uniform uint32 >= p * 2^32
    thresh = jnp.uint32(min(int(round(drop_p * (1 << 32))), (1 << 32) - 1))
    keep = bits_ref[...] >= thresh
    attn = jnp.where(keep, e * inv, 0.0)

    # output = attn @ v   (batched over G, contract S)
    o_ref[...] = lax.dot_general(
        attn, v,
        dimension_numbers=(((2,), (1,)), ((0,), (0,))),
        preferred_element_type=jnp.float32,
    ).astype(o_ref.dtype)


def _choose_block_heads(BH, S, D, *, budget_bytes=40 << 20, max_g=8):
    """Largest divisor of BH (<= max_g) whose double-buffered footprint fits."""
    best = 1
    for g in range(1, min(BH, max_g) + 1):
        if BH % g:
            continue
        per_buf = 4 * g * S * D * 4 + g * S * S * 4          # q,k,v,out blocks + bits block
        live = 2 * per_buf + S * S * 4 + 3 * g * S * S * 4   # dbl buffers + mask + score temps
        if live <= budget_bytes:
            best = g
    return best


def sdpa_dropout(query, key, value, attn_mask, *, drop_p=0.3, seed=0):
    """query/key/value: (B, H, S, D) float32; attn_mask: (1, 1, S, S) float32."""
    B, H, S, D = query.shape
    BH = B * H

    q = query.reshape(BH, S, D)
    k = key.reshape(BH, S, D)
    v = value.reshape(BH, S, D)
    mask = attn_mask.reshape(S, S)

    # Dropout random bits generated outside the kernel (portable across
    # TPU hardware and interpret mode); one uint32 per attention weight.
    bits = jax.random.bits(jax.random.PRNGKey(seed), (BH, S, S), dtype=jnp.uint32)

    G = _choose_block_heads(BH, S, D)
    grid = (BH // G,)

    kernel = functools.partial(_attn_dropout_kernel, drop_p=drop_p)

    cost = pl.CostEstimate(
        flops=4 * BH * S * S * D,                              # two matmuls
        transcendentals=BH * S * S,                            # exp
        bytes_accessed=4 * BH * S * D * 4 + BH * S * S * 4 + S * S * 4,
    )

    out = pl.pallas_call(
        kernel,
        out_shape=jax.ShapeDtypeStruct((BH, S, D), query.dtype),
        grid=grid,
        in_specs=[
            pl.BlockSpec((G, S, D), lambda i: (i, 0, 0)),      # q
            pl.BlockSpec((G, S, D), lambda i: (i, 0, 0)),      # k
            pl.BlockSpec((G, S, D), lambda i: (i, 0, 0)),      # v
            pl.BlockSpec((G, S, S), lambda i: (i, 0, 0)),      # dropout bits
            pl.BlockSpec((S, S), lambda i: (0, 0)),            # mask (VMEM resident)
        ],
        out_specs=pl.BlockSpec((G, S, D), lambda i: (i, 0, 0)),
        compiler_params=pltpu.CompilerParams(
            dimension_semantics=("parallel",),                 # shard heads across TCs (v7x)
            vmem_limit_bytes=48 * 1024 * 1024,                 # headroom even on 64 MiB v7x
        ),
        cost_estimate=cost,
    )(q, k, v, bits, mask)

    return out.reshape(B, H, S, D)


if __name__ == "__main__":
    # Small shapes consistent with the module (real module is (1, 192, 128, 2048)).
    # D=128 keeps the output block lane-dense; BH=16 with G<=8 gives a multi-step grid.
    B, H, S, D = 2, 8, 128, 128

    root = jax.random.PRNGKey(0)
    k1, k2, k3, k4 = jax.random.split(root, 4)
    query = jax.random.normal(k1, (B, H, S, D), dtype=jnp.float32)
    key_t = jax.random.normal(k2, (B, H, S, D), dtype=jnp.float32)
    value = jax.random.normal(k3, (B, H, S, D), dtype=jnp.float32)
    attn_mask = jax.random.normal(k4, (1, 1, S, S), dtype=jnp.float32)

    # Sanity check vs pure-JAX reference with dropout disabled (p=0.0).
    out_nodrop = sdpa_dropout(query, key_t, value, attn_mask, drop_p=0.0, seed=0)
    jax.block_until_ready(out_nodrop)
    qk = jnp.einsum("bhsd,bhtd->bhst", query, key_t) / math.sqrt(D) + attn_mask
    ref = jnp.einsum("bhst,bhtd->bhsd", jax.nn.softmax(qk, axis=-1), value)
    assert out_nodrop.shape == ref.shape
    assert jnp.allclose(out_nodrop, ref, rtol=5e-2, atol=5e-2)

    # Module semantics: dropout p=0.3, train=True.
    out = sdpa_dropout(query, key_t, value, attn_mask, drop_p=0.3, seed=0)
    jax.block_until_ready(out)

    assert out.shape == (B, H, S, D)
    assert jnp.all(jnp.isfinite(out))
    print("KERNEL_OK")
</pallas_src>

<mosaic_0001>
module attributes {stable_mosaic.version = 11 : i64} {
  func.func @_attn_dropout_kernel(%arg0: i32, %arg1: memref<8x128x128xf32, #tpu.memory_space<vmem>>, %arg2: memref<8x128x128xf32, #tpu.memory_space<vmem>>, %arg3: memref<8x128x128xf32, #tpu.memory_space<vmem>>, %arg4: memref<8x128x128xi32, #tpu.memory_space<vmem>>, %arg5: memref<128x128xf32, #tpu.memory_space<vmem>>, %arg6: memref<8x128x128xf32, #tpu.memory_space<vmem>>) attributes {dimension_semantics = [#tpu.dimension_semantics<parallel>], iteration_bounds = array<i64: 2>, scalar_prefetch = 0 : i64, scratch_operands = 0 : i64, tpu.core_type = #tpu.core_type<tc>, window_params = [{transform_indices = @transform_0, window_bounds = array<i64: 8, 128, 128>}, {transform_indices = @transform_1, window_bounds = array<i64: 8, 128, 128>}, {transform_indices = @transform_2, window_bounds = array<i64: 8, 128, 128>}, {transform_indices = @transform_3, window_bounds = array<i64: 8, 128, 128>}, {pipeline_mode = #tpu.pipeline_mode<synchronous>, transform_indices = @transform_4, window_bounds = array<i64: 128, 128>}, {transform_indices = @transform_5, window_bounds = array<i64: 8, 128, 128>}]} {
    %c0 = arith.constant 0 : index
    %c0_0 = arith.constant 0 : index
    %c0_1 = arith.constant 0 : index
    %0 = vector.load %arg1[%c0, %c0_0, %c0_1] : memref<8x128x128xf32, #tpu.memory_space<vmem>>, vector<8x128x128xf32>
    %c0_2 = arith.constant 0 : index
    %c0_3 = arith.constant 0 : index
    %c0_4 = arith.constant 0 : index
    %1 = vector.load %arg2[%c0_2, %c0_3, %c0_4] : memref<8x128x128xf32, #tpu.memory_space<vmem>>, vector<8x128x128xf32>
    %c0_5 = arith.constant 0 : index
    %c0_6 = arith.constant 0 : index
    %c0_7 = arith.constant 0 : index
    %2 = vector.load %arg3[%c0_5, %c0_6, %c0_7] : memref<8x128x128xf32, #tpu.memory_space<vmem>>, vector<8x128x128xf32>
    %cst = arith.constant dense<0.000000e+00> : vector<8x128x128xf32>
    %3 = tpu.matmul %0, %1, %cst {dimension_numbers = #tpu.dot_dimension_numbers<[2], [2], [1], [1], [0, 0, 0, 1, 1, 1], [0], [0]>} : vector<8x128x128xf32>, vector<8x128x128xf32>, vector<8x128x128xf32> -> vector<8x128x128xf32>
    %cst_8 = arith.constant 0.0883883461 : f32
    %4 = vector.broadcast %cst_8 : f32 to vector<8x128x128xf32>
    %5 = arith.mulf %3, %4 : vector<8x128x128xf32>
    %c0_9 = arith.constant 0 : index
    %c0_10 = arith.constant 0 : index
    %6 = vector.load %arg5[%c0_9, %c0_10] : memref<128x128xf32, #tpu.memory_space<vmem>>, vector<128x128xf32>
    %7 = vector.shape_cast %6 : vector<128x128xf32> to vector<1x128x128xf32>
    %8 = vector.broadcast %7 : vector<1x128x128xf32> to vector<8x128x128xf32>
    %9 = arith.addf %5, %8 : vector<8x128x128xf32>
    %cst_11 = arith.constant dense<0xFF800000> : vector<8x128xf32>
    %10 = vector.multi_reduction <maximumf>, %9, %cst_11 [2] : vector<8x128x128xf32> to vector<8x128xf32>
    %11 = vector.shape_cast %10 : vector<8x128xf32> to vector<8x128x1xf32>
    %12 = vector.broadcast %11 : vector<8x128x1xf32> to vector<8x128x128xf32>
    %13 = arith.subf %9, %12 : vector<8x128x128xf32>
    %14 = math.exp %13 : vector<8x128x128xf32>
    %cst_12 = arith.constant dense<0.000000e+00> : vector<8x128xf32>
    %15 = vector.multi_reduction <add>, %14, %cst_12 [2] : vector<8x128x128xf32> to vector<8x128xf32>
    %16 = vector.shape_cast %15 : vector<8x128xf32> to vector<8x128x1xf32>
    %17 = tpu.reciprocal %16 {approx = true} : vector<8x128x1xf32> -> vector<8x128x1xf32>
    %cst_13 = arith.constant 1.000000e+00 : f32
    %18 = vector.broadcast %cst_13 : f32 to vector<8x128x1xf32>
    %19 = arith.mulf %17, %18 : vector<8x128x1xf32>
    %c0_14 = arith.constant 0 : index
    %c0_15 = arith.constant 0 : index
    %c0_16 = arith.constant 0 : index
    %20 = vector.load %arg4[%c0_14, %c0_15, %c0_16] : memref<8x128x128xi32, #tpu.memory_space<vmem>>, vector<8x128x128xi32>
    %c0_i32 = arith.constant 0 : i32
    %21 = vector.broadcast %c0_i32 : i32 to vector<8x128x128xi32>
    %22 = arith.cmpi uge, %20, %21 : vector<8x128x128xi32>
    %23 = vector.broadcast %19 : vector<8x128x1xf32> to vector<8x128x128xf32>
    %24 = arith.mulf %14, %23 : vector<8x128x128xf32>
    %cst_17 = arith.constant 0.000000e+00 : f32
    %25 = vector.broadcast %cst_17 : f32 to vector<8x128x128xf32>
    %26 = arith.select %22, %24, %25 : vector<8x128x128xi1>, vector<8x128x128xf32>
    %cst_18 = arith.constant dense<0.000000e+00> : vector<8x128x128xf32>
    %27 = tpu.matmul %26, %2, %cst_18 {dimension_numbers = #tpu.dot_dimension_numbers<[2], [1], [1], [2], [0, 0, 0, 1, 1, 2], [0], [0]>} : vector<8x128x128xf32>, vector<8x128x128xf32>, vector<8x128x128xf32> -> vector<8x128x128xf32>
    %c0_19 = arith.constant 0 : index
    %c0_20 = arith.constant 0 : index
    %c0_21 = arith.constant 0 : index
    %28 = vector.load %arg6[%c0_19, %c0_20, %c0_21] : memref<8x128x128xf32, #tpu.memory_space<vmem>>, vector<8x128x128xf32>
    tpu.vector_store %arg6[%c0_19, %c0_20, %c0_21], %27 {strides = array<i32>} : memref<8x128x128xf32, #tpu.memory_space<vmem>>, vector<8x128x128xf32>,
    return
  }
  func.func @transform_0(%arg0: i32) -> (i32, i32, i32) {
    %c0_i32 = arith.constant 0 : i32
    %c0_i32_0 = arith.constant 0 : i32
    %c0_i32_1 = arith.constant 0 : i32
    return %arg0, %c0_i32, %c0_i32_0 : i32, i32, i32
  }
  func.func @transform_1(%arg0: i32) -> (i32, i32, i32) {
    %c0_i32 = arith.constant 0 : i32
    %c0_i32_0 = arith.constant 0 : i32
    %c0_i32_1 = arith.constant 0 : i32
    return %arg0, %c0_i32, %c0_i32_0 : i32, i32, i32
  }
  func.func @transform_2(%arg0: i32) -> (i32, i32, i32) {
    %c0_i32 = arith.constant 0 : i32
    %c0_i32_0 = arith.constant 0 : i32
    %c0_i32_1 = arith.constant 0 : i32
    return %arg0, %c0_i32, %c0_i32_0 : i32, i32, i32
  }
  func.func @transform_3(%arg0: i32) -> (i32, i32, i32) {
    %c0_i32 = arith.constant 0 : i32
    %c0_i32_0 = arith.constant 0 : i32
    %c0_i32_1 = arith.constant 0 : i32
    return %arg0, %c0_i32, %c0_i32_0 : i32, i32, i32
  }
  func.func @transform_4(%arg0: i32) -> (i32, i32) {
    %c0_i32 = arith.constant 0 : i32
    %c0_i32_0 = arith.constant 0 : i32
    %c0_i32_1 = arith.constant 0 : i32
    return %c0_i32, %c0_i32_0 : i32, i32
  }
  func.func @transform_5(%arg0: i32) -> (i32, i32, i32) {
    %c0_i32 = arith.constant 0 : i32
    %c0_i32_0 = arith.constant 0 : i32
    %c0_i32_1 = arith.constant 0 : i32
    return %arg0, %c0_i32, %c0_i32_0 : i32, i32, i32
  }
}

</mosaic_0001>

<bundles_post_ra>
// kernel: tpu_custom_call.1
= control target key start
LH: loop header
LB: loop body
LE: loop exit
PB: predicated region body
PF: predicated region fallthrough
CT: control target
= control target key end

     0   :  { %s10890_s0 = inlined_call_operand.hbm [shape: f32[16,128,128], index: 0, kind: input, shape index: {}]   ;;  %s10891_s1 = inlined_call_operand.hbm [shape: f32[16,128,128], index: 1, kind: input, shape index: {}]   ;;  %s10892_s2 = inlined_call_operand.hbm [shape: f32[16,128,128], index: 2, kind: input, shape index: {}]   ;;  %s10893_s3 = inlined_call_operand.hbm [shape: u32[16,128,128], index: 3, kind: input, shape index: {}]   ;;  %s10894_s4 = inlined_call_operand.hbm [shape: f32[128,128], index: 4, kind: input, shape index: {}]   ;;  %s10895_s5 = inlined_call_operand.hbm [shape: f32[16,128,128], index: 5, kind: output, shape index: {}]  }
   0x1   :  { %11101 = sst [smem:[#allocation145_spill]] %s10891_s1 }
   0x2   :  { %11102 = sst [smem:[#allocation146_spill]] %s10894_s4 }
   0x3   :  { %10 = vsyncpa [#allocation3], 0 }
   0x4   :  { %12 = vsyncpa [#allocation3 + $0x1], 0 }
   0x5   :  { %13 = vsyncpa [#allocation6], 0 }
   0x6   :  { %15 = vsyncpa [#allocation6 + $0x1], 0 }
   0x7   :  { %16 = vsyncpa [#allocation9], 0 }
   0x8   :  { %18 = vsyncpa [#allocation9 + $0x1], 0 }
   0x9   :  { %19 = vsyncpa [#allocation4], 0 }
   0xa   :  { %21 = vsyncpa [#allocation4 + $0x1], 0  ;;  %s8149_s18 = smov 0   ;;  %s8151_s19 = smov 0  }
   0xb   :  { %s8153_s20 = smov 0   ;;  %s8155_s21 = smov 0  }
   0xc LB: > { %s8170_s22 = sadd.s32 4294967295, %s8107_s21   ;;  %s5186_s23 = sadd.s32 4294967294, %s8107_s21   ;;  %s8107_s21 = sphi %s8155_s21, %s11542_s21   ;;  %s8103_s20 = sphi %s8153_s20, %s11546_s20   ;;  %s8099_s19 = sphi %s8151_s19, %s11545_s19   ;;  %s8095_s18 = sphi %s8149_s18, %s11544_s18  }
   0xd   : > { %s8174_s24 = sadd.s32 1, %s8107_s21   ;;  %s34_s25 = sadd.s32 1, %s8103_s20 }
   0xe   : > { %11103 = sst [smem:[#allocation17_spill]] %s8174_s24  ;;  %s31_s26 = ssub.s32 %s8107_s21, %s8174_s24 }
   0xf   : > { %p41_p0 = scmp.ne.s32.totalorder %s8103_s20, %s8099_s19  ;;  %p32_p1 = scmp.eq.s32.totalorder %s31_s26, 0 }
  0x10   : > { %p42_p2 = scmp.eq.s32.totalorder %s8107_s21, 0  ;;  %p47_p3 = scmp.ne.s32.totalorder %s8099_s19, %s8095_s18 }
  0x11   : > { %p10896_p4 = scmp.eq.s32.totalorder %s8170_s22, 0  ;;  %p170_p7 = scmp.eq.s32.totalorder %s8170_s22, 1 }
  0x12   : > { %s8186_s27 = scalar_select %p32_p1, %s8103_s20, %s34_s25  }
  0x13   : > { %p8188_p5 = por %p42_p2, %p41_p0  ;;  %p8194_p6 = por %p10896_p4, %p47_p3 }
  0x14   : > { %11104 = sst [smem:[#allocation18_spill]] %s8186_s27  ;;  %p176_p8 = scmp.eq.s32.totalorder %s5186_s23, 1 }
  0x15   : > { %s11105_s28 = scalar_select %p8188_p5, 1, 0 }
  0x16   : > { %s11106_s29 = scalar_select %p8194_p6, 1, 0 }
  0x17   : > { %p5187_p9 = scmp.ge.s32.totalorder %s8107_s21, 1  ;;  %p183_p10 = scmp.lt.s32.totalorder %s8107_s21, 3 }
  0x18   : > { %p8201_p11 = por %p170_p7, %p41_p0  ;;  %p8205_p12 = por %p176_p8, %p47_p3 }
  0x19   : > { %p8209_p13 = pnand %p5187_p9, %p183_p10  ;;  %s8109_s8 = smov [#allocation10]  }
  0x1a   : > { %s11107_s30 = scalar_select %p8201_p11, 1, 0 }
  0x1b   : > { %s11108_s6 = scalar_select %p8205_p12, 1, 0 }
  0x1c   : > { %s11109_s7 = scalar_select %p8209_p13, 1, 0 }
  0x1d   : > { %p7291_p1 = pneg %p8209_p13  ;;  %s195_s9 = sshll.u32 %s8109_s8, 4  ;;  %s196_s9 = int_to_ptr.vmem [resolvable:$true] %s195_s9 }
  0x1e   : > { %s10900_s11 = sand.u32 1, %s8103_s20   ;;  %s11111_s4 = sld [smem:[#allocation146_spill]] }
  0x1f   : > { %p8217_p2 = pnand %p7291_p1, %p10896_p4  ;;  %s8226_s12 = sshll.u32 %s10900_s11, 10 }
  0x21   : > { %p7883_p8 = pneg %p8217_p2 }
  0x24   : > { %s7881_s15 = scalar_lea.hbm %s11111_s4, 2048 }
  0x25   : > { %p7882_p7 = scmp.ne.s32.totalorder %s11111_s4, %s7881_s15  ;;  %p7888_p1 = scmp.lt.u32.totalorder %s7881_s15, %s11111_s4 }
  0x27   : > { %p7884_p9 = pnand %p7883_p8, %p7882_p7 }
  0x29   : > { %p7885_p10 = pneg %p7884_p9 }
  0x2b   : > { %p7890_p0 = pnand %p7888_p1, %p7885_p10 }
  0x2d   : > { %7893 = shalt.err (!%p7890_p0)
}
  0x2e   : > { %s7894_s26 = scalar_lea.vmem %s196_s9, 2048  ;;  %p7902_p11 = scmp.lt.s32.totalorder %s196_s9, %s196_s9 }
  0x2f   : > { %p7895_p4 = scmp.ne.s32.totalorder %s196_s9, %s7894_s26  ;;  %p7903_p6 = scmp.lt.s32.totalorder %s7894_s26, %s7894_s26 }
  0x31   : > { %p7897_p3 = pnand %p7895_p4, %p7883_p8  ;;  %p7904_p13 = por %p7903_p6, %p7902_p11 }
  0x33   : > { %p7898_p12 = pneg %p7897_p3 }
  0x35   : > { %p7905_p5 = pnand %p7904_p13, %p7898_p12 }
  0x37   : > { %7908 = shalt.err (!%p7905_p5)
}
  0x38   : > { %s10901_s8 = smov 128   ;;  %s10903_s13 = smov 8  }
  0x39   : > { %7294 = dma.hbm_to_vmem [thread:$0]  (!%p8217_p2), %s11111_s4, 2048, %s196_s9, [#allocation9], %s10901_s8, %s10901_s8, %s10903_s13  }
  0x3a   : > { %s8248_s16 = sshll.u32 %s8107_s21, 14  ;;  %p11112_p4 = scmp.ne.s32.totalorder %s11105_s28, 0 }
  0x3b   : > { %p11113_p5 = scmp.lt.s32.totalorder %s8107_s21, 2  ;;  %s10905_s23 = sand.u32 1, %s8107_s21  }
  0x3c   : > { %s11115_s1 = sld [smem:[#allocation145_spill]]  ;;  %s235_s9 = scalar_lea.vmem [#allocation5], %s8226_s12 }
  0x3d   : > { %p8254_p6 = pnand %p11113_p5, %p11112_p4  ;;  %s243_s14 = sshll.u32 %s235_s9, 4  ;;  %s8266_s14 = int_to_ptr.vmem [resolvable:$true] %s243_s14 }
  0x3e   : > { %s8270_s28 = scalar_lea.sflag [#allocation6], %s10905_s23 }
  0x3f   : > { %p8276_p12 = pneg %p8254_p6 }
  0x42   : > { %s8263_s26 = scalar_lea.hbm %s11115_s1, %s8248_s16  ;;  %s7914_s9 = scalar_lea.hbm %s11115_s1, 32768 }
  0x43   : > { %s7909_s15 = scalar_lea.hbm %s8263_s26, 16384  ;;  %p7915_p0 = scmp.lt.u32.totalorder %s8263_s26, %s11115_s1 }
  0x44   : > { %p7910_p11 = scmp.ne.s32.totalorder %s8263_s26, %s7909_s15  ;;  %p7916_p3 = scmp.lt.u32.totalorder %s7914_s9, %s7909_s15 }
  0x45   : > { %p7918_p8 = scmp.lt.u32.totalorder %s7909_s15, %s8263_s26 }
  0x46   : > { %p7912_p13 = pnand %p8276_p12, %p7910_p11  ;;  %p7917_p7 = por %p7916_p3, %p7915_p0 }
  0x48   : > { %p7913_p2 = pneg %p7912_p13  ;;  %p7919_p9 = por %p7918_p8, %p7917_p7 }
  0x4a   : > { %p7920_p10 = pnand %p7919_p9, %p7913_p2 }
  0x4c   : > { %7923 = shalt.err (!%p7920_p10)
}
  0x4d   : > { %s7924_s23 = scalar_lea.vmem %s8266_s14, 16384  ;;  %s8112_s25 = smov [#allocation5]  }
  0x4e   : > { %p7925_p1 = scmp.ne.s32.totalorder %s8266_s14, %s7924_s23  ;;  %s7929_s10 = sshll.u32 %s8112_s25, 4  ;;  %s7930_s10 = int_to_ptr.vmem [resolvable:$false] %s7929_s10 }
  0x4f   : > { %s7931_s8 = scalar_lea.vmem %s7930_s10, 32768  ;;  %p7932_p11 = scmp.lt.s32.totalorder %s8266_s14, %s7930_s10 }
  0x50   : > { %p7927_p4 = pnand %p7925_p1, %p8276_p12  ;;  %p7933_p13 = scmp.lt.s32.totalorder %s7931_s8, %s7924_s23 }
  0x52   : > { %p7928_p5 = pneg %p7927_p4  ;;  %p7934_p0 = por %p7933_p13, %p7932_p11 }
  0x54   : > { %p7935_p3 = pnand %p7934_p0, %p7928_p5 }
  0x56   : > { %7938 = shalt.err (!%p7935_p3)
}
  0x57   : > { %s11117_s13 = smov 8   ;;  %s11118_s15 = smov 128  }
  0x58   : > { %7301 = dma.hbm_to_vmem [thread:$0]  (!%p8254_p6), %s8263_s26, 16384, %s8266_s14, %s8270_s28, %s11118_s15, %s11118_s15, %s11117_s13  }
  0x59   : > { %s8307_s23 = scalar_lea.hbm %s10890_s0, %s8248_s16  ;;  %s213_s10 = scalar_lea.vmem [#allocation2], %s8226_s12 }
  0x5a   : > { %s221_s8 = sshll.u32 %s213_s10, 4  ;;  %s11119_s1 = sand.u32 1, %s8103_s20   ;;  %s8310_s8 = int_to_ptr.vmem [resolvable:$true] %s221_s8 }
  0x5b   : > { %s8314_s4 = scalar_lea.sflag [#allocation3], %s11119_s1  ;;  %s7939_s27 = scalar_lea.hbm %s8307_s23, 16384 }
  0x5c   : > { %p7940_p2 = scmp.ne.s32.totalorder %s8307_s23, %s7939_s27  ;;  %s7944_s9 = scalar_lea.hbm %s10890_s0, 32768 }
  0x5d   : > { %p7945_p9 = scmp.lt.u32.totalorder %s8307_s23, %s10890_s0  ;;  %p7946_p10 = scmp.lt.u32.totalorder %s7944_s9, %s7939_s27 }
  0x5e   : > { %p7942_p7 = pnand %p7940_p2, %p8276_p12  ;;  %p7948_p4 = scmp.lt.u32.totalorder %s7939_s27, %s8307_s23 }
  0x5f   : > { %p7947_p1 = por %p7946_p10, %p7945_p9 }
  0x60   : > { %p7943_p8 = pneg %p7942_p7 }
  0x61   : > { %p7949_p5 = por %p7948_p4, %p7947_p1 }
  0x63   : > { %p7950_p11 = pnand %p7949_p5, %p7943_p8 }
  0x65   : > { %7953 = shalt.err (!%p7950_p11)
}
  0x66   : > { %s7954_s1 = scalar_lea.vmem %s8310_s8, 16384  ;;  %s8113_s10 = smov [#allocation2]  }
  0x67   : > { %p7955_p13 = scmp.ne.s32.totalorder %s8310_s8, %s7954_s1  ;;  %s7959_s26 = sshll.u32 %s8113_s10, 4  ;;  %s7960_s26 = int_to_ptr.vmem [resolvable:$false] %s7959_s26 }
  0x68   : > { %s7961_s24 = scalar_lea.vmem %s7960_s26, 32768  ;;  %p7962_p2 = scmp.lt.s32.totalorder %s8310_s8, %s7960_s26 }
  0x69   : > { %p7957_p0 = pnand %p7955_p13, %p8276_p12  ;;  %p7963_p7 = scmp.lt.s32.totalorder %s7961_s24, %s7954_s1 }
  0x6b   : > { %p7958_p3 = pneg %p7957_p0  ;;  %p7964_p9 = por %p7963_p7, %p7962_p2 }
  0x6d   : > { %p7965_p10 = pnand %p7964_p9, %p7958_p3 }
  0x6f   : > { %7968 = shalt.err (!%p7965_p10)
}
  0x70   : > { %7298 = dma.hbm_to_vmem [thread:$0]  (!%p8254_p6), %s8307_s23, 16384, %s8310_s8, %s8314_s4, %s11118_s15, %s11118_s15, %s11117_s13  }
  0x71   : > { %s8345_s9 = scalar_lea.hbm %s10892_s2, %s8248_s16  ;;  %s257_s25 = scalar_lea.vmem [#allocation7], %s8226_s12 }
  0x72   : > { %s265_s1 = sshll.u32 %s257_s25, 4  ;;  %s7969_s10 = scalar_lea.hbm %s8345_s9, 16384  ;;  %s8348_s1 = int_to_ptr.vmem [resolvable:$true] %s265_s1 }
  0x73   : > { %p7970_p8 = scmp.ne.s32.totalorder %s8345_s9, %s7969_s10  ;;  %s7974_s23 = scalar_lea.hbm %s10892_s2, 32768 }
  0x74   : > { %p7975_p5 = scmp.lt.u32.totalorder %s8345_s9, %s10892_s2  ;;  %p7976_p11 = scmp.lt.u32.totalorder %s7974_s23, %s7969_s10 }
  0x75   : > { %p7972_p1 = pnand %p7970_p8, %p8276_p12  ;;  %p7978_p0 = scmp.lt.u32.totalorder %s7969_s10, %s8345_s9 }
  0x76   : > { %p7977_p13 = por %p7976_p11, %p7975_p5 }
  0x77   : > { %p7973_p4 = pneg %p7972_p1 }
  0x78   : > { %p7979_p3 = por %p7978_p0, %p7977_p13 }
  0x7a   : > { %p7980_p2 = pnand %p7979_p3, %p7973_p4 }
  0x7c   : > { %7983 = shalt.err (!%p7980_p2)
}
  0x7d   : > { %s7984_s27 = scalar_lea.vmem %s8348_s1, 16384  ;;  %s8114_s14 = smov [#allocation7]  }
  0x7e   : > { %p7985_p7 = scmp.ne.s32.totalorder %s8348_s1, %s7984_s27  ;;  %s7989_s25 = sshll.u32 %s8114_s14, 4  ;;  %s7990_s25 = int_to_ptr.vmem [resolvable:$false] %s7989_s25 }
  0x7f   : > { %s7991_s26 = scalar_lea.vmem %s7990_s25, 32768  ;;  %p7992_p8 = scmp.lt.s32.totalorder %s8348_s1, %s7990_s25 }
  0x80   : > { %p7987_p9 = pnand %p7985_p7, %p8276_p12  ;;  %p7993_p1 = scmp.lt.s32.totalorder %s7991_s26, %s7984_s27 }
  0x82   : > { %p7988_p10 = pneg %p7987_p9  ;;  %p7994_p5 = por %p7993_p1, %p7992_p8 }
  0x84   : > { %p7995_p11 = pnand %p7994_p5, %p7988_p10 }
  0x86   : > { %7998 = shalt.err (!%p7995_p11)
}
  0x87   : > { %7304 = dma.hbm_to_vmem [thread:$0]  (!%p8254_p6), %s8345_s9, 16384, %s8348_s1, %s8270_s28, %s11118_s15, %s11118_s15, %s11117_s13  }
  0x88   : > { %s8379_s23 = scalar_lea.hbm %s10893_s3, %s8248_s16  ;;  %s279_s8 = scalar_lea.vmem [#allocation8], %s8226_s12 }
  0x89   : > { %s287_s24 = sshll.u32 %s279_s8, 4  ;;  %s11120_s27 = sand.u32 1, %s8107_s21   ;;  %s8382_s24 = int_to_ptr.vmem [resolvable:$true] %s287_s24 }
  0x8a   : > { %s8386_s14 = scalar_lea.sflag [#allocation9], %s11120_s27  ;;  %s7999_s25 = scalar_lea.hbm %s8379_s23, 16384 }
  0x8b   : > { %p8000_p4 = scmp.ne.s32.totalorder %s8379_s23, %s7999_s25  ;;  %s8004_s16 = scalar_lea.hbm %s10893_s3, 32768 }
  0x8c   : > { %p8005_p3 = scmp.lt.u32.totalorder %s8379_s23, %s10893_s3  ;;  %p8006_p2 = scmp.lt.u32.totalorder %s8004_s16, %s7999_s25 }
  0x8d   : > { %p8002_p13 = pnand %p8000_p4, %p8276_p12  ;;  %p8008_p9 = scmp.lt.u32.totalorder %s7999_s25, %s8379_s23 }
  0x8e   : > { %p8007_p7 = por %p8006_p2, %p8005_p3 }
  0x8f   : > { %p8003_p0 = pneg %p8002_p13 }
  0x90   : > { %p8009_p10 = por %p8008_p9, %p8007_p7 }
  0x92   : > { %p8010_p8 = pnand %p8009_p10, %p8003_p0 }
  0x94   : > { %8013 = shalt.err (!%p8010_p8)
}
  0x95   : > { %s8014_s12 = scalar_lea.vmem %s8382_s24, 16384  ;;  %s8115_s10 = smov [#allocation8]  }
  0x96   : > { %p8015_p1 = scmp.ne.s32.totalorder %s8382_s24, %s8014_s12  ;;  %s8019_s4 = sshll.u32 %s8115_s10, 4  ;;  %s8020_s4 = int_to_ptr.vmem [resolvable:$false] %s8019_s4 }
  0x97   : > { %s8021_s8 = scalar_lea.vmem %s8020_s4, 32768  ;;  %p8022_p4 = scmp.lt.s32.totalorder %s8382_s24, %s8020_s4 }
  0x98   : > { %p8017_p5 = pnand %p8015_p1, %p8276_p12  ;;  %p8023_p13 = scmp.lt.s32.totalorder %s8021_s8, %s8014_s12 }
  0x9a   : > { %p8018_p11 = pneg %p8017_p5  ;;  %p8024_p3 = por %p8023_p13, %p8022_p4 }
  0x9c   : > { %p8025_p2 = pnand %p8024_p3, %p8018_p11 }
  0x9e   : > { %8028 = shalt.err (!%p8025_p2)
}
  0x9f   : > { %7307 = dma.hbm_to_vmem [thread:$0]  (!%p8254_p6), %s8379_s23, 16384, %s8382_s24, %s8386_s14, %s11118_s15, %s11118_s15, %s11117_s13  }
  0xa0   : > { %p11121_p12 = scmp.ne.s32.totalorder %s11109_s7, 0 }
  0xa2   : > { %299 = sbr.rel (%p11121_p12) target bundleno = 1360 (0x550), region = 40 }
  0xa9   : > { %s8416_s11 = sand.u32 1, %s8099_s19   ;;  %p11122_p0 = scmp.ne.s32.totalorder %s11106_s29, 0 }
  0xaa   : > { %s8419_s27 = sshll.u32 %s8416_s11, 10  ;;  %s302_s17 = scalar_lea.sflag [#allocation3], %s8416_s11 }
  0xab   : > { %s8423_s25 = scalar_lea.vmem [#allocation2], %s8419_s27 }
  0xac   : > { %8074 = dma.done.wait (%p11122_p0), %s302_s17, 16384  }
  0xad   : > { %8076 = vsyncadd (%p11122_p0), %s302_s17, 4294950912  ;;  %s310_s7 = sand.u32 1, %s8170_s22   ;;  %s8431_s15 = scalar_lea.vmem [#allocation5], %s8419_s27 }
  0xae   : > { %s311_s13 = scalar_lea.sflag [#allocation6], %s310_s7 }
  0xaf   : > { %8078 = dma.done.wait (%p11122_p0), %s311_s13, 32768  }
  0xb0   : > { %8080 = vsyncadd (%p11122_p0), %s311_s13, 4294934528  ;;  %s8438_s23 = scalar_lea.vmem [#allocation7], %s8419_s27  ;;  %s329_s24 = scalar_lea.sflag [#allocation9], %s310_s7 }
  0xb1   : > { %s8441_s14 = scalar_lea.vmem [#allocation8], %s8419_s27 }
  0xb2   : > { %8082 = dma.done.wait (%p11122_p0), %s329_s24, 16384  }
  0xb3   : > { %8084 = vsyncadd (%p11122_p0), %s329_s24, 4294950912  ;;  %p11123_p6 = scmp.eq.s32.totalorder %s8170_s22, 0 }
  0xb5   : > { %8086 = dma.done.wait (%p11123_p6), [#allocation9], 2048   ;;  %p11124_p7 = pmov %p11123_p6 }
  0xb6   : > { %v511_v0 = vld [vmem:[%s8431_s15] sm:$0xff]  ;;  %v512_v1 = vld [vmem:[%s8431_s15 + $0x8] sm:$0xff]  ;;  %v513_v5 = vld [vmem:[%s8431_s15 + $0x10] sm:$0xff]  ;;  %s10601_s29 = scalar_lea.vmem [#allocation11], %s8419_s27  ;;  %s5356_s28 = sshll.u32 %s8170_s22, 14 }
  0xb7   : > { %8088 = vsyncadd (%p11124_p7), [#allocation9], 4294965248  ;;  %v527_v2 = vld [vmem:[%s8431_s15 + $0x80] sm:$0xff]  ;;  %v6765_v3 = vpack.c.bf16 %v512_v1, %v511_v0  ;;  %v528_v4 = vld [vmem:[%s8431_s15 + $0x88] sm:$0xff]  ;;  %s5038_s9 = sshll.u32 %s10601_s29, 4  ;;  %s10842_s26 = scalar_lea.hbm %s10895_s5, %s5356_s28  ;;  %s10844_s9 = int_to_ptr.vmem [resolvable:$true] %s5038_s9 }
  0xb8   : > { %v514_v6 = vld [vmem:[%s8431_s15 + $0x18] sm:$0xff]  ;;  %v6797_v7 = vpack.c.bf16 %v528_v4, %v527_v2  ;;  %v529_v9 = vld [vmem:[%s8431_s15 + $0x90] sm:$0xff]  ;;  %v515_v12 = vld [vmem:[%s8431_s15 + $0x20] sm:$0xff]  ;;  %s5024_s22 = scalar_lea.sflag [#allocation4], %s8416_s11  ;;  %s8029_s12 = scalar_lea.vmem %s10844_s9, 16384 }
  0xb9   : > { %v6769_v8 = vpack.c.bf16 %v514_v6, %v513_v5  ;;  %v530_v10 = vld [vmem:[%s8431_s15 + $0x98] sm:$0xff]  ;;  %6766 = vmatprep.subr.bf16.mxu0 %v6765_v3  ;;  %v516_v13 = vld [vmem:[%s8431_s15 + $0x28] sm:$0xff]  ;;  %v531_v14 = vld [vmem:[%s8431_s15 + $0xa0] sm:$0xff]  ;;  %p8030_p9 = scmp.ne.s32.totalorder %s10844_s9, %s8029_s12  ;;  %p11539_p10 = scmp.ne.s32.totalorder %s11107_s30, 0 }
  0xba   : > { %v6801_v11 = vpack.c.bf16 %v530_v10, %v529_v9  ;;  %6798 = vmatprep.subr.bf16.mxu1 %v6797_v7  ;;  %6768 = vmatpush3.bf16.xpose.msra.mxu0 %v6765_v3  ;;  %v532_v15 = vld [vmem:[%s8431_s15 + $0xa8] sm:$0xff]  ;;  %v6773_v16 = vpack.c.bf16 %v516_v13, %v515_v12  ;;  %v383_v18 = vld [vmem:[%s8423_s25] sm:$0xff]  ;;  %v517_v20 = vld [vmem:[%s8431_s15 + $0x30] sm:$0xff]  ;;  %s8116_s10 = smov [#allocation11]  }
  0xbb   : > { %6800 = vmatpush3.bf16.xpose.msra.mxu1 %v6797_v7  ;;  %6770 = vmatprep.subr.bf16.mxu0 %v6769_v8  ;;  %v6805_v17 = vpack.c.bf16 %v532_v15, %v531_v14  ;;  %v399_v19 = vld [vmem:[%s8423_s25 + $0x80] sm:$0xff]  ;;  %v518_v21 = vld [vmem:[%s8431_s15 + $0x38] sm:$0xff]  ;;  %v533_v22 = vld [vmem:[%s8431_s15 + $0xb0] sm:$0xff]  ;;  %p8031_p8 = pnand %p8030_p9, %p11539_p10  ;;  %s8033_s4 = sshll.u32 %s8116_s10, 4  ;;  %s8034_s4 = int_to_ptr.vmem [resolvable:$false] %s8033_s4 }
  0xbc   : > { %6802 = vmatprep.subr.bf16.mxu1 %v6801_v11  ;;  %5901 = vmatprep.mubr.f32.mxu0 %v383_v18  ;;  %v534_v23 = vld [vmem:[%s8431_s15 + $0xb8] sm:$0xff]  ;;  %v6777_v24 = vpack.c.bf16 %v518_v21, %v517_v20  ;;  %v519_v26 = vld [vmem:[%s8431_s15 + $0x40] sm:$0xff]  ;;  %v520_v27 = vld [vmem:[%s8431_s15 + $0x48] sm:$0xff]  ;;  %s8035_s8 = scalar_lea.vmem %s8034_s4, 32768  ;;  %p8036_p5 = scmp.lt.s32.totalorder %s10844_s9, %s8034_s4 }
  0xbd   : > { %5957 = vmatprep.mubr.f32.mxu1 %v399_v19  ;;  %v6809_v25 = vpack.c.bf16 %v534_v23, %v533_v22  ;;  %v535_v28 = vld [vmem:[%s8431_s15 + $0xc0] sm:$0xff]  ;;  %v536_v29 = vld [vmem:[%s8431_s15 + $0xc8] sm:$0xff]  ;;  %v6781_v30 = vpack.c.bf16 %v520_v27, %v519_v26  ;;  %v521_v32 = vld [vmem:[%s8431_s15 + $0x50] sm:$0xff]  ;;  %p8032_p1 = pneg %p8031_p8  ;;  %p8037_p11 = scmp.lt.s32.totalorder %s8035_s8, %s8029_s12 }
  0xbe   : > { %v6813_v31 = vpack.c.bf16 %v536_v29, %v535_v28  ;;  %v522_v33 = vld [vmem:[%s8431_s15 + $0x58] sm:$0xff]  ;;  %v537_v34 = vld [vmem:[%s8431_s15 + $0xd0] sm:$0xff]  ;;  %v523_v38 = vld [vmem:[%s8431_s15 + $0x60] sm:$0xff] }
  0xbf   : > { %v538_v35 = vld [vmem:[%s8431_s15 + $0xd8] sm:$0xff]  ;;  %v6785_v36 = vpack.c.bf16 %v522_v33, %v521_v32  ;;  %v524_v39 = vld [vmem:[%s8431_s15 + $0x68] sm:$0xff]  ;;  %v539_v40 = vld [vmem:[%s8431_s15 + $0xe0] sm:$0xff]  ;;  %p8038_p4 = por %p8037_p11, %p8036_p5 }
  0xc0   : > { %v6817_v37 = vpack.c.bf16 %v538_v35, %v537_v34  ;;  %v540_v41 = vld [vmem:[%s8431_s15 + $0xe8] sm:$0xff]  ;;  %v6789_v42 = vpack.c.bf16 %v524_v39, %v523_v38  ;;  %v525_v44 = vld [vmem:[%s8431_s15 + $0x70] sm:$0xff]  ;;  %v526_v45 = vld [vmem:[%s8431_s15 + $0x78] sm:$0xff] }
  0xc1   : > { %v6821_v43 = vpack.c.bf16 %v540_v41, %v539_v40  ;;  %v541_v46 = vld [vmem:[%s8431_s15 + $0xf0] sm:$0xff]  ;;  %v542_v47 = vld [vmem:[%s8431_s15 + $0xf8] sm:$0xff]  ;;  %v6793_v48 = vpack.c.bf16 %v526_v45, %v525_v44  ;;  %v543_v50 = vld [vmem:[%s8431_s15 + $0x100] sm:$0xff]  ;;  %p8039_p13 = pnand %p8038_p4, %p8032_p1 }
  0xc2   : > { %6772 = vmatpush3.bf16.xpose.msra.mxu0 %v6769_v8  ;;  %v6825_v49 = vpack.c.bf16 %v542_v47, %v541_v46  ;;  %v544_v51 = vld [vmem:[%s8431_s15 + $0x108] sm:$0xff]  ;;  %v559_v52 = vld [vmem:[%s8431_s15 + $0x180] sm:$0xff]  ;;  %v545_v56 = vld [vmem:[%s8431_s15 + $0x110] sm:$0xff] }
  0xc3   : > { %6804 = vmatpush3.bf16.xpose.msra.mxu1 %v6801_v11  ;;  %6774 = vmatprep.subr.bf16.mxu0 %v6773_v16  ;;  %v560_v53 = vld [vmem:[%s8431_s15 + $0x188] sm:$0xff]  ;;  %v6829_v54 = vpack.c.bf16 %v544_v51, %v543_v50  ;;  %v546_v57 = vld [vmem:[%s8431_s15 + $0x118] sm:$0xff]  ;;  %v561_v59 = vld [vmem:[%s8431_s15 + $0x190] sm:$0xff] }
  0xc4   : > { %6806 = vmatprep.subr.bf16.mxu1 %v6805_v17  ;;  %v6861_v55 = vpack.c.bf16 %v560_v53, %v559_v52  ;;  %v384_v58 = vld [vmem:[%s8423_s25 + $0x8] sm:$0xff]  ;;  %v562_v60 = vld [vmem:[%s8431_s15 + $0x198] sm:$0xff]  ;;  %v385_v62 = vld [vmem:[%s8423_s25 + $0x10] sm:$0xff]  ;;  %v6833_v63 = vpack.c.bf16 %v546_v57, %v545_v56 }
  0xc5   : > { %v400_v61 = vld [vmem:[%s8423_s25 + $0x88] sm:$0xff]  ;;  %v401_v0 = vld [vmem:[%s8423_s25 + $0x90] sm:$0xff]  ;;  %v6865_v1 = vpack.c.bf16 %v562_v60, %v561_v59  ;;  %v386_v2 = vld [vmem:[%s8423_s25 + $0x18] sm:$0xff] }
  0xc6   : > { %v402_v3 = vld [vmem:[%s8423_s25 + $0x98] sm:$0xff]  ;;  %v387_v4 = vld [vmem:[%s8423_s25 + $0x20] sm:$0xff]  ;;  %v548_v7 = vld [vmem:[%s8431_s15 + $0x128] sm:$0xff] }
  0xc7   : > { %v403_v5 = vld [vmem:[%s8423_s25 + $0xa0] sm:$0xff]  ;;  %v564_v9 = vld [vmem:[%s8431_s15 + $0x1a8] sm:$0xff]  ;;  %v389_v14 = vld [vmem:[%s8423_s25 + $0x30] sm:$0xff] }
  0xc8   : > { %v547_v6 = vld [vmem:[%s8431_s15 + $0x120] sm:$0xff]  ;;  %v388_v10 = vld [vmem:[%s8423_s25 + $0x28] sm:$0xff]  ;;  %v405_v15 = vld [vmem:[%s8423_s25 + $0xb0] sm:$0xff] }
  0xc9   : > { %v563_v8 = vld [vmem:[%s8431_s15 + $0x1a0] sm:$0xff]  ;;  %v404_v11 = vld [vmem:[%s8423_s25 + $0xa8] sm:$0xff]  ;;  %v6837_v12 = vpack.c.bf16 %v548_v7, %v547_v6  ;;  %v549_v19 = vld [vmem:[%s8431_s15 + $0x130] sm:$0xff] }
  0xca   : > { %6776 = vmatpush3.bf16.xpose.msra.mxu0 %v6773_v16  ;;  %v6869_v13 = vpack.c.bf16 %v564_v9, %v563_v8  ;;  %v390_v16 = vld [vmem:[%s8423_s25 + $0x38] sm:$0xff]  ;;  %v391_v18 = vld [vmem:[%s8423_s25 + $0x40] sm:$0xff]  ;;  %v565_v22 = vld [vmem:[%s8431_s15 + $0x1b0] sm:$0xff] }
  0xcb   : > { %6808 = vmatpush3.bf16.xpose.msra.mxu1 %v6805_v17  ;;  %6778 = vmatprep.subr.bf16.mxu0 %v6777_v24  ;;  %v406_v17 = vld [vmem:[%s8423_s25 + $0xb8] sm:$0xff]  ;;  %v407_v21 = vld [vmem:[%s8423_s25 + $0xc0] sm:$0xff]  ;;  %v408_v26 = vld [vmem:[%s8423_s25 + $0xc8] sm:$0xff] }
  0xcc   : > { %6810 = vmatprep.subr.bf16.mxu1 %v6809_v25  ;;  %v550_v20 = vld [vmem:[%s8431_s15 + $0x138] sm:$0xff]  ;;  %v393_v28 = vld [vmem:[%s8423_s25 + $0x50] sm:$0xff]  ;;  %v395_v32 = vld [vmem:[%s8423_s25 + $0x60] sm:$0xff] }
  0xcd   : > { %v566_v23 = vld [vmem:[%s8431_s15 + $0x1b8] sm:$0xff]  ;;  %v409_v29 = vld [vmem:[%s8423_s25 + $0xd0] sm:$0xff]  ;;  %v551_v33 = vld [vmem:[%s8431_s15 + $0x140] sm:$0xff] }
  0xce   : > { %v6873_v27 = vpack.c.bf16 %v566_v23, %v565_v22  ;;  %v552_v34 = vld [vmem:[%s8431_s15 + $0x148] sm:$0xff]  ;;  %v411_v35 = vld [vmem:[%s8423_s25 + $0xe0] sm:$0xff]  ;;  %v398_v44 = vld [vmem:[%s8423_s25 + $0x78] sm:$0xff] }
  0xcf   : > { %v396_v38 = vld [vmem:[%s8423_s25 + $0x68] sm:$0xff]  ;;  %v6845_v39 = vpack.c.bf16 %v552_v34, %v551_v33  ;;  %v414_v45 = vld [vmem:[%s8423_s25 + $0xf8] sm:$0xff]  ;;  %v415_v46 = vld [vmem:[%s8423_s25 + $0x100] sm:$0xff] }
  0xd0   : > { %v412_v40 = vld [vmem:[%s8423_s25 + $0xe8] sm:$0xff]  ;;  %v553_v47 = vld [vmem:[%s8431_s15 + $0x150] sm:$0xff]  ;;  %v570_v51 = vld [vmem:[%s8431_s15 + $0x1d8] sm:$0xff] }
  0xd1   : > { %v569_v50 = vld [vmem:[%s8431_s15 + $0x1d0] sm:$0xff]  ;;  %v571_v56 = vld [vmem:[%s8431_s15 + $0x1e0] sm:$0xff]  ;;  %v572_v57 = vld [vmem:[%s8431_s15 + $0x1e8] sm:$0xff] }
  0xd2   : > { %6780 = vmatpush3.bf16.xpose.msra.mxu0 %v6777_v24  ;;  %v392_v24 = vld [vmem:[%s8423_s25 + $0x48] sm:$0xff]  ;;  %v6881_v53 = vpack.c.bf16 %v570_v51, %v569_v50  ;;  %v6885_v59 = vpack.c.bf16 %v572_v57, %v571_v56  ;;  %v557_v60 = vld [vmem:[%s8431_s15 + $0x170] sm:$0xff]  ;;  %v578_v9 = vld [vmem:[%s8431_s15 + $0x218] sm:$0xff] }
  0xd3   : > { %6812 = vmatpush3.bf16.xpose.msra.mxu1 %v6809_v25  ;;  %6782 = vmatprep.subr.bf16.mxu0 %v6781_v30  ;;  %v6841_v25 = vpack.c.bf16 %v550_v20, %v549_v19  ;;  %v577_v8 = vld [vmem:[%s8431_s15 + $0x210] sm:$0xff]  ;;  %v434_v19 = vld [vmem:[%s8423_s25 + $0x198] sm:$0xff]  ;;  %v419_v20 = vld [vmem:[%s8423_s25 + $0x120] sm:$0xff] }
  0xd4   : > { %6814 = vmatprep.subr.bf16.mxu1 %v6813_v31  ;;  %v579_v22 = vld [vmem:[%s8431_s15 + $0x220] sm:$0xff]  ;;  %v580_v23 = vld [vmem:[%s8431_s15 + $0x228] sm:$0xff]  ;;  %v438_v33 = vld [vmem:[%s8423_s25 + $0x1b8] sm:$0xff] }
  0xd5   : > { %v423_v34 = vld [vmem:[%s8423_s25 + $0x140] sm:$0xff]  ;;  %v584_v50 = vld [vmem:[%s8431_s15 + $0x248] sm:$0xff] }
  0xd6   : > { %v443_v51 = vld [vmem:[%s8423_s25 + $0x1e0] sm:$0xff]  ;;  %v444_v56 = vld [vmem:[%s8423_s25 + $0x1e8] sm:$0xff] }
  0xda   : > { %6784 = vmatpush3.bf16.xpose.msra.mxu0 %v6781_v30  ;;  %v394_v30 = vld [vmem:[%s8423_s25 + $0x58] sm:$0xff] }
  0xdb   : > { %6816 = vmatpush3.bf16.xpose.msra.mxu1 %v6813_v31  ;;  %6786 = vmatprep.subr.bf16.mxu0 %v6785_v36  ;;  %v410_v31 = vld [vmem:[%s8423_s25 + $0xd8] sm:$0xff] }
  0xdc   : > { %6818 = vmatprep.subr.bf16.mxu1 %v6817_v37 }
  0xe2   : > { %6788 = vmatpush3.bf16.xpose.msra.mxu0 %v6785_v36  ;;  %v567_v36 = vld [vmem:[%s8431_s15 + $0x1c0] sm:$0xff] }
  0xe3   : > { %6820 = vmatpush3.bf16.xpose.msra.mxu1 %v6817_v37  ;;  %6790 = vmatprep.subr.bf16.mxu0 %v6789_v42  ;;  %v568_v37 = vld [vmem:[%s8431_s15 + $0x1c8] sm:$0xff] }
  0xe4   : > { %6822 = vmatprep.subr.bf16.mxu1 %v6821_v43  ;;  %v6877_v41 = vpack.c.bf16 %v568_v37, %v567_v36  ;;  %v582_v36 = vld [vmem:[%s8431_s15 + $0x238] sm:$0xff]  ;;  %v439_v37 = vld [vmem:[%s8423_s25 + $0x1c0] sm:$0xff] }
  0xea   : > { %6792 = vmatpush3.bf16.xpose.msra.mxu0 %v6789_v42  ;;  %v397_v42 = vld [vmem:[%s8423_s25 + $0x70] sm:$0xff] }
  0xeb   : > { %6824 = vmatpush3.bf16.xpose.msra.mxu1 %v6821_v43  ;;  %6794 = vmatprep.subr.bf16.mxu0 %v6793_v48  ;;  %v413_v43 = vld [vmem:[%s8423_s25 + $0xf0] sm:$0xff] }
  0xec   : > { %6826 = vmatprep.subr.bf16.mxu1 %v6825_v49 }
  0xf2   : > { %6796 = vmatpush3.bf16.xpose.msra.mxu0 %v6793_v48  ;;  %v554_v48 = vld [vmem:[%s8431_s15 + $0x158] sm:$0xff] }
  0xf3   : > { %6828 = vmatpush3.bf16.xpose.msra.mxu1 %v6825_v49  ;;  %6830 = vmatprep.subr.bf16.mxu0 %v6829_v54  ;;  %v431_v49 = vld [vmem:[%s8423_s25 + $0x180] sm:$0xff]  ;;  %v6849_v52 = vpack.c.bf16 %v554_v48, %v553_v47  ;;  %v442_v47 = vld [vmem:[%s8423_s25 + $0x1d8] sm:$0xff] }
  0xf4   : > { %6862 = vmatprep.subr.bf16.mxu1 %v6861_v55  ;;  %v427_v48 = vld [vmem:[%s8423_s25 + $0x160] sm:$0xff] }
  0xf9   : > { %5902 = vmatmul.mubr.f32.vlgmr.msra.gmra.mrb[0].mxu0 %v384_v58 }
  0xfa   : > { %5958 = vmatmul.mubr.f32.vlgmr.msra.gmra.mrb[0].mxu1 %v400_v61  ;;  %6832 = vmatpush3.bf16.xpose.msra.mxu0 %v6829_v54  ;;  %v555_v54 = vld [vmem:[%s8431_s15 + $0x160] sm:$0xff]  ;;  %v558_v61 = vld [vmem:[%s8431_s15 + $0x178] sm:$0xff] }
  0xfb   : > { %6864 = vmatpush3.bf16.xpose.msra.mxu1 %v6861_v55  ;;  %5904 = vmatprep.mubr.f32.mxu0 %v385_v62  ;;  %v556_v55 = vld [vmem:[%s8431_s15 + $0x168] sm:$0xff]  ;;  %v573_v62 = vld [vmem:[%s8431_s15 + $0x1f0] sm:$0xff] }
  0xfc   : > { %5960 = vmatprep.mubr.f32.mxu1 %v401_v0  ;;  %6834 = vmatprep.subr.bf16.mxu0 %v6833_v63  ;;  %v6853_v58 = vpack.c.bf16 %v556_v55, %v555_v54  ;;  %v6857_v0 = vpack.c.bf16 %v558_v61, %v557_v60  ;;  %v428_v54 = vld [vmem:[%s8423_s25 + $0x168] sm:$0xff]  ;;  %v430_v60 = vld [vmem:[%s8423_s25 + $0x178] sm:$0xff] }
  0xfd   : > { %5905 = vmatmul.mubr.f32.gmra.mrb[2].mxu0 %v386_v2  ;;  %6866 = vmatprep.subr.bf16.mxu1 %v6865_v1  ;;  %v575_v2 = vld [vmem:[%s8431_s15 + $0x200] sm:$0xff]  ;;  %v446_v61 = vld [vmem:[%s8423_s25 + $0x1f8] sm:$0xff] }
  0xfe   : > { %5961 = vmatmul.mubr.f32.gmra.mrb[2].mxu1 %v402_v3  ;;  %5907 = vmatprep.mubr.f32.mxu0 %v387_v4  ;;  %v576_v3 = vld [vmem:[%s8431_s15 + $0x208] sm:$0xff]  ;;  %v591_v4 = vld [vmem:[%s8431_s15 + $0x280] sm:$0xff] }
  0xff   : > { %5963 = vmatprep.mubr.f32.mxu1 %v403_v5  ;;  %v592_v5 = vld [vmem:[%s8431_s15 + $0x288] sm:$0xff]  ;;  %v6893_v6 = vpack.c.bf16 %v576_v3, %v575_v2  ;;  %v601_v2 = vld [vmem:[%s8431_s15 + $0x2d0] sm:$0xff]  ;;  %v602_v3 = vld [vmem:[%s8431_s15 + $0x2d8] sm:$0xff] }
 0x100   : > { %v6925_v7 = vpack.c.bf16 %v592_v5, %v591_v4  ;;  %v6945_v5 = vpack.c.bf16 %v602_v3, %v601_v2  ;;  %v615_v2 = vld [vmem:[%s8431_s15 + $0x340] sm:$0xff]  ;;  %v616_v3 = vld [vmem:[%s8431_s15 + $0x348] sm:$0xff] }
 0x101   : > { %5908 = vmatmul.mubr.f32.gmra.mrb[4].mxu0 %v388_v10  ;;  %v416_v10 = vld [vmem:[%s8423_s25 + $0x108] sm:$0xff] }
 0x102   : > { %6836 = vmatpush3.bf16.xpose.msra.mxu0 %v6833_v63  ;;  %5964 = vmatmul.mubr.f32.gmra.mrb[4].mxu1 %v404_v11  ;;  %v574_v63 = vld [vmem:[%s8431_s15 + $0x1f8] sm:$0xff]  ;;  %v593_v11 = vld [vmem:[%s8431_s15 + $0x290] sm:$0xff] }
 0x103   : > { %6868 = vmatpush3.bf16.xpose.msra.mxu1 %v6865_v1  ;;  %6838 = vmatprep.subr.bf16.mxu0 %v6837_v12  ;;  %v6889_v1 = vpack.c.bf16 %v574_v63, %v573_v62  ;;  %v447_v62 = vld [vmem:[%s8423_s25 + $0x200] sm:$0xff]  ;;  %v585_v63 = vld [vmem:[%s8431_s15 + $0x250] sm:$0xff] }
 0x104   : > { %6870 = vmatprep.subr.bf16.mxu1 %v6869_v13  ;;  %5910 = vmatprep.mubr.f32.mxu0 %v389_v14  ;;  %v417_v14 = vld [vmem:[%s8423_s25 + $0x110] sm:$0xff] }
 0x105   : > { %5966 = vmatprep.mubr.f32.mxu1 %v405_v15  ;;  %5911 = vmatmul.mubr.f32.gmra.mrb[6].mxu0 %v390_v16  ;;  %v6897_v15 = vpack.c.bf16 %v578_v9, %v577_v8  ;;  %v433_v16 = vld [vmem:[%s8423_s25 + $0x190] sm:$0xff]  ;;  %v603_v8 = vld [vmem:[%s8431_s15 + $0x2e0] sm:$0xff]  ;;  %v604_v9 = vld [vmem:[%s8431_s15 + $0x2e8] sm:$0xff] }
 0x106   : > { %5967 = vmatmul.mubr.f32.gmra.mrb[6].mxu1 %v406_v17  ;;  %5913 = vmatprep.mubr.f32.mxu0 %v391_v18  ;;  %v418_v18 = vld [vmem:[%s8423_s25 + $0x118] sm:$0xff] }
 0x107   : > { %5969 = vmatprep.mubr.f32.mxu1 %v407_v21  ;;  %v435_v21 = vld [vmem:[%s8423_s25 + $0x1a0] sm:$0xff] }
 0x109   : > { %5914 = vmatmul.mubr.f32.gmra.mrb[8].mxu0 %v392_v24  ;;  %v595_v24 = vld [vmem:[%s8431_s15 + $0x2a0] sm:$0xff] }
 0x10a   : > { %6840 = vmatpush3.bf16.xpose.msra.mxu0 %v6837_v12  ;;  %5970 = vmatmul.mubr.f32.gmra.mrb[8].mxu1 %v408_v26  ;;  %v594_v12 = vld [vmem:[%s8431_s15 + $0x298] sm:$0xff]  ;;  %v420_v26 = vld [vmem:[%s8423_s25 + $0x128] sm:$0xff] }
 0x10b   : > { %6872 = vmatpush3.bf16.xpose.msra.mxu1 %v6869_v13  ;;  %6842 = vmatprep.subr.bf16.mxu0 %v6841_v25  ;;  %v432_v13 = vld [vmem:[%s8423_s25 + $0x188] sm:$0xff]  ;;  %v6929_v17 = vpack.c.bf16 %v594_v12, %v593_v11  ;;  %v6949_v11 = vpack.c.bf16 %v604_v9, %v603_v8  ;;  %v589_v12 = vld [vmem:[%s8431_s15 + $0x270] sm:$0xff] }
 0x10c   : > { %6874 = vmatprep.subr.bf16.mxu1 %v6873_v27  ;;  %5916 = vmatprep.mubr.f32.mxu0 %v393_v28  ;;  %v6901_v28 = vpack.c.bf16 %v580_v23, %v579_v22  ;;  %v461_v8 = vld [vmem:[%s8423_s25 + $0x270] sm:$0xff] }
 0x10d   : > { %5972 = vmatprep.mubr.f32.mxu1 %v409_v29  ;;  %5917 = vmatmul.mubr.f32.gmra.mrb[10].mxu0 %v394_v30  ;;  %v421_v30 = vld [vmem:[%s8423_s25 + $0x130] sm:$0xff] }
 0x10e   : > { %5973 = vmatmul.mubr.f32.gmra.mrb[10].mxu1 %v410_v31  ;;  %5919 = vmatprep.mubr.f32.mxu0 %v395_v32  ;;  %v437_v31 = vld [vmem:[%s8423_s25 + $0x1b0] sm:$0xff]  ;;  %v422_v32 = vld [vmem:[%s8423_s25 + $0x138] sm:$0xff] }
 0x10f   : > { %5975 = vmatprep.mubr.f32.mxu1 %v411_v35  ;;  %v581_v35 = vld [vmem:[%s8431_s15 + $0x230] sm:$0xff] }
 0x110   : > { %v477_v9 = vld [vmem:[%s8423_s25 + $0x2f0] sm:$0xff] }
 0x111   : > { %5920 = vmatmul.mubr.f32.gmra.mrb[12].mxu0 %v396_v38  ;;  %v597_v38 = vld [vmem:[%s8431_s15 + $0x2b0] sm:$0xff] }
 0x112   : > { %6844 = vmatpush3.bf16.xpose.msra.mxu0 %v6841_v25  ;;  %5976 = vmatmul.mubr.f32.gmra.mrb[12].mxu1 %v412_v40  ;;  %v596_v25 = vld [vmem:[%s8431_s15 + $0x2a8] sm:$0xff] }
 0x113   : > { %6876 = vmatpush3.bf16.xpose.msra.mxu1 %v6873_v27  ;;  %6846 = vmatprep.subr.bf16.mxu0 %v6845_v39  ;;  %v436_v27 = vld [vmem:[%s8423_s25 + $0x1a8] sm:$0xff]  ;;  %v6933_v29 = vpack.c.bf16 %v596_v25, %v595_v24  ;;  %v609_v24 = vld [vmem:[%s8431_s15 + $0x310] sm:$0xff]  ;;  %v610_v25 = vld [vmem:[%s8431_s15 + $0x318] sm:$0xff] }
 0x114   : > { %6878 = vmatprep.subr.bf16.mxu1 %v6877_v41  ;;  %5922 = vmatprep.mubr.f32.mxu0 %v397_v42  ;;  %v424_v40 = vld [vmem:[%s8423_s25 + $0x148] sm:$0xff] }
 0x115   : > { %5978 = vmatprep.mubr.f32.mxu1 %v413_v43  ;;  %5923 = vmatmul.mubr.f32.gmra.mrb[14].mxu0 %v398_v44  ;;  %v440_v42 = vld [vmem:[%s8423_s25 + $0x1c8] sm:$0xff]  ;;  %v425_v44 = vld [vmem:[%s8423_s25 + $0x150] sm:$0xff] }
 0x116   : > { %5979 = vmatmul.mubr.f32.gmra.mrb[14].mxu1 %v414_v45  ;;  %6013 = vmatprep.mubr.f32.mxu0 %v415_v46  ;;  %v441_v45 = vld [vmem:[%s8423_s25 + $0x1d0] sm:$0xff]  ;;  %v426_v46 = vld [vmem:[%s8423_s25 + $0x158] sm:$0xff] }
 0x117   : > { %6069 = vmatprep.mubr.f32.mxu1 %v431_v49  ;;  %v583_v49 = vld [vmem:[%s8431_s15 + $0x240] sm:$0xff] }
 0x118   : > { %v6909_v55 = vpack.c.bf16 %v584_v50, %v583_v49  ;;  %v470_v49 = vld [vmem:[%s8423_s25 + $0x2b8] sm:$0xff]  ;;  %v455_v50 = vld [vmem:[%s8423_s25 + $0x240] sm:$0xff] }
 0x11a   : > { %6848 = vmatpush3.bf16.xpose.msra.mxu0 %v6845_v39  ;;  %v598_v39 = vld [vmem:[%s8431_s15 + $0x2b8] sm:$0xff] }
 0x11b   : > { %6880 = vmatpush3.bf16.xpose.msra.mxu1 %v6877_v41  ;;  %6850 = vmatprep.subr.bf16.mxu0 %v6849_v52  ;;  %v6905_v41 = vpack.c.bf16 %v582_v36, %v581_v35  ;;  %v6937_v43 = vpack.c.bf16 %v598_v39, %v597_v38  ;;  %v466_v35 = vld [vmem:[%s8423_s25 + $0x298] sm:$0xff]  ;;  %v451_v36 = vld [vmem:[%s8423_s25 + $0x220] sm:$0xff]  ;;  %v612_v39 = vld [vmem:[%s8431_s15 + $0x328] sm:$0xff] }
 0x11c   : > { %6882 = vmatprep.subr.bf16.mxu1 %v6881_v53  ;;  %v611_v38 = vld [vmem:[%s8431_s15 + $0x320] sm:$0xff] }
 0x122   : > { %6852 = vmatpush3.bf16.xpose.msra.mxu0 %v6849_v52  ;;  %v599_v52 = vld [vmem:[%s8431_s15 + $0x2c0] sm:$0xff] }
 0x123   : > { %6884 = vmatpush3.bf16.xpose.msra.mxu1 %v6881_v53  ;;  %6854 = vmatprep.subr.bf16.mxu0 %v6853_v58  ;;  %v600_v53 = vld [vmem:[%s8431_s15 + $0x2c8] sm:$0xff] }
 0x124   : > { %6886 = vmatprep.subr.bf16.mxu1 %v6885_v59  ;;  %v6941_v57 = vpack.c.bf16 %v600_v53, %v599_v52  ;;  %v613_v52 = vld [vmem:[%s8431_s15 + $0x330] sm:$0xff]  ;;  %v614_v53 = vld [vmem:[%s8431_s15 + $0x338] sm:$0xff] }
 0x12a   : > { %6856 = vmatpush3.bf16.xpose.msra.mxu0 %v6853_v58  ;;  %v429_v58 = vld [vmem:[%s8423_s25 + $0x170] sm:$0xff] }
 0x12b   : > { %6888 = vmatpush3.bf16.xpose.msra.mxu1 %v6885_v59  ;;  %6858 = vmatprep.subr.bf16.mxu0 %v6857_v0  ;;  %v445_v59 = vld [vmem:[%s8423_s25 + $0x1f0] sm:$0xff] }
 0x12c   : > { %6890 = vmatprep.subr.bf16.mxu1 %v6889_v1 }
 0x132   : > { %6860 = vmatpush3.bf16.xpose.msra.mxu0 %v6857_v0  ;;  %v586_v0 = vld [vmem:[%s8431_s15 + $0x258] sm:$0xff] }
 0x133   : > { %6892 = vmatpush3.bf16.xpose.msra.mxu1 %v6889_v1  ;;  %6894 = vmatprep.subr.bf16.mxu0 %v6893_v6  ;;  %v463_v1 = vld [vmem:[%s8423_s25 + $0x280] sm:$0xff]  ;;  %v6913_v4 = vpack.c.bf16 %v586_v0, %v585_v63  ;;  %v474_v63 = vld [vmem:[%s8423_s25 + $0x2d8] sm:$0xff] }
 0x134   : > { %6926 = vmatprep.subr.bf16.mxu1 %v6925_v7  ;;  %v459_v0 = vld [vmem:[%s8423_s25 + $0x260] sm:$0xff] }
 0x139   : > { %6014 = vmatmul.mubr.f32.vlgmr.msra.gmra.mrb[16].mxu0 %v416_v10 }
 0x13a   : > { %6070 = vmatmul.mubr.f32.vlgmr.msra.gmra.mrb[16].mxu1 %v432_v13  ;;  %6896 = vmatpush3.bf16.xpose.msra.mxu0 %v6893_v6  ;;  %v587_v6 = vld [vmem:[%s8431_s15 + $0x260] sm:$0xff]  ;;  %v590_v13 = vld [vmem:[%s8431_s15 + $0x278] sm:$0xff] }
 0x13b   : > { %6928 = vmatpush3.bf16.xpose.msra.mxu1 %v6925_v7  ;;  %6016 = vmatprep.mubr.f32.mxu0 %v417_v14  ;;  %v588_v7 = vld [vmem:[%s8431_s15 + $0x268] sm:$0xff]  ;;  %v605_v14 = vld [vmem:[%s8431_s15 + $0x2f0] sm:$0xff] }
 0x13c   : > { %6072 = vmatprep.mubr.f32.mxu1 %v433_v16  ;;  %6898 = vmatprep.subr.bf16.mxu0 %v6897_v15  ;;  %v6917_v10 = vpack.c.bf16 %v588_v7, %v587_v6  ;;  %v6921_v16 = vpack.c.bf16 %v590_v13, %v589_v12  ;;  %v632_v6 = vld [vmem:[%s8431_s15 + $0x3c8] sm:$0xff]  ;;  %v462_v12 = vld [vmem:[%s8423_s25 + $0x278] sm:$0xff] }
 0x13d   : > { %6017 = vmatmul.mubr.f32.gmra.mrb[18].mxu0 %v418_v18  ;;  %6930 = vmatprep.subr.bf16.mxu1 %v6929_v17  ;;  %v607_v18 = vld [vmem:[%s8431_s15 + $0x300] sm:$0xff]  ;;  %v476_v7 = vld [vmem:[%s8423_s25 + $0x2e8] sm:$0xff]  ;;  %v478_v13 = vld [vmem:[%s8423_s25 + $0x2f8] sm:$0xff] }
 0x13e   : > { %6073 = vmatmul.mubr.f32.gmra.mrb[18].mxu1 %v434_v19  ;;  %6019 = vmatprep.mubr.f32.mxu0 %v419_v20  ;;  %v608_v19 = vld [vmem:[%s8431_s15 + $0x308] sm:$0xff]  ;;  %v623_v20 = vld [vmem:[%s8431_s15 + $0x380] sm:$0xff] }
 0x13f   : > { %6075 = vmatprep.mubr.f32.mxu1 %v435_v21  ;;  %v624_v21 = vld [vmem:[%s8431_s15 + $0x388] sm:$0xff]  ;;  %v6957_v22 = vpack.c.bf16 %v608_v19, %v607_v18  ;;  %v633_v18 = vld [vmem:[%s8431_s15 + $0x3d0] sm:$0xff]  ;;  %v634_v19 = vld [vmem:[%s8431_s15 + $0x3d8] sm:$0xff] }
 0x140   : > { %v6989_v23 = vpack.c.bf16 %v624_v21, %v623_v20  ;;  %v7009_v21 = vpack.c.bf16 %v634_v19, %v633_v18  ;;  %v494_v18 = vld [vmem:[%s8423_s25 + $0x378] sm:$0xff] }
 0x141   : > { %6020 = vmatmul.mubr.f32.gmra.mrb[20].mxu0 %v420_v26  ;;  %v448_v26 = vld [vmem:[%s8423_s25 + $0x208] sm:$0xff] }
 0x142   : > { %6900 = vmatpush3.bf16.xpose.msra.mxu0 %v6897_v15  ;;  %6076 = vmatmul.mubr.f32.gmra.mrb[20].mxu1 %v436_v27  ;;  %v606_v15 = vld [vmem:[%s8431_s15 + $0x2f8] sm:$0xff]  ;;  %v625_v27 = vld [vmem:[%s8431_s15 + $0x390] sm:$0xff] }
 0x143   : > { %6932 = vmatpush3.bf16.xpose.msra.mxu1 %v6929_v17  ;;  %6902 = vmatprep.subr.bf16.mxu0 %v6901_v28  ;;  %v6953_v17 = vpack.c.bf16 %v606_v15, %v605_v14  ;;  %v479_v14 = vld [vmem:[%s8423_s25 + $0x300] sm:$0xff] }
 0x144   : > { %6934 = vmatprep.subr.bf16.mxu1 %v6933_v29  ;;  %6022 = vmatprep.mubr.f32.mxu0 %v421_v30  ;;  %v449_v30 = vld [vmem:[%s8423_s25 + $0x210] sm:$0xff]  ;;  %v495_v15 = vld [vmem:[%s8423_s25 + $0x380] sm:$0xff] }
 0x145   : > { %6078 = vmatprep.mubr.f32.mxu1 %v437_v31  ;;  %6023 = vmatmul.mubr.f32.gmra.mrb[22].mxu0 %v422_v32  ;;  %v465_v31 = vld [vmem:[%s8423_s25 + $0x290] sm:$0xff]  ;;  %v6961_v32 = vpack.c.bf16 %v610_v25, %v609_v24  ;;  %v635_v24 = vld [vmem:[%s8431_s15 + $0x3e0] sm:$0xff]  ;;  %v636_v25 = vld [vmem:[%s8431_s15 + $0x3e8] sm:$0xff] }
 0x146   : > { %6079 = vmatmul.mubr.f32.gmra.mrb[22].mxu1 %v438_v33  ;;  %6025 = vmatprep.mubr.f32.mxu0 %v423_v34  ;;  %v450_v34 = vld [vmem:[%s8423_s25 + $0x218] sm:$0xff] }
 0x147   : > { %6081 = vmatprep.mubr.f32.mxu1 %v439_v37  ;;  %v467_v37 = vld [vmem:[%s8423_s25 + $0x2a0] sm:$0xff] }
 0x149   : > { %6026 = vmatmul.mubr.f32.gmra.mrb[24].mxu0 %v424_v40  ;;  %v452_v40 = vld [vmem:[%s8423_s25 + $0x228] sm:$0xff] }
 0x14a   : > { %6904 = vmatpush3.bf16.xpose.msra.mxu0 %v6901_v28  ;;  %6082 = vmatmul.mubr.f32.gmra.mrb[24].mxu1 %v440_v42  ;;  %v626_v28 = vld [vmem:[%s8431_s15 + $0x398] sm:$0xff]  ;;  %v628_v42 = vld [vmem:[%s8431_s15 + $0x3a8] sm:$0xff] }
 0x14b   : > { %6936 = vmatpush3.bf16.xpose.msra.mxu1 %v6933_v29  ;;  %6906 = vmatprep.subr.bf16.mxu0 %v6905_v41  ;;  %v464_v29 = vld [vmem:[%s8423_s25 + $0x288] sm:$0xff]  ;;  %v6993_v33 = vpack.c.bf16 %v626_v28, %v625_v27  ;;  %v7013_v27 = vpack.c.bf16 %v636_v25, %v635_v24  ;;  %v621_v28 = vld [vmem:[%s8431_s15 + $0x370] sm:$0xff] }
 0x14c   : > { %6938 = vmatprep.subr.bf16.mxu1 %v6937_v43  ;;  %6028 = vmatprep.mubr.f32.mxu0 %v425_v44  ;;  %v453_v44 = vld [vmem:[%s8423_s25 + $0x230] sm:$0xff] }
 0x14d   : > { %6084 = vmatprep.mubr.f32.mxu1 %v441_v45  ;;  %6029 = vmatmul.mubr.f32.gmra.mrb[26].mxu0 %v426_v46  ;;  %v469_v45 = vld [vmem:[%s8423_s25 + $0x2b0] sm:$0xff]  ;;  %v6965_v46 = vpack.c.bf16 %v612_v39, %v611_v38  ;;  %v482_v38 = vld [vmem:[%s8423_s25 + $0x318] sm:$0xff] }
 0x14e   : > { %6085 = vmatmul.mubr.f32.gmra.mrb[26].mxu1 %v442_v47  ;;  %6031 = vmatprep.mubr.f32.mxu0 %v427_v48  ;;  %v454_v48 = vld [vmem:[%s8423_s25 + $0x238] sm:$0xff] }
 0x14f   : > { %6087 = vmatprep.mubr.f32.mxu1 %v443_v51  ;;  %v471_v51 = vld [vmem:[%s8423_s25 + $0x2c0] sm:$0xff]  ;;  %v498_v39 = vld [vmem:[%s8423_s25 + $0x398] sm:$0xff] }
 0x151   : > { %6032 = vmatmul.mubr.f32.gmra.mrb[28].mxu0 %v428_v54  ;;  %v456_v54 = vld [vmem:[%s8423_s25 + $0x248] sm:$0xff] }
 0x152   : > { %6908 = vmatpush3.bf16.xpose.msra.mxu0 %v6905_v41  ;;  %6088 = vmatmul.mubr.f32.gmra.mrb[28].mxu1 %v444_v56  ;;  %v627_v41 = vld [vmem:[%s8431_s15 + $0x3a0] sm:$0xff]  ;;  %v630_v56 = vld [vmem:[%s8431_s15 + $0x3b8] sm:$0xff] }
 0x153   : > { %6940 = vmatpush3.bf16.xpose.msra.mxu1 %v6937_v43  ;;  %6910 = vmatprep.subr.bf16.mxu0 %v6909_v55  ;;  %v468_v43 = vld [vmem:[%s8423_s25 + $0x2a8] sm:$0xff]  ;;  %v6997_v47 = vpack.c.bf16 %v628_v42, %v627_v41  ;;  %v499_v41 = vld [vmem:[%s8423_s25 + $0x3a0] sm:$0xff] }
 0x154   : > { %6942 = vmatprep.subr.bf16.mxu1 %v6941_v57  ;;  %6034 = vmatprep.mubr.f32.mxu0 %v429_v58  ;;  %v457_v58 = vld [vmem:[%s8423_s25 + $0x250] sm:$0xff]  ;;  %v484_v42 = vld [vmem:[%s8423_s25 + $0x328] sm:$0xff] }
 0x155   : > { %6090 = vmatprep.mubr.f32.mxu1 %v445_v59  ;;  %6035 = vmatmul.mubr.f32.gmra.mrb[30].mxu0 %v430_v60  ;;  %v473_v59 = vld [vmem:[%s8423_s25 + $0x2d0] sm:$0xff]  ;;  %v6969_v60 = vpack.c.bf16 %v614_v53, %v613_v52 }
 0x156   : > { %6091 = vmatmul.mubr.f32.gmra.mrb[30].mxu1 %v446_v61  ;;  %6125 = vmatprep.mubr.f32.mxu0 %v447_v62  ;;  %v458_v62 = vld [vmem:[%s8423_s25 + $0x258] sm:$0xff]  ;;  %v489_v52 = vld [vmem:[%s8423_s25 + $0x350] sm:$0xff] }
 0x157   : > { %6181 = vmatprep.mubr.f32.mxu1 %v463_v1  ;;  %v475_v1 = vld [vmem:[%s8423_s25 + $0x2e0] sm:$0xff]  ;;  %v505_v53 = vld [vmem:[%s8423_s25 + $0x3d0] sm:$0xff] }
 0x15a   : > { %6912 = vmatpush3.bf16.xpose.msra.mxu0 %v6909_v55  ;;  %v629_v55 = vld [vmem:[%s8431_s15 + $0x3b0] sm:$0xff] }
 0x15b   : > { %6944 = vmatpush3.bf16.xpose.msra.mxu1 %v6941_v57  ;;  %6914 = vmatprep.subr.bf16.mxu0 %v6913_v4  ;;  %v472_v57 = vld [vmem:[%s8423_s25 + $0x2c8] sm:$0xff]  ;;  %v7001_v61 = vpack.c.bf16 %v630_v56, %v629_v55 }
 0x15c   : > { %6946 = vmatprep.subr.bf16.mxu1 %v6945_v5  ;;  %v8698_v56 = vld [vmem:[#allocation10 + $0x8] sm:$0xff] }
 0x162   : > { %6916 = vmatpush3.bf16.xpose.msra.mxu0 %v6913_v4  ;;  %v460_v4 = vld [vmem:[%s8423_s25 + $0x268] sm:$0xff] }
 0x163   : > { %6948 = vmatpush3.bf16.xpose.msra.mxu1 %v6945_v5  ;;  %6918 = vmatprep.subr.bf16.mxu0 %v6917_v10  ;;  %v631_v5 = vld [vmem:[%s8431_s15 + $0x3c0] sm:$0xff] }
 0x164   : > { %6950 = vmatprep.subr.bf16.mxu1 %v6949_v11 }
 0x16a   : > { %6920 = vmatpush3.bf16.xpose.msra.mxu0 %v6917_v10  ;;  %v6973_v10 = vpack.c.bf16 %v616_v3, %v615_v2 }
 0x16b   : > { %6952 = vmatpush3.bf16.xpose.msra.mxu1 %v6949_v11  ;;  %6922 = vmatprep.subr.bf16.mxu0 %v6921_v16  ;;  %v7005_v11 = vpack.c.bf16 %v632_v6, %v631_v5 }
 0x16c   : > { %6954 = vmatprep.subr.bf16.mxu1 %v6953_v17 }
 0x172   : > { %6924 = vmatpush3.bf16.xpose.msra.mxu0 %v6921_v16  ;;  %v617_v16 = vld [vmem:[%s8431_s15 + $0x350] sm:$0xff] }
 0x173   : > { %6956 = vmatpush3.bf16.xpose.msra.mxu1 %v6953_v17  ;;  %6958 = vmatprep.subr.bf16.mxu0 %v6957_v22  ;;  %v618_v17 = vld [vmem:[%s8431_s15 + $0x358] sm:$0xff] }
 0x174   : > { %6990 = vmatprep.subr.bf16.mxu1 %v6989_v23  ;;  %v6977_v20 = vpack.c.bf16 %v618_v17, %v617_v16  ;;  %v8717_v16 = vld [vmem:[#allocation10 + $0x18] sm:$0xff] }
 0x179   : > { %6126 = vmatmul.mubr.f32.vlgmr.msra.gmra.mrb[32].mxu0 %v448_v26 }
 0x17a   : > { %6182 = vmatmul.mubr.f32.vlgmr.msra.gmra.mrb[32].mxu1 %v464_v29  ;;  %6128 = vmatprep.mubr.f32.mxu0 %v449_v30  ;;  %v622_v29 = vld [vmem:[%s8431_s15 + $0x378] sm:$0xff]  ;;  %v637_v30 = vld [vmem:[%s8431_s15 + $0x3f0] sm:$0xff] }
 0x17b   : > { %6184 = vmatprep.mubr.f32.mxu1 %v465_v31  ;;  %6960 = vmatpush3.bf16.xpose.msra.mxu0 %v6957_v22  ;;  %v619_v22 = vld [vmem:[%s8431_s15 + $0x360] sm:$0xff]  ;;  %v638_v31 = vld [vmem:[%s8431_s15 + $0x3f8] sm:$0xff] }
 0x17c   : > { %6992 = vmatpush3.bf16.xpose.msra.mxu1 %v6989_v23  ;;  %6962 = vmatprep.subr.bf16.mxu0 %v6961_v32  ;;  %v620_v23 = vld [vmem:[%s8431_s15 + $0x368] sm:$0xff] }
 0x17d   : > { %6129 = vmatmul.mubr.f32.gmra.mrb[34].mxu0 %v450_v34  ;;  %6994 = vmatprep.subr.bf16.mxu1 %v6993_v33  ;;  %v6981_v26 = vpack.c.bf16 %v620_v23, %v619_v22  ;;  %v480_v34 = vld [vmem:[%s8423_s25 + $0x308] sm:$0xff] }
 0x17e   : > { %6185 = vmatmul.mubr.f32.gmra.mrb[34].mxu1 %v466_v35  ;;  %6131 = vmatprep.mubr.f32.mxu0 %v451_v36  ;;  %v496_v35 = vld [vmem:[%s8423_s25 + $0x388] sm:$0xff]  ;;  %v481_v36 = vld [vmem:[%s8423_s25 + $0x310] sm:$0xff] }
 0x17f   : > { %6187 = vmatprep.mubr.f32.mxu1 %v467_v37  ;;  %v497_v37 = vld [vmem:[%s8423_s25 + $0x390] sm:$0xff] }
 0x181   : > { %6132 = vmatmul.mubr.f32.gmra.mrb[36].mxu0 %v452_v40  ;;  %v483_v40 = vld [vmem:[%s8423_s25 + $0x320] sm:$0xff] }
 0x182   : > { %6188 = vmatmul.mubr.f32.gmra.mrb[36].mxu1 %v468_v43  ;;  %6134 = vmatprep.mubr.f32.mxu0 %v453_v44  ;;  %v500_v43 = vld [vmem:[%s8423_s25 + $0x3a8] sm:$0xff]  ;;  %v485_v44 = vld [vmem:[%s8423_s25 + $0x330] sm:$0xff] }
 0x183   : > { %6190 = vmatprep.mubr.f32.mxu1 %v469_v45  ;;  %6964 = vmatpush3.bf16.xpose.msra.mxu0 %v6961_v32  ;;  %v6985_v32 = vpack.c.bf16 %v622_v29, %v621_v28  ;;  %v501_v45 = vld [vmem:[%s8423_s25 + $0x3b0] sm:$0xff] }
 0x184   : > { %6996 = vmatpush3.bf16.xpose.msra.mxu1 %v6993_v33  ;;  %6966 = vmatprep.subr.bf16.mxu0 %v6965_v46  ;;  %v7017_v33 = vpack.c.bf16 %v638_v31, %v637_v30  ;;  %v8735_v29 = vld [vmem:[#allocation10 + $0x10] sm:$0xff] }
 0x185   : > { %6135 = vmatmul.mubr.f32.gmra.mrb[38].mxu0 %v454_v48  ;;  %6998 = vmatprep.subr.bf16.mxu1 %v6997_v47  ;;  %v487_v48 = vld [vmem:[%s8423_s25 + $0x340] sm:$0xff] }
 0x186   : > { %6191 = vmatmul.mubr.f32.gmra.mrb[38].mxu1 %v470_v49  ;;  %6137 = vmatprep.mubr.f32.mxu0 %v455_v50  ;;  %v503_v49 = vld [vmem:[%s8423_s25 + $0x3c0] sm:$0xff]  ;;  %v488_v50 = vld [vmem:[%s8423_s25 + $0x348] sm:$0xff] }
 0x187   : > { %6193 = vmatprep.mubr.f32.mxu1 %v471_v51  ;;  %v504_v51 = vld [vmem:[%s8423_s25 + $0x3c8] sm:$0xff] }
 0x189   : > { %6138 = vmatmul.mubr.f32.gmra.mrb[40].mxu0 %v456_v54  ;;  %v490_v54 = vld [vmem:[%s8423_s25 + $0x358] sm:$0xff] }
 0x18a   : > { %6194 = vmatmul.mubr.f32.gmra.mrb[40].mxu1 %v472_v57  ;;  %6140 = vmatprep.mubr.f32.mxu0 %v457_v58  ;;  %v506_v57 = vld [vmem:[%s8423_s25 + $0x3d8] sm:$0xff]  ;;  %v491_v58 = vld [vmem:[%s8423_s25 + $0x360] sm:$0xff] }
 0x18b   : > { %6196 = vmatprep.mubr.f32.mxu1 %v473_v59  ;;  %6968 = vmatpush3.bf16.xpose.msra.mxu0 %v6965_v46  ;;  %v486_v46 = vld [vmem:[%s8423_s25 + $0x338] sm:$0xff] }
 0x18c   : > { %7000 = vmatpush3.bf16.xpose.msra.mxu1 %v6997_v47  ;;  %6970 = vmatprep.subr.bf16.mxu0 %v6969_v60  ;;  %v502_v47 = vld [vmem:[%s8423_s25 + $0x3b8] sm:$0xff] }
 0x18d   : > { %6141 = vmatmul.mubr.f32.gmra.mrb[42].mxu0 %v458_v62  ;;  %7002 = vmatprep.subr.bf16.mxu1 %v7001_v61  ;;  %v8702_v62 = vld [vmem:[#allocation10] sm:$0xff] }
 0x18e   : > { %6197 = vmatmul.mubr.f32.gmra.mrb[42].mxu1 %v474_v63  ;;  %6143 = vmatprep.mubr.f32.mxu0 %v459_v0  ;;  %v507_v63 = vld [vmem:[%s8423_s25 + $0x3e0] sm:$0xff] }
 0x18f   : > { %6199 = vmatprep.mubr.f32.mxu1 %v475_v1 }
 0x191   : > { %6144 = vmatmul.mubr.f32.gmra.mrb[44].mxu0 %v460_v4  ;;  %v492_v4 = vld [vmem:[%s8423_s25 + $0x368] sm:$0xff] }
 0x192   : > { %6200 = vmatmul.mubr.f32.gmra.mrb[44].mxu1 %v476_v7  ;;  %6146 = vmatprep.mubr.f32.mxu0 %v461_v8  ;;  %v508_v8 = vld [vmem:[%s8423_s25 + $0x3e8] sm:$0xff] }
 0x193   : > { %6202 = vmatprep.mubr.f32.mxu1 %v477_v9  ;;  %6972 = vmatpush3.bf16.xpose.msra.mxu0 %v6969_v60  ;;  %v493_v9 = vld [vmem:[%s8423_s25 + $0x370] sm:$0xff] }
 0x194   : > { %7004 = vmatpush3.bf16.xpose.msra.mxu1 %v7001_v61  ;;  %6974 = vmatprep.subr.bf16.mxu0 %v6973_v10 }
 0x195   : > { %6147 = vmatmul.mubr.f32.gmra.mrb[46].mxu0 %v462_v12  ;;  %7006 = vmatprep.subr.bf16.mxu1 %v7005_v11  ;;  %v509_v12 = vld [vmem:[%s8423_s25 + $0x3f0] sm:$0xff] }
 0x196   : > { %6203 = vmatmul.mubr.f32.gmra.mrb[46].mxu1 %v478_v13  ;;  %6237 = vmatprep.mubr.f32.mxu0 %v479_v14 }
 0x197   : > { %6293 = vmatprep.mubr.f32.mxu1 %v495_v15 }
 0x19b   : > { %6976 = vmatpush3.bf16.xpose.msra.mxu0 %v6973_v10 }
 0x19c   : > { %7008 = vmatpush3.bf16.xpose.msra.mxu1 %v7005_v11  ;;  %6978 = vmatprep.subr.bf16.mxu0 %v6977_v20 }
 0x19d   : > { %7010 = vmatprep.subr.bf16.mxu1 %v7009_v21 }
 0x1a3   : > { %6980 = vmatpush3.bf16.xpose.msra.mxu0 %v6977_v20 }
 0x1a4   : > { %7012 = vmatpush3.bf16.xpose.msra.mxu1 %v7009_v21  ;;  %6982 = vmatprep.subr.bf16.mxu0 %v6981_v26  ;;  %v510_v21 = vld [vmem:[%s8423_s25 + $0x3f8] sm:$0xff] }
 0x1a5   : > { %7014 = vmatprep.subr.bf16.mxu1 %v7013_v27 }
 0x1ab   : > { %6984 = vmatpush3.bf16.xpose.msra.mxu0 %v6981_v26 }
 0x1ac   : > { %7016 = vmatpush3.bf16.xpose.msra.mxu1 %v7013_v27  ;;  %6986 = vmatprep.subr.bf16.mxu0 %v6985_v32 }
 0x1ad   : > { %7018 = vmatprep.subr.bf16.mxu1 %v7017_v33 }
 0x1b3   : > { %6988 = vmatpush3.bf16.xpose.msra.mxu0 %v6985_v32 }
 0x1b4   : > { %7020 = vmatpush3.bf16.xpose.msra.mxu1 %v7017_v33 }
 0x1ba   : > { %6238 = vmatmul.mubr.f32.vlgmr.msra.gmra.mrb[48].mxu0 %v480_v34 }
 0x1bb   : > { %6294 = vmatmul.mubr.f32.vlgmr.msra.gmra.mrb[48].mxu1 %v496_v35  ;;  %6240 = vmatprep.mubr.f32.mxu0 %v481_v36  ;;  %v8739_v35 = vld [vmem:[#allocation10 + $0x28] sm:$0xff] }
 0x1bc   : > { %6296 = vmatprep.mubr.f32.mxu1 %v497_v37 }
 0x1be   : > { %6241 = vmatmul.mubr.f32.gmra.mrb[50].mxu0 %v482_v38 }
 0x1bf   : > { %6297 = vmatmul.mubr.f32.gmra.mrb[50].mxu1 %v498_v39  ;;  %6243 = vmatprep.mubr.f32.mxu0 %v483_v40 }
 0x1c0   : > { %6299 = vmatprep.mubr.f32.mxu1 %v499_v41 }
 0x1c2   : > { %6244 = vmatmul.mubr.f32.gmra.mrb[52].mxu0 %v484_v42 }
 0x1c3   : > { %6300 = vmatmul.mubr.f32.gmra.mrb[52].mxu1 %v500_v43  ;;  %6246 = vmatprep.mubr.f32.mxu0 %v485_v44 }
 0x1c4   : > { %6302 = vmatprep.mubr.f32.mxu1 %v501_v45 }
 0x1c6   : > { %6247 = vmatmul.mubr.f32.gmra.mrb[54].mxu0 %v486_v46 }
 0x1c7   : > { %6303 = vmatmul.mubr.f32.gmra.mrb[54].mxu1 %v502_v47  ;;  %6249 = vmatprep.mubr.f32.mxu0 %v487_v48  ;;  %v8755_v47 = vld [vmem:[#allocation10 + $0x20] sm:$0xff] }
 0x1c8   : > { %6305 = vmatprep.mubr.f32.mxu1 %v503_v49 }
 0x1ca   : > { %6250 = vmatmul.mubr.f32.gmra.mrb[56].mxu0 %v488_v50 }
 0x1cb   : > { %6306 = vmatmul.mubr.f32.gmra.mrb[56].mxu1 %v504_v51  ;;  %6252 = vmatprep.mubr.f32.mxu0 %v489_v52 }
 0x1cc   : > { %v5903_v55 = vpop.f32.mrb[0].mxu0  ;;  %6308 = vmatprep.mubr.f32.mxu1 %v505_v53  ;;  %v8759_v53 = vld [vmem:[#allocation10 + $0x38] sm:$0xff] }
 0x1cd   : > { %v1928_v59 = vmul.f32 0.088388346, %v5903_v55  ;;  %v833_v60 = vpop.f32.mrb[1].mxu0  ;;  %v5959_v61 = vpop.f32.mrb[0].mxu1 }
 0x1ce   : > { %v1927_v0 = vmul.f32 0.088388346, %v833_v60  ;;  %v978_v1 = vpop.f32.mrb[1].mxu1  ;;  %6253 = vmatmul.mubr.f32.gmra.mrb[58].mxu0 %v490_v54  ;;  %v1944_v2 = vmul.f32 0.088388346, %v5959_v61 }
 0x1cf   : > { %v8706_v3 = vadd.f32 %v8698_v56, %v1928_v59  ;;  %6309 = vmatmul.mubr.f32.gmra.mrb[58].mxu1 %v506_v57  ;;  %6255 = vmatprep.mubr.f32.mxu0 %v491_v58  ;;  %v1943_v5 = vmul.f32 0.088388346, %v978_v1 }
 0x1d0   : > { %v8710_v6 = vadd.f32 %v8702_v62, %v1927_v0  ;;  %v5906_v7 = vpop.f32.mrb[2].mxu0  ;;  %6311 = vmatprep.mubr.f32.mxu1 %v507_v63  ;;  %v8720_v17 = vadd.f32 %v8698_v56, %v1944_v2 }
 0x1d1   : > { %2201 = vmax.xlane.f32.xlu1 %v8706_v3  ;;  %v5962_v10 = vpop.f32.mrb[2].mxu1  ;;  %v843_v11 = vpop.f32.mrb[3].mxu0  ;;  %v1930_v13 = vmul.f32 0.088388346, %v5906_v7  ;;  %v8724_v19 = vadd.f32 %v8702_v62, %v1943_v5 }
 0x1d2   : > { %2199 = vmax.xlane.f32.xlu0 %v8710_v6  ;;  %v1946_v14 = vmul.f32 0.088388346, %v5962_v10  ;;  %v988_v15 = vpop.f32.mrb[3].mxu1  ;;  %6256 = vmatmul.mubr.f32.gmra.mrb[60].mxu0 %v492_v4  ;;  %v1929_v28 = vmul.f32 0.088388346, %v843_v11  ;;  %v8775_v4 = vld [vmem:[#allocation10 + $0x30] sm:$0xff] }
 0x1d3   : > { %6312 = vmatmul.mubr.f32.gmra.mrb[60].mxu1 %v508_v8  ;;  %6258 = vmatprep.mubr.f32.mxu0 %v493_v9  ;;  %v8733_v25 = vadd.f32 %v8717_v16, %v1930_v13  ;;  %v1945_v27 = vmul.f32 0.088388346, %v988_v15  ;;  %v8779_v11 = vld [vmem:[#allocation10 + $0x48] sm:$0xff] }
 0x1d4   : > { %v5909_v20 = vpop.f32.mrb[4].mxu0  ;;  %6314 = vmatprep.mubr.f32.mxu1 %v509_v12  ;;  %v8729_v22 = vadd.f32 %v8717_v16, %v1946_v14  ;;  %v8745_v38 = vadd.f32 %v8735_v29, %v1929_v28 }
 0x1d5   : > { %2233 = vmax.xlane.f32.xlu1 %v8720_v17  ;;  %v5965_v23 = vpop.f32.mrb[4].mxu1  ;;  %v853_v24 = vpop.f32.mrb[5].mxu0  ;;  %v1932_v34 = vmul.f32 0.088388346, %v5909_v20  ;;  %v8742_v37 = vadd.f32 %v8735_v29, %v1945_v27  ;;  %v8799_v27 = vld [vmem:[#allocation10 + $0x58] sm:$0xff] }
 0x1d6   : > { %2231 = vmax.xlane.f32.xlu0 %v8724_v19  ;;  %v998_v26 = vpop.f32.mrb[5].mxu1  ;;  %6259 = vmatmul.mubr.f32.gmra.mrb[62].mxu0 %v494_v18  ;;  %v1948_v31 = vmul.f32 0.088388346, %v5965_v23  ;;  %v1931_v46 = vmul.f32 0.088388346, %v853_v24  ;;  %v8795_v23 = vld [vmem:[#allocation10 + $0x40] sm:$0xff] }
 0x1d7   : > { %6315 = vmatmul.mubr.f32.gmra.mrb[62].mxu1 %v510_v21  ;;  %v8753_v43 = vadd.f32 %v8739_v35, %v1932_v34  ;;  %v1947_v45 = vmul.f32 0.088388346, %v998_v26 }
 0x1d8   : > { %v5912_v30 = vpop.f32.mrb[6].mxu0  ;;  %v8749_v40 = vadd.f32 %v8739_v35, %v1948_v31  ;;  %v8765_v57 = vadd.f32 %v8755_v47, %v1931_v46 }
 0x1d9   : > { %2237 = vmax.xlane.f32.xlu1 %v8729_v22  ;;  %v5968_v32 = vpop.f32.mrb[6].mxu1  ;;  %v863_v33 = vpop.f32.mrb[7].mxu0  ;;  %v1934_v52 = vmul.f32 0.088388346, %v5912_v30  ;;  %v8762_v55 = vadd.f32 %v8755_v47, %v1947_v45 }
 0x1da   : > { %2205 = vmax.xlane.f32.xlu0 %v8733_v25  ;;  %v1008_v36 = vpop.f32.mrb[7].mxu1  ;;  %v1950_v49 = vmul.f32 0.088388346, %v5968_v32  ;;  %v1933_v2 = vmul.f32 0.088388346, %v863_v33 }
 0x1db   : > { %v8773_v63 = vadd.f32 %v8759_v53, %v1934_v52  ;;  %v1949_v1 = vmul.f32 0.088388346, %v1008_v36  ;;  %v8815_v36 = vld [vmem:[#allocation10 + $0x50] sm:$0xff] }
 0x1dc   : > { %v5915_v39 = vpop.f32.mrb[8].mxu0  ;;  %v8769_v59 = vadd.f32 %v8759_v53, %v1950_v49  ;;  %v8785_v14 = vadd.f32 %v8775_v4, %v1933_v2 }
 0x1dd   : > { %2235 = vmax.xlane.f32.xlu1 %v8742_v37  ;;  %v5971_v41 = vpop.f32.mrb[8].mxu1  ;;  %v873_v42 = vpop.f32.mrb[9].mxu0  ;;  %v1936_v10 = vmul.f32 0.088388346, %v5915_v39  ;;  %v8782_v13 = vadd.f32 %v8775_v4, %v1949_v1 }
 0x1de   : > { %2203 = vmax.xlane.f32.xlu0 %v8745_v38  ;;  %v1018_v44 = vpop.f32.mrb[9].mxu1  ;;  %v1952_v7 = vmul.f32 0.088388346, %v5971_v41  ;;  %v1935_v21 = vmul.f32 0.088388346, %v873_v42  ;;  %v8819_v42 = vld [vmem:[#allocation10 + $0x68] sm:$0xff] }
 0x1df   : > { %v8793_v18 = vadd.f32 %v8779_v11, %v1936_v10  ;;  %v1951_v20 = vmul.f32 0.088388346, %v1018_v44 }
 0x1e0   : > { %v5918_v48 = vpop.f32.mrb[10].mxu0  ;;  %v8789_v15 = vadd.f32 %v8779_v11, %v1952_v7  ;;  %v8805_v30 = vadd.f32 %v8795_v23, %v1935_v21  ;;  %v8855_v7 = vld [vmem:[#allocation10 + $0x70] sm:$0xff] }
 0x1e1   : > { %2241 = vmax.xlane.f32.xlu1 %v8749_v40  ;;  %v5974_v50 = vpop.f32.mrb[10].mxu1  ;;  %v883_v51 = vpop.f32.mrb[11].mxu0  ;;  %v1938_v26 = vmul.f32 0.088388346, %v5918_v48  ;;  %v8802_v28 = vadd.f32 %v8795_v23, %v1951_v20 }
 0x1e2   : > { %2209 = vmax.xlane.f32.xlu0 %v8753_v43  ;;  %v1028_v54 = vpop.f32.mrb[11].mxu1  ;;  %v1954_v24 = vmul.f32 0.088388346, %v5974_v50  ;;  %v1937_v34 = vmul.f32 0.088388346, %v883_v51  ;;  %v8835_v51 = vld [vmem:[#allocation10 + $0x60] sm:$0xff] }
 0x1e3   : > { %v8813_v32 = vadd.f32 %v8799_v27, %v1938_v26  ;;  %v1953_v33 = vmul.f32 0.088388346, %v1028_v54 }
 0x1e4   : > { %v5921_v58 = vpop.f32.mrb[12].mxu0  ;;  %v8809_v31 = vadd.f32 %v8799_v27, %v1954_v24  ;;  %v8825_v45 = vadd.f32 %v8815_v36, %v1937_v34 }
 0x1e5   : > { %2239 = vmax.xlane.f32.xlu1 %v8762_v55  ;;  %v5977_v60 = vpop.f32.mrb[12].mxu1  ;;  %v893_v61 = vpop.f32.mrb[13].mxu0  ;;  %11125 = vst [vmem:[#allocation19_spill] sm:$0xff] %v8813_v32  ;;  %v1940_v41 = vmul.f32 0.088388346, %v5921_v58  ;;  %v8822_v44 = vadd.f32 %v8815_v36, %v1953_v33  ;;  %v8839_v58 = vld [vmem:[#allocation10 + $0x78] sm:$0xff] }
 0x1e6   : > { %2207 = vmax.xlane.f32.xlu0 %v8765_v57  ;;  %v1038_v0 = vpop.f32.mrb[13].mxu1  ;;  %v1956_v39 = vmul.f32 0.088388346, %v5977_v60  ;;  %11127 = vst [vmem:[#allocation21_spill] sm:$0xff] %v8825_v45  ;;  %v1939_v50 = vmul.f32 0.088388346, %v893_v61 }
 0x1e7   : > { %11126 = vst [vmem:[#allocation20_spill] sm:$0xff] %v8822_v44  ;;  %v8833_v48 = vadd.f32 %v8819_v42, %v1940_v41  ;;  %v1955_v49 = vmul.f32 0.088388346, %v1038_v0 }
 0x1e8   : > { %v5924_v5 = vpop.f32.mrb[14].mxu0  ;;  %v8829_v46 = vadd.f32 %v8819_v42, %v1956_v39  ;;  %v8845_v1 = vadd.f32 %v8835_v51, %v1939_v50 }
 0x1e9   : > { %2245 = vmax.xlane.f32.xlu1 %v8769_v59  ;;  %v5980_v8 = vpop.f32.mrb[14].mxu1  ;;  %v903_v9 = vpop.f32.mrb[15].mxu0  ;;  %11129 = vst [vmem:[#allocation23_spill] sm:$0xff] %v8833_v48  ;;  %v1942_v54 = vmul.f32 0.088388346, %v5924_v5  ;;  %v8842_v60 = vadd.f32 %v8835_v51, %v1955_v49 }
 0x1ea   : > { %2213 = vmax.xlane.f32.xlu0 %v8773_v63  ;;  %v1048_v12 = vpop.f32.mrb[15].mxu1  ;;  %11128 = vst [vmem:[#allocation22_spill] sm:$0xff] %v8829_v46  ;;  %v1958_v52 = vmul.f32 0.088388346, %v5980_v8  ;;  %11131 = vst [vmem:[#allocation25_spill] sm:$0xff] %v8845_v1 }
 0x1eb   : > { %11130 = vst [vmem:[#allocation24_spill] sm:$0xff] %v8842_v60  ;;  %v8853_v0 = vadd.f32 %v8839_v58, %v1942_v54  ;;  %v1957_v2 = vmul.f32 0.088388346, %v1048_v12  ;;  %v1941_v5 = vmul.f32 0.088388346, %v903_v9 }
 0x1ec   : > { %v8849_v61 = vadd.f32 %v8839_v58, %v1958_v52 }
 0x1ed   : > { %2243 = vmax.xlane.f32.xlu1 %v8782_v13  ;;  %11133 = vst [vmem:[#allocation27_spill] sm:$0xff] %v8853_v0  ;;  %v8860_v8 = vadd.f32 %v8855_v7, %v1957_v2  ;;  %v8863_v20 = vadd.f32 %v8855_v7, %v1941_v5 }
 0x1ee   : > { %2211 = vmax.xlane.f32.xlu0 %v8785_v14  ;;  %11132 = vst [vmem:[#allocation26_spill] sm:$0xff] %v8849_v61 }
 0x1ef   : > { %11134 = vst [vmem:[#allocation28_spill] sm:$0xff] %v8860_v8  ;;  %11135 = vst [vmem:[#allocation29_spill] sm:$0xff] %v8863_v20 }
 0x1f1   : > { %2249 = vmax.xlane.f32.xlu1 %v8789_v15 }
 0x1f2   : > { %2217 = vmax.xlane.f32.xlu0 %v8793_v18 }
 0x1f5   : > { %2247 = vmax.xlane.f32.xlu1 %v8802_v28 }
 0x1f6   : > { %2215 = vmax.xlane.f32.xlu0 %v8805_v30 }
 0x1f9   : > { %2253 = vmax.xlane.f32.xlu1 %v8809_v31 }
 0x1fa   : > { %2221 = vmax.xlane.f32.xlu0 %v8813_v32 }
 0x1fd   : > { %2251 = vmax.xlane.f32.xlu1 %v8822_v44 }
 0x1fe   : > { %2219 = vmax.xlane.f32.xlu0 %v8825_v45 }
 0x201   : > { %2257 = vmax.xlane.f32.xlu1 %v8829_v46 }
 0x202   : > { %2225 = vmax.xlane.f32.xlu0 %v8833_v48 }
 0x205   : > { %2255 = vmax.xlane.f32.xlu1 %v8842_v60 }
 0x206   : > { %2223 = vmax.xlane.f32.xlu0 %v8845_v1 }
 0x209   : > { %2261 = vmax.xlane.f32.xlu1 %v8849_v61 }
 0x20a   : > { %2229 = vmax.xlane.f32.xlu0 %v8853_v0 }
 0x20c   : > { %v6015_v10 = vpop.f32.mrb[16].mxu0 }
 0x20d   : > { %v1960_v21 = vmul.f32 0.088388346, %v6015_v10  ;;  %v6071_v24 = vpop.f32.mrb[16].mxu1  ;;  %2259 = vmax.xlane.f32.xlu1 %v8860_v8  ;;  %v1123_v26 = vpop.f32.mrb[17].mxu0 }
 0x20e   : > { %v1976_v12 = vmul.f32 0.088388346, %v6071_v24  ;;  %v1268_v9 = vpop.f32.mrb[17].mxu1  ;;  %2227 = vmax.xlane.f32.xlu0 %v8863_v20  ;;  %v1959_v39 = vmul.f32 0.088388346, %v1123_v26 }
 0x20f   : > { %v8868_v33 = vadd.f32 %v8698_v56, %v1960_v21  ;;  %v1975_v34 = vmul.f32 0.088388346, %v1268_v9 }
 0x210   : > { %v8871_v41 = vadd.f32 %v8698_v56, %v1976_v12  ;;  %v6018_v49 = vpop.f32.mrb[18].mxu0  ;;  %v8879_v21 = vadd.f32 %v8702_v62, %v1959_v39 }
 0x211   : > { %11136 = vst [vmem:[#allocation30_spill] sm:$0xff] %v8868_v33  ;;  %v6074_v50 = vpop.f32.mrb[18].mxu1  ;;  %v1133_v52 = vpop.f32.mrb[19].mxu0  ;;  %v1962_v54 = vmul.f32 0.088388346, %v6018_v49  ;;  %v8876_v10 = vadd.f32 %v8702_v62, %v1975_v34 }
 0x212   : > { %11137 = vst [vmem:[#allocation31_spill] sm:$0xff] %v8871_v41  ;;  %2297 = vmax.xlane.f32.xlu1 %v8871_v41  ;;  %2265 = vmax.xlane.f32.xlu0 %v8868_v33  ;;  %v1978_v2 = vmul.f32 0.088388346, %v6074_v50  ;;  %v1278_v5 = vpop.f32.mrb[19].mxu1  ;;  %11139 = vst [vmem:[#allocation33_spill] sm:$0xff] %v8879_v21 }
 0x213   : > { %11138 = vst [vmem:[#allocation32_spill] sm:$0xff] %v8876_v10  ;;  %v8887_v49 = vadd.f32 %v8717_v16, %v1962_v54  ;;  %v1977_v33 = vmul.f32 0.088388346, %v1278_v5  ;;  %v1961_v34 = vmul.f32 0.088388346, %v1133_v52 }
 0x214   : > { %v6021_v24 = vpop.f32.mrb[20].mxu0  ;;  %v8884_v9 = vadd.f32 %v8717_v16, %v1978_v2 }
 0x215   : > { %v6077_v26 = vpop.f32.mrb[20].mxu1  ;;  %v1143_v12 = vpop.f32.mrb[21].mxu0  ;;  %11141 = vst [vmem:[#allocation35_spill] sm:$0xff] %v8887_v49  ;;  %v1964_v8 = vmul.f32 0.088388346, %v6021_v24  ;;  %v8895_v2 = vadd.f32 %v8735_v29, %v1961_v34 }
 0x216   : > { %2295 = vmax.xlane.f32.xlu1 %v8876_v10  ;;  %2263 = vmax.xlane.f32.xlu0 %v8879_v21  ;;  %11140 = vst [vmem:[#allocation34_spill] sm:$0xff] %v8884_v9  ;;  %v1288_v50 = vpop.f32.mrb[21].mxu1  ;;  %v1980_v10 = vmul.f32 0.088388346, %v6077_v26  ;;  %v8892_v21 = vadd.f32 %v8735_v29, %v1977_v33  ;;  %v1963_v33 = vmul.f32 0.088388346, %v1143_v12 }
 0x217   : > { %11143 = vst [vmem:[#allocation37_spill] sm:$0xff] %v8895_v2  ;;  %v8903_v24 = vadd.f32 %v8739_v35, %v1964_v8 }
 0x218   : > { %v6024_v41 = vpop.f32.mrb[22].mxu0  ;;  %11142 = vst [vmem:[#allocation36_spill] sm:$0xff] %v8892_v21  ;;  %v8900_v52 = vadd.f32 %v8739_v35, %v1980_v10  ;;  %v8911_v10 = vadd.f32 %v8755_v47, %v1963_v33 }
 0x219   : > { %v6080_v20 = vpop.f32.mrb[22].mxu1  ;;  %v1153_v39 = vpop.f32.mrb[23].mxu0  ;;  %11145 = vst [vmem:[#allocation39_spill] sm:$0xff] %v8903_v24  ;;  %v1966_v60 = vmul.f32 0.088388346, %v6024_v41 }
 0x21a   : > { %2301 = vmax.xlane.f32.xlu1 %v8884_v9  ;;  %2269 = vmax.xlane.f32.xlu0 %v8887_v49  ;;  %v1298_v0 = vpop.f32.mrb[23].mxu1  ;;  %11144 = vst [vmem:[#allocation38_spill] sm:$0xff] %v8900_v52  ;;  %v1979_v49 = vmul.f32 0.088388346, %v1288_v50  ;;  %11147 = vst [vmem:[#allocation41_spill] sm:$0xff] %v8911_v10 }
 0x21b   : > { %v8919_v41 = vadd.f32 %v8759_v53, %v1966_v60 }
 0x21c   : > { %v6027_v54 = vpop.f32.mrb[24].mxu0 }
 0x21d   : > { %v6083_v61 = vpop.f32.mrb[24].mxu1  ;;  %v1163_v5 = vpop.f32.mrb[25].mxu0  ;;  %11149 = vst [vmem:[#allocation43_spill] sm:$0xff] %v8919_v41  ;;  %v1968_v44 = vmul.f32 0.088388346, %v6027_v54 }
 0x21e   : > { %2299 = vmax.xlane.f32.xlu1 %v8892_v21  ;;  %2267 = vmax.xlane.f32.xlu0 %v8895_v2  ;;  %v1308_v26 = vpop.f32.mrb[25].mxu1  ;;  %v1982_v21 = vmul.f32 0.088388346, %v6080_v20  ;;  %v8908_v2 = vadd.f32 %v8755_v47, %v1979_v49  ;;  %v1965_v49 = vmul.f32 0.088388346, %v1153_v39 }
 0x21f   : > { %v1983_v39 = vmul.f32 0.088388346, %v1308_v26  ;;  %v1967_v54 = vmul.f32 0.088388346, %v1163_v5 }
 0x220   : > { %v6030_v9 = vpop.f32.mrb[26].mxu0  ;;  %11146 = vst [vmem:[#allocation40_spill] sm:$0xff] %v8908_v2  ;;  %v8916_v12 = vadd.f32 %v8759_v53, %v1982_v21  ;;  %v8927_v21 = vadd.f32 %v8775_v4, %v1965_v49 }
 0x221   : > { %v6086_v1 = vpop.f32.mrb[26].mxu1  ;;  %v1173_v34 = vpop.f32.mrb[27].mxu0  ;;  %v8940_v49 = vadd.f32 %v8795_v23, %v1983_v39 }
 0x222   : > { %2305 = vmax.xlane.f32.xlu1 %v8900_v52  ;;  %2273 = vmax.xlane.f32.xlu0 %v8903_v24  ;;  %v1318_v48 = vpop.f32.mrb[27].mxu1  ;;  %11148 = vst [vmem:[#allocation42_spill] sm:$0xff] %v8916_v12  ;;  %v1981_v24 = vmul.f32 0.088388346, %v1298_v0  ;;  %11151 = vst [vmem:[#allocation45_spill] sm:$0xff] %v8927_v21  ;;  %v8935_v0 = vadd.f32 %v8779_v11, %v1968_v44 }
 0x223   : > { %11154 = vst [vmem:[#allocation48_spill] sm:$0xff] %v8940_v49  ;;  %v1985_v5 = vmul.f32 0.088388346, %v1318_v48  ;;  %v1969_v26 = vmul.f32 0.088388346, %v1173_v34 }
 0x224   : > { %v6033_v8 = vpop.f32.mrb[28].mxu0  ;;  %11153 = vst [vmem:[#allocation47_spill] sm:$0xff] %v8935_v0 }
 0x225   : > { %v6089_v46 = vpop.f32.mrb[28].mxu1  ;;  %v1183_v50 = vpop.f32.mrb[29].mxu0  ;;  %v8956_v39 = vadd.f32 %v8815_v36, %v1985_v5 }
 0x226   : > { %2303 = vmax.xlane.f32.xlu1 %v8908_v2  ;;  %2271 = vmax.xlane.f32.xlu0 %v8911_v10  ;;  %v1328_v20 = vpop.f32.mrb[29].mxu1  ;;  %v1984_v2 = vmul.f32 0.088388346, %v6083_v61  ;;  %v8924_v10 = vadd.f32 %v8775_v4, %v1981_v24  ;;  %v1970_v61 = vmul.f32 0.088388346, %v6030_v9 }
 0x227   : > { %v1986_v24 = vmul.f32 0.088388346, %v6086_v1  ;;  %v1972_v1 = vmul.f32 0.088388346, %v6033_v8  ;;  %v1988_v9 = vmul.f32 0.088388346, %v6089_v46 }
 0x228   : > { %v6036_v52 = vpop.f32.mrb[30].mxu0  ;;  %11150 = vst [vmem:[#allocation44_spill] sm:$0xff] %v8924_v10  ;;  %v8932_v60 = vadd.f32 %v8779_v11, %v1984_v2  ;;  %v8951_v2 = vadd.f32 %v8799_v27, %v1970_v61  ;;  %11158 = vst [vmem:[#allocation52_spill] sm:$0xff] %v8956_v39  ;;  %v1987_v34 = vmul.f32 0.088388346, %v1328_v20 }
 0x229   : > { %v6092_v45 = vpop.f32.mrb[30].mxu1  ;;  %v1193_v33 = vpop.f32.mrb[31].mxu0  ;;  %v8948_v44 = vadd.f32 %v8799_v27, %v1986_v24  ;;  %v8964_v61 = vadd.f32 %v8819_v42, %v1988_v9  ;;  %v8967_v48 = vadd.f32 %v8819_v42, %v1972_v1  ;;  %v1971_v24 = vmul.f32 0.088388346, %v1183_v50 }
 0x22a   : > { %2309 = vmax.xlane.f32.xlu1 %v8916_v12  ;;  %2277 = vmax.xlane.f32.xlu0 %v8919_v41  ;;  %v1338_v32 = vpop.f32.mrb[31].mxu1  ;;  %11152 = vst [vmem:[#allocation46_spill] sm:$0xff] %v8932_v60  ;;  %11157 = vst [vmem:[#allocation51_spill] sm:$0xff] %v8951_v2  ;;  %v1974_v46 = vmul.f32 0.088388346, %v6036_v52  ;;  %v8972_v5 = vadd.f32 %v8835_v51, %v1987_v34 }
 0x22b   : > { %11156 = vst [vmem:[#allocation50_spill] sm:$0xff] %v8948_v44  ;;  %11160 = vst [vmem:[#allocation54_spill] sm:$0xff] %v8964_v61  ;;  %v1990_v8 = vmul.f32 0.088388346, %v6092_v45  ;;  %v1989_v20 = vmul.f32 0.088388346, %v1338_v32 }
 0x22c   : > { %11161 = vst [vmem:[#allocation55_spill] sm:$0xff] %v8967_v48  ;;  %11162 = vst [vmem:[#allocation56_spill] sm:$0xff] %v8972_v5  ;;  %v8983_v50 = vadd.f32 %v8839_v58, %v1974_v46  ;;  %v1973_v9 = vmul.f32 0.088388346, %v1193_v33 }
 0x22d   : > { %v8980_v1 = vadd.f32 %v8839_v58, %v1990_v8  ;;  %v8988_v52 = vadd.f32 %v8855_v7, %v1989_v20 }
 0x22e   : > { %2307 = vmax.xlane.f32.xlu1 %v8924_v10  ;;  %2275 = vmax.xlane.f32.xlu0 %v8927_v21  ;;  %v8943_v10 = vadd.f32 %v8795_v23, %v1967_v54  ;;  %v8959_v54 = vadd.f32 %v8815_v36, %v1969_v26  ;;  %v8975_v26 = vadd.f32 %v8835_v51, %v1971_v24 }
 0x22f   : > { %11164 = vst [vmem:[#allocation58_spill] sm:$0xff] %v8980_v1  ;;  %11165 = vst [vmem:[#allocation59_spill] sm:$0xff] %v8983_v50  ;;  %v8991_v34 = vadd.f32 %v8855_v7, %v1973_v9 }
 0x230   : > { %11155 = vst [vmem:[#allocation49_spill] sm:$0xff] %v8943_v10  ;;  %11159 = vst [vmem:[#allocation53_spill] sm:$0xff] %v8959_v54 }
 0x231   : > { %11163 = vst [vmem:[#allocation57_spill] sm:$0xff] %v8975_v26  ;;  %11166 = vst [vmem:[#allocation60_spill] sm:$0xff] %v8988_v52 }
 0x232   : > { %2313 = vmax.xlane.f32.xlu1 %v8932_v60  ;;  %2281 = vmax.xlane.f32.xlu0 %v8935_v0  ;;  %11167 = vst [vmem:[#allocation61_spill] sm:$0xff] %v8991_v34 }
 0x236   : > { %2311 = vmax.xlane.f32.xlu1 %v8940_v49  ;;  %2279 = vmax.xlane.f32.xlu0 %v8943_v10 }
 0x23a   : > { %2317 = vmax.xlane.f32.xlu1 %v8948_v44  ;;  %2285 = vmax.xlane.f32.xlu0 %v8951_v2 }
 0x23e   : > { %2315 = vmax.xlane.f32.xlu1 %v8956_v39  ;;  %2283 = vmax.xlane.f32.xlu0 %v8959_v54 }
 0x242   : > { %2321 = vmax.xlane.f32.xlu1 %v8964_v61  ;;  %2289 = vmax.xlane.f32.xlu0 %v8967_v48 }
 0x246   : > { %2319 = vmax.xlane.f32.xlu1 %v8972_v5  ;;  %2287 = vmax.xlane.f32.xlu0 %v8975_v26 }
 0x24a   : > { %2325 = vmax.xlane.f32.xlu1 %v8980_v1  ;;  %2293 = vmax.xlane.f32.xlu0 %v8983_v50 }
 0x24c   : > { %v6127_v45 = vpop.f32.mrb[32].mxu0 }
 0x24d   : > { %v1992_v24 = vmul.f32 0.088388346, %v6127_v45  ;;  %v6183_v26 = vpop.f32.mrb[32].mxu1  ;;  %v1413_v8 = vpop.f32.mrb[33].mxu0 }
 0x24e   : > { %v2008_v5 = vmul.f32 0.088388346, %v6183_v26  ;;  %v1558_v48 = vpop.f32.mrb[33].mxu1  ;;  %2323 = vmax.xlane.f32.xlu1 %v8988_v52  ;;  %2291 = vmax.xlane.f32.xlu0 %v8991_v34  ;;  %v1991_v46 = vmul.f32 0.088388346, %v1413_v8 }
 0x24f   : > { %v8996_v32 = vadd.f32 %v8698_v56, %v1992_v24  ;;  %v2007_v33 = vmul.f32 0.088388346, %v1558_v48 }
 0x250   : > { %v8999_v20 = vadd.f32 %v8698_v56, %v2008_v5  ;;  %v6130_v50 = vpop.f32.mrb[34].mxu0  ;;  %v9007_v24 = vadd.f32 %v8702_v62, %v1991_v46 }
 0x251   : > { %11168 = vst [vmem:[#allocation62_spill] sm:$0xff] %v8996_v32  ;;  %v6186_v9 = vpop.f32.mrb[34].mxu1  ;;  %v1423_v1 = vpop.f32.mrb[35].mxu0  ;;  %v1994_v26 = vmul.f32 0.088388346, %v6130_v50  ;;  %v9004_v34 = vadd.f32 %v8702_v62, %v2007_v33 }
 0x252   : > { %11169 = vst [vmem:[#allocation63_spill] sm:$0xff] %v8999_v20  ;;  %2361 = vmax.xlane.f32.xlu1 %v8999_v20  ;;  %2329 = vmax.xlane.f32.xlu0 %v8996_v32  ;;  %v2010_v45 = vmul.f32 0.088388346, %v6186_v9  ;;  %v1568_v52 = vpop.f32.mrb[35].mxu1  ;;  %11171 = vst [vmem:[#allocation65_spill] sm:$0xff] %v9007_v24 }
 0x253   : > { %11170 = vst [vmem:[#allocation64_spill] sm:$0xff] %v9004_v34  ;;  %v9015_v50 = vadd.f32 %v8717_v16, %v1994_v26  ;;  %v2009_v32 = vmul.f32 0.088388346, %v1568_v52  ;;  %v1993_v33 = vmul.f32 0.088388346, %v1423_v1 }
 0x254   : > { %v6133_v48 = vpop.f32.mrb[36].mxu0  ;;  %v9012_v5 = vadd.f32 %v8717_v16, %v2010_v45 }
 0x255   : > { %v6189_v8 = vpop.f32.mrb[36].mxu1  ;;  %v1433_v56 = vpop.f32.mrb[37].mxu0  ;;  %11173 = vst [vmem:[#allocation67_spill] sm:$0xff] %v9015_v50  ;;  %v1996_v46 = vmul.f32 0.088388346, %v6133_v48  ;;  %v9023_v45 = vadd.f32 %v8735_v29, %v1993_v33 }
 0x256   : > { %2359 = vmax.xlane.f32.xlu1 %v9004_v34  ;;  %2327 = vmax.xlane.f32.xlu0 %v9007_v24  ;;  %11172 = vst [vmem:[#allocation66_spill] sm:$0xff] %v9012_v5  ;;  %v1578_v9 = vpop.f32.mrb[37].mxu1  ;;  %v2012_v34 = vmul.f32 0.088388346, %v6189_v8  ;;  %v9020_v24 = vadd.f32 %v8735_v29, %v2009_v32  ;;  %v1995_v33 = vmul.f32 0.088388346, %v1433_v56 }
 0x257   : > { %11175 = vst [vmem:[#allocation69_spill] sm:$0xff] %v9023_v45  ;;  %v9033_v48 = vadd.f32 %v8739_v35, %v1996_v46  ;;  %v2011_v29 = vmul.f32 0.088388346, %v1578_v9 }
 0x258   : > { %v6136_v20 = vpop.f32.mrb[38].mxu0  ;;  %11174 = vst [vmem:[#allocation68_spill] sm:$0xff] %v9020_v24  ;;  %v9047_v9 = vadd.f32 %v8755_v47, %v1995_v33 }
 0x259   : > { %v6192_v61 = vpop.f32.mrb[38].mxu1  ;;  %v1443_v62 = vpop.f32.mrb[39].mxu0  ;;  %11177 = vst [vmem:[#allocation71_spill] sm:$0xff] %v9033_v48 }
 0x25a   : > { %2365 = vmax.xlane.f32.xlu1 %v9012_v5  ;;  %2333 = vmax.xlane.f32.xlu0 %v9015_v50  ;;  %v1588_v54 = vpop.f32.mrb[39].mxu1  ;;  %v9030_v50 = vadd.f32 %v8739_v35, %v2012_v34  ;;  %v2014_v34 = vmul.f32 0.088388346, %v6192_v61  ;;  %v9044_v35 = vadd.f32 %v8755_v47, %v2011_v29  ;;  %11179 = vst [vmem:[#allocation73_spill] sm:$0xff] %v9047_v9  ;;  %v1997_v33 = vmul.f32 0.088388346, %v1443_v62 }
 0x25b   : > { %v2013_v47 = vmul.f32 0.088388346, %v1588_v54 }
 0x25c   : > { %v6139_v16 = vpop.f32.mrb[40].mxu0  ;;  %11176 = vst [vmem:[#allocation70_spill] sm:$0xff] %v9030_v50  ;;  %11178 = vst [vmem:[#allocation72_spill] sm:$0xff] %v9044_v35  ;;  %v9056_v61 = vadd.f32 %v8759_v53, %v2014_v34  ;;  %v9077_v54 = vadd.f32 %v8775_v4, %v1997_v33 }
 0x25d   : > { %v6195_v26 = vpop.f32.mrb[40].mxu1  ;;  %v1453_v52 = vpop.f32.mrb[41].mxu0  ;;  %v2000_v34 = vmul.f32 0.088388346, %v6139_v16 }
 0x25e   : > { %2363 = vmax.xlane.f32.xlu1 %v9020_v24  ;;  %v9026_v1 = vpop.xlane.xlu1 %2201  ;;  %2331 = vmax.xlane.f32.xlu0 %v9023_v45  ;;  %v1598_v32 = vpop.f32.mrb[41].mxu1  ;;  %v1998_v45 = vmul.f32 0.088388346, %v6136_v20  ;;  %11180 = vst [vmem:[#allocation74_spill] sm:$0xff] %v9056_v61  ;;  %11183 = vst [vmem:[#allocation77_spill] sm:$0xff] %v9077_v54 }
 0x25f   : > { %v9035_v8 = vpop.xlane.xlu0 %2199  ;;  %v9087_v16 = vadd.f32 %v8779_v11, %v2000_v34 }
 0x260   : > { %v6142_v5 = vpop.f32.mrb[42].mxu0  ;;  %v9059_v20 = vadd.f32 %v8759_v53, %v1998_v45  ;;  %v9074_v45 = vadd.f32 %v8775_v4, %v2013_v47  ;;  %v1999_v47 = vmul.f32 0.088388346, %v1453_v52 }
 0x261   : > { %v6198_v39 = vpop.f32.mrb[42].mxu1  ;;  %v1463_v2 = vpop.f32.mrb[43].mxu0  ;;  %11185 = vst [vmem:[#allocation79_spill] sm:$0xff] %v9087_v16  ;;  %v2002_v33 = vmul.f32 0.088388346, %v6142_v5 }
 0x262   : > { %2369 = vmax.xlane.f32.xlu1 %v9030_v50  ;;  %v9038_v24 = vpop.xlane.xlu1 %2233  ;;  %2337 = vmax.xlane.f32.xlu0 %v9033_v48  ;;  %v1608_v44 = vpop.f32.mrb[43].mxu1  ;;  %11181 = vst [vmem:[#allocation75_spill] sm:$0xff] %v9059_v20  ;;  %11182 = vst [vmem:[#allocation76_spill] sm:$0xff] %v9074_v45 }
 0x263   : > { %v9041_v10 = vpop.xlane.xlu0 %2231  ;;  %v9111_v5 = vadd.f32 %v8799_v27, %v2002_v33  ;;  %v2017_v34 = vmul.f32 0.088388346, %v1608_v44 }
 0x264   : > { %v6145_v56 = vpop.f32.mrb[44].mxu0 }
 0x265   : > { %v6201_v46 = vpop.f32.mrb[44].mxu1  ;;  %v9049_v49 = vpop.f32.mrb[45].mxu0  ;;  %11189 = vst [vmem:[#allocation83_spill] sm:$0xff] %v9111_v5  ;;  %v9126_v33 = vadd.f32 %v8815_v36, %v2017_v34  ;;  %v2455_v34 = vsub.f32 %v8710_v6, %v9035_v8 }
 0x266   : > { %2367 = vmax.xlane.f32.xlu1 %v9044_v35  ;;  %v9052_v50 = vpop.xlane.xlu1 %2237  ;;  %2335 = vmax.xlane.f32.xlu0 %v9047_v9  ;;  %v1618_v29 = vpop.f32.mrb[45].mxu1  ;;  %v2016_v9 = vmul.f32 0.088388346, %v6195_v26 }
 0x267   : > { %v9061_v48 = vpop.xlane.xlu0 %2205  ;;  %11190 = vst [vmem:[#allocation84_spill] sm:$0xff] %v9126_v33  ;;  %v2583_v6 = vmul.f32 1.442695, %v2455_v34  ;;  %v2474_v8 = vsub.f32 %v8729_v22, %v9052_v50 }
 0x268   : > { %v6148_v0 = vpop.f32.mrb[46].mxu0 }
 0x269   : > { %v6204_v60 = vpop.f32.mrb[46].mxu1  ;;  %v9063_v21 = vpop.f32.mrb[47].mxu0  ;;  %v2621_v22 = vmul.f32 1.442695, %v2474_v8 }
 0x26a   : > { %2373 = vmax.xlane.f32.xlu1 %v9056_v61  ;;  %v9066_v35 = vpop.xlane.xlu1 %2235  ;;  %2341 = vmax.xlane.f32.xlu0 %v9059_v20  ;;  %v9069_v41 = vpop.f32.mrb[47].mxu1  ;;  %v9084_v20 = vadd.f32 %v8779_v11, %v2016_v9  ;;  %v2015_v61 = vmul.f32 0.088388346, %v1598_v32  ;;  %v9101_v11 = vadd.f32 %v8795_v23, %v1999_v47 }
 0x26b   : > { %v9071_v53 = vpop.xlane.xlu0 %2203  ;;  %v2473_v50 = vsub.f32 %v8742_v37, %v9066_v35  ;;  %v2005_v37 = vmul.f32 0.088388346, %v9063_v21 }
 0x26c   : > { %11184 = vst [vmem:[#allocation78_spill] sm:$0xff] %v9084_v20  ;;  %v9098_v9 = vadd.f32 %v8795_v23, %v2015_v61  ;;  %11187 = vst [vmem:[#allocation81_spill] sm:$0xff] %v9101_v11  ;;  %v2001_v61 = vmul.f32 0.088388346, %v1463_v2  ;;  %v2456_v23 = vsub.f32 %v8706_v3, %v9026_v1 }
 0x26d   : > { %v2619_v34 = vmul.f32 1.442695, %v2473_v50  ;;  %v9214_v8 = vadd.f32 %v8855_v7, %v2005_v37 }
 0x26e   : > { %2371 = vmax.xlane.f32.xlu1 %v9074_v45  ;;  %v9080_v62 = vpop.xlane.xlu1 %2241  ;;  %2339 = vmax.xlane.f32.xlu0 %v9077_v54  ;;  %v2018_v45 = vmul.f32 0.088388346, %v6198_v39  ;;  %11186 = vst [vmem:[#allocation80_spill] sm:$0xff] %v9098_v9  ;;  %v9129_v44 = vadd.f32 %v8815_v36, %v2001_v61  ;;  %v2585_v3 = vmul.f32 1.442695, %v2456_v23 }
 0x26f   : > { %v9089_v26 = vpop.xlane.xlu0 %2209  ;;  %v2003_v36 = vmul.f32 0.088388346, %v9049_v49  ;;  %v2022_v23 = vmul.f32 0.088388346, %v6204_v60  ;;  %11201 = vst [vmem:[#allocation95_spill] sm:$0xff] %v9214_v8 }
 0x270   : > { %v9108_v52 = vadd.f32 %v8799_v27, %v2018_v45  ;;  %v2472_v45 = vsub.f32 %v8720_v17, %v9038_v24  ;;  %11191 = vst [vmem:[#allocation85_spill] sm:$0xff] %v9129_v44  ;;  %7353 = vpow2.f32 %v2585_v3 }
 0x272   : > { %2377 = vmax.xlane.f32.xlu1 %v9084_v20  ;;  %v9092_v4 = vpop.xlane.xlu1 %2239  ;;  %2345 = vmax.xlane.f32.xlu0 %v9087_v16  ;;  %11188 = vst [vmem:[#allocation82_spill] sm:$0xff] %v9108_v52  ;;  %v2617_v24 = vmul.f32 1.442695, %v2472_v45 }
 0x273   : > { %v9095_v12 = vpop.xlane.xlu0 %2207 }
 0x274   : > { %7355 = vpow2.f32 %v2617_v24  ;;  %v2457_v24 = vsub.f32 %v8745_v38, %v9071_v53  ;;  %v2476_v38 = vsub.f32 %v8749_v40, %v9080_v62  ;;  %v656_v40 = vld [vmem:[%s8438_s23 + $0x88] sm:$0xff] }
 0x275   : > { %7357 = vpow2.f32 %v2583_v6  ;;  %v655_v6 = vld [vmem:[%s8438_s23 + $0x80] sm:$0xff] }
 0x276   : > { %2375 = vmax.xlane.f32.xlu1 %v9098_v9  ;;  %v9104_v32 = vpop.xlane.xlu1 %2245  ;;  %2343 = vmax.xlane.f32.xlu0 %v9101_v11  ;;  %v2004_v11 = vmul.f32 0.088388346, %v6145_v56  ;;  %v2020_v9 = vmul.f32 0.088388346, %v6201_v46  ;;  %v2019_v46 = vmul.f32 0.088388346, %v1618_v29  ;;  %v9158_v29 = vadd.f32 %v8835_v51, %v2003_v36 }
 0x277   : > { %v9113_v39 = vpop.xlane.xlu0 %2213  ;;  %v2587_v21 = vmul.f32 1.442695, %v2457_v24 }
 0x278   : > { %v9136_v1 = vadd.f32 %v8819_v42, %v2020_v9  ;;  %v9139_v17 = vadd.f32 %v8819_v42, %v2004_v11  ;;  %v2006_v9 = vmul.f32 0.088388346, %v6148_v0  ;;  %v2471_v42 = vsub.f32 %v8724_v19, %v9041_v10  ;;  %11195 = vst [vmem:[#allocation89_spill] sm:$0xff] %v9158_v29 }
 0x279   : > { %v9155_v49 = vadd.f32 %v8835_v51, %v2019_v46  ;;  %v9167_v19 = vadd.f32 %v8839_v58, %v2022_v23  ;;  %v2458_v51 = vsub.f32 %v8733_v25, %v9061_v48  ;;  %v2021_v48 = vmul.f32 0.088388346, %v9069_v41 }
 0x27a   : > { %2381 = vmax.xlane.f32.xlu1 %v9108_v52  ;;  %v9118_v47 = vpop.xlane.xlu1 %2243  ;;  %2349 = vmax.xlane.f32.xlu0 %v9111_v5  ;;  %11192 = vst [vmem:[#allocation86_spill] sm:$0xff] %v9136_v1  ;;  %11193 = vst [vmem:[#allocation87_spill] sm:$0xff] %v9139_v17  ;;  %v9170_v10 = vadd.f32 %v8839_v58, %v2006_v9  ;;  %v2615_v60 = vmul.f32 1.442695, %v2471_v42  ;;  %v9186_v25 = vpop.eup %7353  ;;  %v2460_v9 = vsub.f32 %v8753_v43, %v9089_v26  ;;  %v646_v5 = vld [vmem:[%s8438_s23 + $0x38] sm:$0xff] }
 0x27b   : > { %v9123_v27 = vpop.xlane.xlu0 %2211  ;;  %11194 = vst [vmem:[#allocation88_spill] sm:$0xff] %v9155_v49  ;;  %11196 = vst [vmem:[#allocation90_spill] sm:$0xff] %v9167_v19  ;;  %v2589_v58 = vmul.f32 1.442695, %v2458_v51  ;;  %v9211_v62 = vadd.f32 %v8855_v7, %v2021_v48  ;;  %v639_v51 = vld [vmem:[%s8438_s23] sm:$0xff]  ;;  %v7053_v43 = vpack.c.bf16 %v656_v40, %v655_v6 }
 0x27c   : > { %11197 = vst [vmem:[#allocation91_spill] sm:$0xff] %v9170_v10  ;;  %7359 = vpow2.f32 %v2615_v60  ;;  %11198 = vst [vmem:[#allocation92_spill] sm:$0xff] %v9186_v25  ;;  %v2625_v26 = vmul.f32 1.442695, %v2476_v38  ;;  %v2593_v37 = vmul.f32 1.442695, %v2460_v9 }
 0x27d   : > { %7361 = vpow2.f32 %v2621_v22  ;;  %11200 = vst [vmem:[#allocation94_spill] sm:$0xff] %v9211_v62  ;;  %v640_v22 = vld [vmem:[%s8438_s23 + $0x8] sm:$0xff]  ;;  %7054 = vmatprep.subr.bf16.mxu1 %v7053_v43 }
 0x27e   : > { %2379 = vmax.xlane.f32.xlu1 %v9126_v33  ;;  %v9132_v2 = vpop.xlane.xlu1 %2249  ;;  %2347 = vmax.xlane.f32.xlu0 %v9129_v44  ;;  %v9190_v35 = vpop.eup %7355  ;;  %7363 = vpow2.f32 %v2589_v58  ;;  %v2475_v58 = vsub.f32 %v8762_v55, %v9092_v4  ;;  %v7021_v48 = vpack.c.bf16 %v640_v22, %v639_v51  ;;  %v657_v55 = vld [vmem:[%s8438_s23 + $0x90] sm:$0xff]  ;;  %v658_v4 = vld [vmem:[%s8438_s23 + $0x98] sm:$0xff]  ;;  %v2478_v22 = vsub.f32 %v8769_v59, %v9104_v32  ;;  %v659_v59 = vld [vmem:[%s8438_s23 + $0xa0] sm:$0xff] }
 0x27f   : > { %v9141_v56 = vpop.xlane.xlu0 %2217  ;;  %11199 = vst [vmem:[#allocation93_spill] sm:$0xff] %v9190_v35  ;;  %7365 = vpow2.f32 %v2619_v34  ;;  %v2459_v34 = vsub.f32 %v8765_v57, %v9095_v12  ;;  %v9238_v40 = vpop.eup %7357  ;;  %7056 = vmatpush3.bf16.msra.mxu1 %v7053_v43  ;;  %v642_v51 = vld [vmem:[%s8438_s23 + $0x18] sm:$0xff]  ;;  %v7057_v57 = vpack.c.bf16 %v658_v4, %v657_v55  ;;  %v660_v32 = vld [vmem:[%s8438_s23 + $0xa8] sm:$0xff] }
 0x280   : > { %7367 = vpow2.f32 %v2587_v21  ;;  %11202 = vst [vmem:[#allocation96_spill] sm:$0xff] %v9238_v40  ;;  %7022 = vmatprep.subr.bf16.mxu0 %v7021_v48  ;;  %v2623_v12 = vmul.f32 1.442695, %v2475_v58 }
 0x281   : > { %7024 = vmatpush3.bf16.msra.mxu0 %v7021_v48  ;;  %7369 = vpow2.f32 %v2625_v26  ;;  %v2591_v48 = vmul.f32 1.442695, %v2459_v34  ;;  %v2462_v26 = vsub.f32 %v8773_v63, %v9113_v39  ;;  %7058 = vmatprep.subr.bf16.mxu1 %v7057_v57  ;;  %v7061_v63 = vpack.c.bf16 %v660_v32, %v659_v59  ;;  %v661_v32 = vld [vmem:[%s8438_s23 + $0xb0] sm:$0xff] }
 0x282   : > { %2385 = vmax.xlane.f32.xlu1 %v9136_v1  ;;  %v9147_v61 = vpop.xlane.xlu1 %2247  ;;  %2353 = vmax.xlane.f32.xlu0 %v9139_v17  ;;  %7371 = vpow2.f32 %v2593_v37  ;;  %v2629_v39 = vmul.f32 1.442695, %v2478_v22 }
 0x283   : > { %v9152_v11 = vpop.xlane.xlu0 %2215  ;;  %7060 = vmatpush3.bf16.msra.mxu1 %v7057_v57  ;;  %7373 = vpow2.f32 %v2623_v12  ;;  %v2597_v44 = vmul.f32 1.442695, %v2462_v26  ;;  %v2479_v20 = vsub.f32 %v8802_v28, %v9147_v61 }
 0x284   : > { %7375 = vpow2.f32 %v2591_v48  ;;  %7062 = vmatprep.subr.bf16.mxu1 %v7061_v63 }
 0x285   : > { %7377 = vpow2.f32 %v2629_v39 }
 0x286   : > { %2383 = vmax.xlane.f32.xlu1 %v9155_v49  ;;  %v9163_v0 = vpop.xlane.xlu1 %2253  ;;  %2351 = vmax.xlane.f32.xlu0 %v9158_v29  ;;  %v9244_v21 = vpop.eup %7359  ;;  %v643_v49 = vld [vmem:[%s8438_s23 + $0x20] sm:$0xff]  ;;  %7379 = vpow2.f32 %v2597_v44 }
 0x287   : > { %v9174_v45 = vpop.xlane.xlu0 %2221  ;;  %11203 = vst [vmem:[#allocation97_spill] sm:$0xff] %v9244_v21  ;;  %v9264_v4 = vpop.eup %7361  ;;  %7064 = vmatpush3.bf16.msra.mxu1 %v7061_v63 }
 0x288   : > { %11204 = vst [vmem:[#allocation98_spill] sm:$0xff] %v9264_v4  ;;  %v9270_v37 = vpop.eup %7363 }
 0x289   : > { %11205 = vst [vmem:[#allocation99_spill] sm:$0xff] %v9270_v37 }
 0x28a   : > { %2389 = vmax.xlane.f32.xlu1 %v9167_v19  ;;  %v9179_v3 = vpop.xlane.xlu1 %2251  ;;  %2357 = vmax.xlane.f32.xlu0 %v9170_v10 }
 0x28b   : > { %v9184_v46 = vpop.xlane.xlu0 %2219 }
 0x28d   : > { %v9192_v36 = vpop.f32.mrb[48].mxu0 }
 0x28e   : > { %2873 = vadd.xlane.f32.xlu1 %v9190_v35  ;;  %v9197_v53 = vpop.xlane.xlu1 %2257  ;;  %2841 = vadd.xlane.f32.xlu0 %v9186_v25  ;;  %v9200_v41 = vpop.f32.mrb[48].mxu1 }
 0x28f   : > { %v9204_v23 = vpop.xlane.xlu0 %2225  ;;  %v9206_v42 = vpop.f32.mrb[49].mxu1 }
 0x290   : > { %v9216_v60 = vpop.f32.mrb[49].mxu0 }
 0x291   : > { %v9220_v50 = vpop.f32.mrb[50].mxu0 }
 0x292   : > { %2387 = vmax.xlane.f32.xlu1 %v9211_v62  ;;  %v9225_v24 = vpop.xlane.xlu1 %2255  ;;  %2355 = vmax.xlane.f32.xlu0 %v9214_v8  ;;  %v9228_v7 = vpop.f32.mrb[50].mxu1  ;;  %v641_v8 = vld [vmem:[%s8438_s23 + $0x10] sm:$0xff] }
 0x293   : > { %v9232_v38 = vpop.xlane.xlu0 %2223  ;;  %v9234_v6 = vpop.f32.mrb[51].mxu1  ;;  %v7025_v19 = vpack.c.bf16 %v642_v51, %v641_v8  ;;  %v644_v8 = vld [vmem:[%s8438_s23 + $0x28] sm:$0xff]  ;;  %v2477_v51 = vsub.f32 %v8782_v13, %v9118_v47 }
 0x294   : > { %v9240_v62 = vpop.f32.mrb[51].mxu0  ;;  %v7029_v1 = vpack.c.bf16 %v644_v8, %v643_v49  ;;  %v9288_v13 = vpop.eup %7365 }
 0x295   : > { %v9246_v9 = vpop.f32.mrb[52].mxu0  ;;  %7026 = vmatprep.subr.bf16.mxu0 %v7025_v19  ;;  %11206 = vst [vmem:[#allocation100_spill] sm:$0xff] %v9288_v13  ;;  %v9292_v22 = vpop.eup %7367 }
 0x296   : > { %2871 = vadd.xlane.f32.xlu1 %v9244_v21  ;;  %v9251_v10 = vpop.xlane.xlu1 %2261  ;;  %2839 = vadd.xlane.f32.xlu0 %v9238_v40  ;;  %v9254_v43 = vpop.f32.mrb[52].mxu1  ;;  %11207 = vst [vmem:[#allocation101_spill] sm:$0xff] %v9292_v22  ;;  %v11218_v40 = vld [vmem:[#allocation21_spill] sm:$0xff] }
 0x297   : > { %v9258_v58 = vpop.xlane.xlu0 %2229  ;;  %v9260_v55 = vpop.f32.mrb[53].mxu1  ;;  %7028 = vmatpush3.bf16.msra.mxu0 %v7025_v19  ;;  %v2461_v19 = vsub.f32 %v8785_v14, %v9123_v27  ;;  %v2627_v14 = vmul.f32 1.442695, %v2477_v51  ;;  %v2480_v27 = vsub.f32 %v8789_v15, %v9132_v2  ;;  %v662_v15 = vld [vmem:[%s8438_s23 + $0xb8] sm:$0xff]  ;;  %v645_v2 = vld [vmem:[%s8438_s23 + $0x30] sm:$0xff]  ;;  %v2465_v35 = vsub.f32 %v11218_v40, %v9184_v46 }
 0x298   : > { %v9266_v29 = vpop.f32.mrb[53].mxu0  ;;  %7030 = vmatprep.subr.bf16.mxu0 %v7029_v1  ;;  %v9313_v51 = vpop.eup %7369  ;;  %v7065_v44 = vpack.c.bf16 %v662_v15, %v661_v32  ;;  %v7033_v54 = vpack.c.bf16 %v646_v5, %v645_v2  ;;  %v2482_v2 = vsub.f32 %v8809_v31, %v9163_v0 }
 0x299   : > { %v9272_v34 = vpop.f32.mrb[54].mxu0  ;;  %v2595_v8 = vmul.f32 1.442695, %v2461_v19  ;;  %11208 = vst [vmem:[#allocation102_spill] sm:$0xff] %v9313_v51  ;;  %v9318_v52 = vpop.eup %7371  ;;  %v663_v19 = vld [vmem:[%s8438_s23 + $0xc0] sm:$0xff]  ;;  %7381 = vpow2.f32 %v2627_v14 }
 0x29a   : > { %2877 = vadd.xlane.f32.xlu1 %v9264_v4  ;;  %v9277_v17 = vpop.xlane.xlu1 %2259  ;;  %2845 = vadd.xlane.f32.xlu0 %v9270_v37  ;;  %v9280_v57 = vpop.f32.mrb[54].mxu1  ;;  %11209 = vst [vmem:[#allocation103_spill] sm:$0xff] %v9318_v52  ;;  %v2463_v4 = vsub.f32 %v8805_v30, %v9152_v11 }
 0x29b   : > { %v9284_v59 = vpop.xlane.xlu0 %2227  ;;  %v9286_v12 = vpop.f32.mrb[55].mxu1  ;;  %7032 = vmatpush3.bf16.msra.mxu0 %v7029_v1  ;;  %v2464_v1 = vsub.f32 %v8793_v18, %v9141_v56  ;;  %v664_v18 = vld [vmem:[%s8438_s23 + $0xc8] sm:$0xff]  ;;  %v2633_v56 = vmul.f32 1.442695, %v2480_v27  ;;  %7383 = vpow2.f32 %v2595_v8  ;;  %7066 = vmatprep.subr.bf16.mxu1 %v7065_v44  ;;  %v647_v27 = vld [vmem:[%s8438_s23 + $0x40] sm:$0xff] }
 0x29c   : > { %v9290_v47 = vpop.f32.mrb[55].mxu0  ;;  %v7069_v14 = vpack.c.bf16 %v664_v18, %v663_v19  ;;  %7034 = vmatprep.subr.bf16.mxu0 %v7033_v54  ;;  %7068 = vmatpush3.bf16.msra.mxu1 %v7065_v44  ;;  %v2599_v44 = vmul.f32 1.442695, %v2463_v4  ;;  %v11212_v19 = vld [vmem:[#allocation19_spill] sm:$0xff] }
 0x29d   : > { %v9294_v49 = vpop.f32.mrb[56].mxu0  ;;  %v2601_v37 = vmul.f32 1.442695, %v2464_v1  ;;  %7385 = vpow2.f32 %v2633_v56  ;;  %v2631_v1 = vmul.f32 1.442695, %v2479_v20  ;;  %v2466_v18 = vsub.f32 %v11212_v19, %v9174_v45  ;;  %v665_v20 = vld [vmem:[%s8438_s23 + $0xd0] sm:$0xff] }
 0x29e   : > { %2875 = vadd.xlane.f32.xlu1 %v9288_v13  ;;  %2843 = vadd.xlane.f32.xlu0 %v9292_v22  ;;  %v9300_v48 = vpop.f32.mrb[56].mxu1  ;;  %v9302_v26 = vpop.f32.mrb[57].mxu0  ;;  %v648_v22 = vld [vmem:[%s8438_s23 + $0x48] sm:$0xff] }
 0x29f   : > { %v9307_v63 = vpop.xlane.xlu1 %2297  ;;  %v9309_v39 = vpop.xlane.xlu0 %2265  ;;  %7036 = vmatpush3.bf16.msra.mxu0 %v7033_v54  ;;  %7070 = vmatprep.subr.bf16.mxu1 %v7069_v14  ;;  %v7037_v11 = vpack.c.bf16 %v648_v22, %v647_v27  ;;  %7387 = vpow2.f32 %v2601_v37  ;;  %v666_v22 = vld [vmem:[%s8438_s23 + $0xd8] sm:$0xff]  ;;  %v649_v27 = vld [vmem:[%s8438_s23 + $0x50] sm:$0xff]  ;;  %v2605_v25 = vmul.f32 1.442695, %v2466_v18  ;;  %v652_v18 = vld [vmem:[%s8438_s23 + $0x68] sm:$0xff] }
 0x2a0   : > { %v9315_v33 = vpop.f32.mrb[57].mxu1  ;;  %v9336_v13 = vpop.eup %7373  ;;  %7072 = vmatpush3.bf16.msra.mxu1 %v7069_v14  ;;  %v650_v37 = vld [vmem:[%s8438_s23 + $0x58] sm:$0xff]  ;;  %7389 = vpow2.f32 %v2631_v1  ;;  %v7073_v14 = vpack.c.bf16 %v666_v22, %v665_v20 }
 0x2a1   : > { %v9320_v16 = vpop.f32.mrb[58].mxu0  ;;  %11210 = vst [vmem:[#allocation104_spill] sm:$0xff] %v9336_v13  ;;  %v9342_v5 = vpop.eup %7375  ;;  %7038 = vmatprep.subr.bf16.mxu0 %v7037_v11  ;;  %7391 = vpow2.f32 %v2599_v44  ;;  %v7041_v1 = vpack.c.bf16 %v650_v37, %v649_v27  ;;  %v651_v44 = vld [vmem:[%s8438_s23 + $0x60] sm:$0xff]  ;;  %v11225_v22 = vld [vmem:[#allocation22_spill] sm:$0xff] }
 0x2a2   : > { %2881 = vadd.xlane.f32.xlu1 %v9313_v51  ;;  %2849 = vadd.xlane.f32.xlu0 %v9318_v52  ;;  %v9338_v28 = vpop.f32.mrb[58].mxu1  ;;  %v9340_v61 = vpop.f32.mrb[59].mxu0  ;;  %11211 = vst [vmem:[#allocation105_spill] sm:$0xff] %v9342_v5  ;;  %v2637_v51 = vmul.f32 1.442695, %v2482_v2  ;;  %v667_v2 = vld [vmem:[%s8438_s23 + $0xe0] sm:$0xff]  ;;  %v2484_v27 = vsub.f32 %v11225_v22, %v9197_v53 }
 0x2a3   : > { %v9330_v32 = vpop.xlane.xlu1 %2295  ;;  %v9332_v15 = vpop.xlane.xlu0 %2263  ;;  %7040 = vmatpush3.bf16.msra.mxu0 %v7037_v11  ;;  %7074 = vmatprep.subr.bf16.mxu1 %v7073_v14  ;;  %v654_v53 = vld [vmem:[%s8438_s23 + $0x78] sm:$0xff] }
 0x2a4   : > { %v9344_v8 = vpop.f32.mrb[59].mxu1  ;;  %v9360_v56 = vpop.eup %7377  ;;  %7042 = vmatprep.subr.bf16.mxu0 %v7041_v1  ;;  %7076 = vmatpush3.bf16.msra.mxu1 %v7073_v14  ;;  %7393 = vpow2.f32 %v2637_v51  ;;  %v670_v51 = vld [vmem:[%s8438_s23 + $0xf8] sm:$0xff] }
 0x2a5   : > { %v9346_v30 = vpop.f32.mrb[60].mxu0  ;;  %11215 = vst [vmem:[#allocation107_spill] sm:$0xff] %v9360_v56  ;;  %v9368_v4 = vpop.eup %7379  ;;  %7395 = vpow2.f32 %v2605_v25 }
 0x2a6   : > { %2879 = vadd.xlane.f32.xlu1 %v9336_v13  ;;  %2847 = vadd.xlane.f32.xlu0 %v9342_v5  ;;  %v9362_v31 = vpop.f32.mrb[60].mxu1  ;;  %v9364_v0 = vpop.f32.mrb[61].mxu0  ;;  %11216 = vst [vmem:[#allocation108_spill] sm:$0xff] %v9368_v4  ;;  %v11217_v5 = vld [vmem:[#allocation20_spill] sm:$0xff] }
 0x2a7   : > { %v9354_v52 = vpop.xlane.xlu1 %2301  ;;  %v9356_v54 = vpop.xlane.xlu0 %2269  ;;  %v2481_v13 = vsub.f32 %v11217_v5, %v9179_v3  ;;  %7044 = vmatpush3.bf16.msra.mxu0 %v7041_v1 }
 0x2a8   : > { %11213 = vst [vmem:[#allocation19_spill] sm:$0xff] %v9354_v52  ;;  %11214 = vst [vmem:[#allocation106_spill] sm:$0xff] %v9356_v54  ;;  %v9370_v45 = vpop.f32.mrb[61].mxu1  ;;  %v668_v54 = vld [vmem:[%s8438_s23 + $0xe8] sm:$0xff]  ;;  %v9386_v3 = vpop.eup %7381  ;;  %v653_v52 = vld [vmem:[%s8438_s23 + $0x70] sm:$0xff] }
 0x2a9   : > { %v9372_v19 = vpop.f32.mrb[62].mxu0  ;;  %11221 = vst [vmem:[#allocation109_spill] sm:$0xff] %v9386_v3  ;;  %v9394_v20 = vpop.eup %7383  ;;  %v2635_v40 = vmul.f32 1.442695, %v2481_v13  ;;  %v7077_v37 = vpack.c.bf16 %v668_v54, %v667_v2  ;;  %v7045_v13 = vpack.c.bf16 %v652_v18, %v651_v44  ;;  %v11229_v54 = vld [vmem:[#allocation24_spill] sm:$0xff]  ;;  %v11230_v44 = vld [vmem:[#allocation25_spill] sm:$0xff] }
 0x2aa   : > { %2885 = vadd.xlane.f32.xlu1 %v9360_v56  ;;  %2853 = vadd.xlane.f32.xlu0 %v9368_v4  ;;  %v9388_v5 = vpop.f32.mrb[62].mxu1  ;;  %v9390_v56 = vpop.f32.mrb[63].mxu0  ;;  %11223 = vst [vmem:[#allocation111_spill] sm:$0xff] %v9394_v20  ;;  %v669_v4 = vld [vmem:[%s8438_s23 + $0xf0] sm:$0xff]  ;;  %v2483_v2 = vsub.f32 %v11229_v54, %v9225_v24  ;;  %v2467_v18 = vsub.f32 %v11230_v44, %v9232_v38 }
 0x2ab   : > { %v9380_v21 = vpop.xlane.xlu1 %2299  ;;  %v9382_v11 = vpop.xlane.xlu0 %2267  ;;  %11222 = vst [vmem:[#allocation110_spill] sm:$0xff] %v9390_v56  ;;  %v2603_v56 = vmul.f32 1.442695, %v2465_v35  ;;  %7078 = vmatprep.subr.bf16.mxu1 %v7077_v37  ;;  %7046 = vmatprep.subr.bf16.mxu0 %v7045_v13  ;;  %v7081_v25 = vpack.c.bf16 %v670_v51, %v669_v4  ;;  %v7049_v35 = vpack.c.bf16 %v654_v53, %v653_v52  ;;  %7397 = vpow2.f32 %v2635_v40  ;;  %v11232_v40 = vld [vmem:[#allocation27_spill] sm:$0xff]  ;;  %v11236_v54 = vld [vmem:[#allocation29_spill] sm:$0xff] }
 0x2ac   : > { %11219 = vst [vmem:[#allocation20_spill] sm:$0xff] %v9380_v21  ;;  %11220 = vst [vmem:[#allocation21_spill] sm:$0xff] %v9382_v11  ;;  %v9396_v46 = vpop.f32.mrb[63].mxu1  ;;  %v9412_v22 = vpop.eup %7385  ;;  %7080 = vmatpush3.bf16.msra.mxu1 %v7077_v37  ;;  %7048 = vmatpush3.bf16.msra.mxu0 %v7045_v13  ;;  %v2639_v24 = vmul.f32 1.442695, %v2483_v2  ;;  %v2469_v2 = vsub.f32 %v11236_v54, %v9284_v59 }
 0x2ad   : > { %11224 = vst [vmem:[#allocation112_spill] sm:$0xff] %v9396_v46  ;;  %v11226_v46 = vld [vmem:[#allocation23_spill] sm:$0xff]  ;;  %11227 = vst [vmem:[#allocation22_spill] sm:$0xff] %v9412_v22  ;;  %7399 = vpow2.f32 %v2603_v56  ;;  %7082 = vmatprep.subr.bf16.mxu1 %v7081_v25  ;;  %7050 = vmatprep.subr.bf16.mxu0 %v7049_v35  ;;  %v11231_v56 = vld [vmem:[#allocation26_spill] sm:$0xff]  ;;  %v2607_v38 = vmul.f32 1.442695, %v2467_v18 }
 0x2ae   : > { %2883 = vadd.xlane.f32.xlu1 %v9386_v3  ;;  %2851 = vadd.xlane.f32.xlu0 %v9394_v20  ;;  %v2468_v11 = vsub.f32 %v11226_v46, %v9204_v23  ;;  %v9414_v20 = vpop.eup %7387  ;;  %v2641_v23 = vmul.f32 1.442695, %v2484_v27  ;;  %v2470_v27 = vsub.f32 %v11232_v40, %v9258_v58 }
 0x2af   : > { %v9405_v21 = vpop.xlane.xlu1 %2305  ;;  %v9407_v14 = vpop.xlane.xlu0 %2273  ;;  %11228 = vst [vmem:[#allocation23_spill] sm:$0xff] %v9414_v20 }
 0x2b0   : > { %v2609_v1 = vmul.f32 1.442695, %v2468_v11  ;;  %v9426_v52 = vpop.eup %7389  ;;  %7084 = vmatpush3.bf16.msra.mxu1 %v7081_v25  ;;  %7401 = vpow2.f32 %v2641_v23  ;;  %v2486_v11 = vsub.f32 %v11231_v56, %v9251_v10  ;;  %7052 = vmatpush3.bf16.msra.mxu0 %v7049_v35  ;;  %v11235_v25 = vld [vmem:[#allocation28_spill] sm:$0xff]  ;;  %v2613_v58 = vmul.f32 1.442695, %v2470_v27 }
 0x2b1   : > { %v9428_v4 = vpop.eup %7391  ;;  %v2485_v23 = vsub.f32 %v11235_v25, %v9277_v17  ;;  %v2611_v17 = vmul.f32 1.442695, %v2469_v2 }
 0x2b2   : > { %2889 = vadd.xlane.f32.xlu1 %v9412_v22  ;;  %2857 = vadd.xlane.f32.xlu0 %v9414_v20  ;;  %7403 = vpow2.f32 %v2609_v1  ;;  %v9440_v51 = vpop.eup %7393  ;;  %v2645_v10 = vmul.f32 1.442695, %v2486_v11 }
 0x2b3   : > { %v9422_v46 = vpop.xlane.xlu1 %2303  ;;  %v9424_v3 = vpop.xlane.xlu0 %2271  ;;  %11233 = vst [vmem:[#allocation24_spill] sm:$0xff] %v9440_v51  ;;  %7405 = vpow2.f32 %v2639_v24  ;;  %v2643_v24 = vmul.f32 1.442695, %v2485_v23 }
 0x2b4   : > { %v9442_v53 = vpop.eup %7395  ;;  %7407 = vpow2.f32 %v2607_v38 }
 0x2b5   : > { %11234 = vst [vmem:[#allocation25_spill] sm:$0xff] %v9442_v53  ;;  %v9454_v44 = vpop.eup %7397  ;;  %7409 = vpow2.f32 %v2645_v10 }
 0x2b6   : > { %2887 = vadd.xlane.f32.xlu1 %v9426_v52  ;;  %2855 = vadd.xlane.f32.xlu0 %v9428_v4  ;;  %11237 = vst [vmem:[#allocation26_spill] sm:$0xff] %v9454_v44  ;;  %7411 = vpow2.f32 %v2613_v58 }
 0x2b7   : > { %v9436_v37 = vpop.xlane.xlu1 %2309  ;;  %v9438_v13 = vpop.xlane.xlu0 %2277  ;;  %7413 = vpow2.f32 %v2643_v24  ;;  %v2024_v24 = vmul.f32 0.088388346, %v9192_v36 }
 0x2b8   : > { %v9456_v18 = vpop.eup %7399  ;;  %7415 = vpow2.f32 %v2611_v17  ;;  %v2040_v17 = vmul.f32 0.088388346, %v9200_v41 }
 0x2b9   : > { %11238 = vst [vmem:[#allocation27_spill] sm:$0xff] %v9456_v18 }
 0x2ba   : > { %2893 = vadd.xlane.f32.xlu1 %v9440_v51  ;;  %2861 = vadd.xlane.f32.xlu0 %v9442_v53  ;;  %v9464_v59 = vpop.eup %7401  ;;  %v7865_v53 = vld [vmem:[#allocation10 + $0x8] sm:$0xff] }
 0x2bb   : > { %v9450_v1 = vpop.xlane.xlu1 %2307  ;;  %v9452_v35 = vpop.xlane.xlu0 %2275  ;;  %11239 = vst [vmem:[#allocation28_spill] sm:$0xff] %v9464_v59  ;;  %v9500_v51 = vadd.f32 %v7865_v53, %v2024_v24  ;;  %v2026_v24 = vmul.f32 0.088388346, %v9220_v50 }
 0x2bc   : > { %v9466_v38 = vpop.eup %7403 }
 0x2bd   : > { %11240 = vst [vmem:[#allocation29_spill] sm:$0xff] %v9466_v38  ;;  %v9474_v10 = vpop.eup %7405  ;;  %11247 = vst [vmem:[#allocation119_spill] sm:$0xff] %v9500_v51 }
 0x2be   : > { %2891 = vadd.xlane.f32.xlu1 %v9454_v44  ;;  %2859 = vadd.xlane.f32.xlu0 %v9456_v18  ;;  %11241 = vst [vmem:[#allocation113_spill] sm:$0xff] %v9474_v10  ;;  %v9476_v25 = vpop.eup %7407  ;;  %v9502_v18 = vadd.f32 %v7865_v53, %v2040_v17  ;;  %v2042_v53 = vmul.f32 0.088388346, %v9228_v7 }
 0x2bf   : > { %v9460_v56 = vpop.xlane.xlu1 %2313  ;;  %v9462_v11 = vpop.xlane.xlu0 %2281  ;;  %11242 = vst [vmem:[#allocation114_spill] sm:$0xff] %v9476_v25 }
 0x2c0   : > { %v9484_v54 = vpop.eup %7409  ;;  %11248 = vst [vmem:[#allocation120_spill] sm:$0xff] %v9502_v18 }
 0x2c1   : > { %11243 = vst [vmem:[#allocation115_spill] sm:$0xff] %v9484_v54  ;;  %v9486_v2 = vpop.eup %7411 }
 0x2c2   : > { %2897 = vadd.xlane.f32.xlu1 %v9464_v59  ;;  %2865 = vadd.xlane.f32.xlu0 %v9466_v38  ;;  %11244 = vst [vmem:[#allocation116_spill] sm:$0xff] %v9486_v2 }
 0x2c3   : > { %v9470_v40 = vpop.xlane.xlu1 %2311  ;;  %v9472_v27 = vpop.xlane.xlu0 %2279 }
 0x2c6   : > { %2895 = vadd.xlane.f32.xlu1 %v9474_v10  ;;  %2863 = vadd.xlane.f32.xlu0 %v9476_v25  ;;  %v9496_v25 = vpop.eup %7413 }
 0x2c7   : > { %v9480_v23 = vpop.xlane.xlu1 %2317  ;;  %v9482_v58 = vpop.xlane.xlu0 %2285  ;;  %11245 = vst [vmem:[#allocation117_spill] sm:$0xff] %v9496_v25 }
 0x2c8   : > { %v9498_v10 = vpop.eup %7415 }
 0x2c9   : > { %11246 = vst [vmem:[#allocation118_spill] sm:$0xff] %v9498_v10 }
 0x2ca   : > { %2901 = vadd.xlane.f32.xlu1 %v9484_v54  ;;  %2869 = vadd.xlane.f32.xlu0 %v9486_v2  ;;  %v2039_v2 = vmul.f32 0.088388346, %v9206_v42  ;;  %v2023_v54 = vmul.f32 0.088388346, %v9216_v60  ;;  %v7867_v42 = vld [vmem:[#allocation10 + $0x18] sm:$0xff] }
 0x2cb   : > { %v9492_v38 = vpop.xlane.xlu1 %2315  ;;  %v9494_v59 = vpop.xlane.xlu0 %2283  ;;  %v9524_v22 = vadd.f32 %v7867_v42, %v2026_v24  ;;  %v9526_v60 = vadd.f32 %v7867_v42, %v2042_v53  ;;  %v7868_v42 = vld [vmem:[#allocation10 + $0x10] sm:$0xff] }
 0x2cd   : > { %11251 = vst [vmem:[#allocation123_spill] sm:$0xff] %v9524_v22  ;;  %11252 = vst [vmem:[#allocation124_spill] sm:$0xff] %v9526_v60 }
 0x2ce   : > { %2899 = vadd.xlane.f32.xlu1 %v9496_v25  ;;  %2867 = vadd.xlane.f32.xlu0 %v9498_v10  ;;  %v7866_v10 = vld [vmem:[#allocation10] sm:$0xff] }
 0x2cf   : > { %v9506_v36 = vpop.xlane.xlu1 %2321  ;;  %v9508_v41 = vpop.xlane.xlu0 %2289  ;;  %v9520_v44 = vadd.f32 %v7866_v10, %v2039_v2  ;;  %v9522_v20 = vadd.f32 %v7866_v10, %v2023_v54  ;;  %v2025_v2 = vmul.f32 0.088388346, %v9240_v62  ;;  %v2028_v10 = vmul.f32 0.088388346, %v9246_v9 }
 0x2d0   : > { %v2044_v54 = vmul.f32 0.088388346, %v9254_v43 }
 0x2d1   : > { %11249 = vst [vmem:[#allocation121_spill] sm:$0xff] %v9520_v44  ;;  %11250 = vst [vmem:[#allocation122_spill] sm:$0xff] %v9522_v20 }
 0x2d2   : > { %2425 = vmax.xlane.f32.xlu1 %v9502_v18  ;;  %2393 = vmax.xlane.f32.xlu0 %v9500_v51  ;;  %v2041_v51 = vmul.f32 0.088388346, %v9234_v6  ;;  %v7869_v6 = vld [vmem:[#allocation10 + $0x28] sm:$0xff] }
 0x2d3   : > { %v9516_v17 = vpop.xlane.xlu1 %2319  ;;  %v9518_v25 = vpop.xlane.xlu0 %2287  ;;  %v9548_v18 = vadd.f32 %v7869_v6, %v2028_v10  ;;  %v9550_v62 = vadd.f32 %v7869_v6, %v2044_v54  ;;  %v2046_v10 = vmul.f32 0.088388346, %v9280_v57  ;;  %v7870_v6 = vld [vmem:[#allocation10 + $0x20] sm:$0xff] }
 0x2d5   : > { %11255 = vst [vmem:[#allocation127_spill] sm:$0xff] %v9548_v18  ;;  %11256 = vst [vmem:[#allocation128_spill] sm:$0xff] %v9550_v62 }
 0x2d6   : > { %2423 = vmax.xlane.f32.xlu1 %v9520_v44  ;;  %2391 = vmax.xlane.f32.xlu0 %v9522_v20  ;;  %v9544_v20 = vadd.f32 %v7868_v42, %v2041_v51  ;;  %v9546_v44 = vadd.f32 %v7868_v42, %v2025_v2  ;;  %v2027_v51 = vmul.f32 0.088388346, %v9266_v29  ;;  %v2030_v2 = vmul.f32 0.088388346, %v9272_v34 }
 0x2d7   : > { %v9530_v50 = vpop.xlane.xlu1 %2325  ;;  %v9532_v7 = vpop.xlane.xlu0 %2293 }
 0x2d8   : > { %11253 = vst [vmem:[#allocation125_spill] sm:$0xff] %v9544_v20  ;;  %11254 = vst [vmem:[#allocation126_spill] sm:$0xff] %v9546_v44 }
 0x2da   : > { %2429 = vmax.xlane.f32.xlu1 %v9526_v60  ;;  %2397 = vmax.xlane.f32.xlu0 %v9524_v22  ;;  %v2043_v22 = vmul.f32 0.088388346, %v9260_v55  ;;  %v7871_v55 = vld [vmem:[#allocation10 + $0x38] sm:$0xff] }
 0x2db   : > { %v9540_v24 = vpop.xlane.xlu1 %2323  ;;  %v9542_v53 = vpop.xlane.xlu0 %2291  ;;  %v9572_v60 = vadd.f32 %v7871_v55, %v2030_v2  ;;  %v9574_v29 = vadd.f32 %v7871_v55, %v2046_v10  ;;  %v2048_v2 = vmul.f32 0.088388346, %v9300_v48  ;;  %v7872_v55 = vld [vmem:[#allocation10 + $0x30] sm:$0xff] }
 0x2dd   : > { %11259 = vst [vmem:[#allocation131_spill] sm:$0xff] %v9572_v60  ;;  %11260 = vst [vmem:[#allocation132_spill] sm:$0xff] %v9574_v29 }
 0x2de   : > { %2427 = vmax.xlane.f32.xlu1 %v9544_v20  ;;  %2395 = vmax.xlane.f32.xlu0 %v9546_v44  ;;  %v9568_v44 = vadd.f32 %v7870_v6, %v2043_v22  ;;  %v9570_v20 = vadd.f32 %v7870_v6, %v2027_v51  ;;  %v2029_v22 = vmul.f32 0.088388346, %v9290_v47  ;;  %v2032_v51 = vmul.f32 0.088388346, %v9294_v49 }
 0x2df   : > { %v9554_v9 = vpop.xlane.xlu1 %2361  ;;  %v9556_v43 = vpop.xlane.xlu0 %2329 }
 0x2e0   : > { %11257 = vst [vmem:[#allocation129_spill] sm:$0xff] %v9568_v44  ;;  %11258 = vst [vmem:[#allocation130_spill] sm:$0xff] %v9570_v20 }
 0x2e2   : > { %2433 = vmax.xlane.f32.xlu1 %v9550_v62  ;;  %2401 = vmax.xlane.f32.xlu0 %v9548_v18  ;;  %v2045_v18 = vmul.f32 0.088388346, %v9286_v12  ;;  %v7873_v12 = vld [vmem:[#allocation10 + $0x48] sm:$0xff] }
 0x2e3   : > { %v9564_v54 = vpop.xlane.xlu1 %2359  ;;  %v9566_v42 = vpop.xlane.xlu0 %2327  ;;  %v9596_v62 = vadd.f32 %v7873_v12, %v2032_v51  ;;  %v9598_v47 = vadd.f32 %v7873_v12, %v2048_v2  ;;  %v2050_v51 = vmul.f32 0.088388346, %v9338_v28  ;;  %v7874_v12 = vld [vmem:[#allocation10 + $0x40] sm:$0xff] }
 0x2e5   : > { %11263 = vst [vmem:[#allocation135_spill] sm:$0xff] %v9596_v62  ;;  %11264 = vst [vmem:[#allocation136_spill] sm:$0xff] %v9598_v47 }
 0x2e6   : > { %2431 = vmax.xlane.f32.xlu1 %v9568_v44  ;;  %2399 = vmax.xlane.f32.xlu0 %v9570_v20  ;;  %v9592_v20 = vadd.f32 %v7872_v55, %v2045_v18  ;;  %v9594_v44 = vadd.f32 %v7872_v55, %v2029_v22  ;;  %v2031_v18 = vmul.f32 0.088388346, %v9302_v26  ;;  %v2034_v22 = vmul.f32 0.088388346, %v9320_v16 }
 0x2e7   : > { %v9578_v34 = vpop.xlane.xlu1 %2365  ;;  %v9580_v57 = vpop.xlane.xlu0 %2333 }
 0x2e8   : > { %11261 = vst [vmem:[#allocation133_spill] sm:$0xff] %v9592_v20  ;;  %11262 = vst [vmem:[#allocation134_spill] sm:$0xff] %v9594_v44 }
 0x2ea   : > { %2437 = vmax.xlane.f32.xlu1 %v9574_v29  ;;  %2405 = vmax.xlane.f32.xlu0 %v9572_v60  ;;  %v2047_v60 = vmul.f32 0.088388346, %v9315_v33  ;;  %v7875_v33 = vld [vmem:[#allocation10 + $0x58] sm:$0xff] }
 0x2eb   : > { %v9588_v10 = vpop.xlane.xlu1 %2363  ;;  %v9590_v6 = vpop.xlane.xlu0 %2331  ;;  %v9620_v29 = vadd.f32 %v7875_v33, %v2034_v22  ;;  %v9622_v26 = vadd.f32 %v7875_v33, %v2050_v51  ;;  %v2036_v22 = vmul.f32 0.088388346, %v9346_v30  ;;  %v2052_v51 = vmul.f32 0.088388346, %v9362_v31  ;;  %v11271_v33 = vld [vmem:[#allocation30_spill] sm:$0xff] }
 0x2ed   : > { %11267 = vst [vmem:[#allocation139_spill] sm:$0xff] %v9620_v29  ;;  %11268 = vst [vmem:[#allocation140_spill] sm:$0xff] %v9622_v26 }
 0x2ee   : > { %2435 = vmax.xlane.f32.xlu1 %v9592_v20  ;;  %2403 = vmax.xlane.f32.xlu0 %v9594_v44  ;;  %v9616_v44 = vadd.f32 %v7874_v12, %v2047_v60  ;;  %v9618_v20 = vadd.f32 %v7874_v12, %v2031_v18  ;;  %v2033_v60 = vmul.f32 0.088388346, %v9340_v61  ;;  %v11270_v18 = vld [vmem:[#allocation31_spill] sm:$0xff] }
 0x2ef   : > { %v9602_v49 = vpop.xlane.xlu1 %2369  ;;  %v9604_v48 = vpop.xlane.xlu0 %2337  ;;  %v2504_v12 = vsub.f32 %v11270_v18, %v9307_v63  ;;  %v7877_v18 = vld [vmem:[#allocation10 + $0x68] sm:$0xff] }
 0x2f0   : > { %11265 = vst [vmem:[#allocation137_spill] sm:$0xff] %v9616_v44  ;;  %11266 = vst [vmem:[#allocation138_spill] sm:$0xff] %v9618_v20 }
 0x2f1   : > { %v2681_v63 = vmul.f32 1.442695, %v2504_v12  ;;  %v11276_v12 = vld [vmem:[#allocation32_spill] sm:$0xff] }
 0x2f2   : > { %2441 = vmax.xlane.f32.xlu1 %v9598_v47  ;;  %2409 = vmax.xlane.f32.xlu0 %v9596_v62  ;;  %v2049_v62 = vmul.f32 0.088388346, %v9344_v8  ;;  %v7876_v8 = vld [vmem:[#allocation10 + $0x50] sm:$0xff] }
 0x2f3   : > { %v9612_v2 = vpop.xlane.xlu1 %2367  ;;  %v9614_v55 = vpop.xlane.xlu0 %2335  ;;  %7417 = vpow2.f32 %v2681_v63 }
 0x2f4   : > { %v9644_v61 = vadd.f32 %v7876_v8, %v2049_v62  ;;  %v2051_v62 = vmul.f32 0.088388346, %v9370_v45 }
 0x2f6   : > { %2439 = vmax.xlane.f32.xlu1 %v9616_v44  ;;  %2407 = vmax.xlane.f32.xlu0 %v9618_v20  ;;  %v2488_v20 = vsub.f32 %v11271_v33, %v9309_v39  ;;  %11272 = vst [vmem:[#allocation31_spill] sm:$0xff] %v9644_v61  ;;  %v11277_v33 = vld [vmem:[#allocation33_spill] sm:$0xff] }
 0x2f7   : > { %v9626_v16 = vpop.xlane.xlu1 %2373  ;;  %v9628_v28 = vpop.xlane.xlu0 %2341 }
 0x2f8   : > { %11269 = vst [vmem:[#allocation141_spill] sm:$0xff] %v9628_v28  ;;  %v9646_v28 = vadd.f32 %v7876_v8, %v2033_v60  ;;  %v2649_v39 = vmul.f32 1.442695, %v2488_v20  ;;  %v2035_v60 = vmul.f32 0.088388346, %v9364_v0  ;;  %v2487_v8 = vsub.f32 %v11277_v33, %v9332_v15  ;;  %v7878_v0 = vld [vmem:[#allocation10 + $0x60] sm:$0xff] }
 0x2f9   : > { %v2054_v20 = vmul.f32 0.088388346, %v9388_v5  ;;  %v9672_v63 = vadd.f32 %v7878_v0, %v2051_v62  ;;  %v11286_v33 = vld [vmem:[#allocation35_spill] sm:$0xff] }
 0x2fa   : > { %2445 = vmax.xlane.f32.xlu1 %v9622_v26  ;;  %2413 = vmax.xlane.f32.xlu0 %v9620_v29  ;;  %11273 = vst [vmem:[#allocation30_spill] sm:$0xff] %v9646_v28  ;;  %v9648_v26 = vadd.f32 %v7877_v18, %v2036_v22  ;;  %v9650_v29 = vadd.f32 %v7877_v18, %v2052_v51  ;;  %v2038_v51 = vmul.f32 0.088388346, %v9372_v19  ;;  %7419 = vpow2.f32 %v2649_v39  ;;  %v7879_v19 = vld [vmem:[#allocation10 + $0x78] sm:$0xff] }
 0x2fb   : > { %v9640_v44 = vpop.xlane.xlu1 %2371  ;;  %v9642_v47 = vpop.xlane.xlu0 %2339  ;;  %v2503_v22 = vsub.f32 %v11276_v12, %v9330_v32  ;;  %11279 = vst [vmem:[#allocation33_spill] sm:$0xff] %v9672_v63  ;;  %v9674_v32 = vadd.f32 %v7878_v0, %v2035_v60  ;;  %v9680_v5 = vadd.f32 %v7879_v19, %v2054_v20  ;;  %v2647_v15 = vmul.f32 1.442695, %v2487_v8  ;;  %v11285_v39 = vld [vmem:[#allocation106_spill] sm:$0xff]  ;;  %v11289_v0 = vld [vmem:[#allocation21_spill] sm:$0xff] }
 0x2fc   : > { %11274 = vst [vmem:[#allocation142_spill] sm:$0xff] %v9648_v26  ;;  %11275 = vst [vmem:[#allocation143_spill] sm:$0xff] %v9650_v29  ;;  %v2490_v62 = vsub.f32 %v11286_v33, %v11285_v39  ;;  %v11290_v8 = vld [vmem:[#allocation37_spill] sm:$0xff] }
 0x2fd   : > { %11280 = vst [vmem:[#allocation144_spill] sm:$0xff] %v9674_v32  ;;  %v2679_v12 = vmul.f32 1.442695, %v2503_v22  ;;  %v9700_v33 = vpop.eup %7417 }
 0x2fe   : > { %2443 = vmax.xlane.f32.xlu1 %v9644_v61  ;;  %2411 = vmax.xlane.f32.xlu0 %v9646_v28  ;;  %v9678_v61 = vadd.f32 %v7879_v19, %v2038_v51  ;;  %v2653_v20 = vmul.f32 1.442695, %v2490_v62  ;;  %v2489_v19 = vsub.f32 %v11290_v8, %v11289_v0  ;;  %11292 = vst [vmem:[#allocation35_spill] sm:$0xff] %v9700_v33  ;;  %v11296_v62 = vld [vmem:[#allocation38_spill] sm:$0xff]  ;;  %v11297_v8 = vld [vmem:[#allocation39_spill] sm:$0xff] }
 0x2ff   : > { %v9654_v30 = vpop.xlane.xlu1 %2377  ;;  %v9656_v31 = vpop.xlane.xlu0 %2345  ;;  %7421 = vpow2.f32 %v2679_v12  ;;  %v11293_v12 = vld [vmem:[#allocation112_spill] sm:$0xff] }
 0x300   : > { %7423 = vpow2.f32 %v2647_v15  ;;  %v2651_v0 = vmul.f32 1.442695, %v2489_v19 }
 0x302   : > { %2449 = vmax.xlane.f32.xlu1 %v9650_v29  ;;  %2417 = vmax.xlane.f32.xlu0 %v9648_v26  ;;  %v11281_v29 = vld [vmem:[#allocation19_spill] sm:$0xff]  ;;  %v11282_v26 = vld [vmem:[#allocation34_spill] sm:$0xff] }
 0x303   : > { %v9668_v18 = vpop.xlane.xlu1 %2375  ;;  %v9670_v45 = vpop.xlane.xlu0 %2343  ;;  %v2506_v28 = vsub.f32 %v11282_v26, %v11281_v29  ;;  %11283 = vst [vmem:[#allocation19_spill] sm:$0xff] %v9678_v61  ;;  %11284 = vst [vmem:[#allocation34_spill] sm:$0xff] %v9680_v5  ;;  %v11287_v29 = vld [vmem:[#allocation20_spill] sm:$0xff] }
 0x304   : > { %11278 = vst [vmem:[#allocation32_spill] sm:$0xff] %v9670_v45  ;;  %v11288_v26 = vld [vmem:[#allocation36_spill] sm:$0xff] }
 0x305   : > { %v2685_v22 = vmul.f32 1.442695, %v2506_v28  ;;  %v2505_v51 = vsub.f32 %v11288_v26, %v11287_v29  ;;  %v2053_v28 = vmul.f32 0.088388346, %v11293_v12  ;;  %v9704_v26 = vpop.eup %7419  ;;  %v2492_v12 = vsub.f32 %v11297_v8, %v9407_v14  ;;  %v671_v8 = vld [vmem:[%s8438_s23 + $0x100] sm:$0xff] }
 0x306   : > { %2447 = vmax.xlane.f32.xlu1 %v9672_v63  ;;  %2415 = vmax.xlane.f32.xlu0 %v9674_v32  ;;  %v11294_v63 = vld [vmem:[#allocation110_spill] sm:$0xff]  ;;  %11295 = vst [vmem:[#allocation20_spill] sm:$0xff] %v9704_v26 }
 0x307   : > { %v9686_v45 = vpop.xlane.xlu1 %2381  ;;  %v9688_v60 = vpop.xlane.xlu0 %2349  ;;  %v2037_v29 = vmul.f32 0.088388346, %v11294_v63  ;;  %7425 = vpow2.f32 %v2685_v22  ;;  %v2683_v15 = vmul.f32 1.442695, %v2505_v51  ;;  %v7880_v22 = vld [vmem:[#allocation10 + $0x70] sm:$0xff] }
 0x308   : > { %7427 = vpow2.f32 %v2653_v20  ;;  %v9716_v51 = vadd.f32 %v7880_v22, %v2053_v28  ;;  %v11301_v20 = vld [vmem:[#allocation40_spill] sm:$0xff]  ;;  %v2657_v28 = vmul.f32 1.442695, %v2492_v12 }
 0x309   : > { %7429 = vpow2.f32 %v2683_v15  ;;  %v2507_v19 = vsub.f32 %v11301_v20, %v9422_v46  ;;  %v9738_v46 = vpop.eup %7421  ;;  %v11304_v20 = vld [vmem:[#allocation42_spill] sm:$0xff] }
 0x30a   : > { %2453 = vmax.xlane.f32.xlu1 %v9680_v5  ;;  %2421 = vmax.xlane.f32.xlu0 %v9678_v61  ;;  %v2508_v61 = vsub.f32 %v11296_v62, %v9405_v21  ;;  %11299 = vst [vmem:[#allocation21_spill] sm:$0xff] %v9716_v51  ;;  %v687_v21 = vld [vmem:[%s8438_s23 + $0x180] sm:$0xff]  ;;  %v688_v62 = vld [vmem:[%s8438_s23 + $0x188] sm:$0xff]  ;;  %7431 = vpow2.f32 %v2651_v0  ;;  %11303 = vst [vmem:[#allocation112_spill] sm:$0xff] %v9738_v46 }
 0x30b   : > { %v9696_v32 = vpop.xlane.xlu1 %2379  ;;  %v9698_v39 = vpop.xlane.xlu0 %2347  ;;  %v9726_v14 = vpack.c.bf16 %v688_v62, %v687_v21  ;;  %v11306_v0 = vld [vmem:[#allocation43_spill] sm:$0xff]  ;;  %v11307_v62 = vld [vmem:[#allocation44_spill] sm:$0xff] }
 0x30c   : > { %11291 = vst [vmem:[#allocation106_spill] sm:$0xff] %v9698_v39  ;;  %v9718_v39 = vadd.f32 %v7880_v22, %v2037_v29  ;;  %v11302_v29 = vld [vmem:[#allocation41_spill] sm:$0xff]  ;;  %v9743_v21 = vpop.eup %7423  ;;  %v2494_v12 = vsub.f32 %v11306_v0, %v9438_v13 }
 0x30d   : > { %v2491_v22 = vsub.f32 %v11302_v29, %v9424_v3  ;;  %7118 = vmatprep.subr.bf16.mxu1 %v9726_v14  ;;  %11305 = vst [vmem:[#allocation110_spill] sm:$0xff] %v9743_v21  ;;  %v2687_v3 = vmul.f32 1.442695, %v2507_v19  ;;  %v11312_v19 = vld [vmem:[#allocation46_spill] sm:$0xff] }
 0x30e   : > { %2937 = vadd.xlane.f32.xlu1 %v9700_v33  ;;  %2905 = vadd.xlane.f32.xlu0 %v9704_v26  ;;  %11300 = vst [vmem:[#allocation37_spill] sm:$0xff] %v9718_v39  ;;  %v2689_v26 = vmul.f32 1.442695, %v2508_v61  ;;  %v672_v33 = vld [vmem:[%s8438_s23 + $0x108] sm:$0xff]  ;;  %v2512_v0 = vsub.f32 %v11312_v19, %v9460_v56 }
 0x30f   : > { %v9712_v63 = vpop.xlane.xlu1 %2385  ;;  %v9714_v5 = vpop.xlane.xlu0 %2353  ;;  %v9736_v61 = vpack.c.bf16 %v672_v33, %v671_v8  ;;  %v2509_v33 = vsub.f32 %v11307_v62, %v9450_v1  ;;  %v11308_v8 = vld [vmem:[#allocation45_spill] sm:$0xff]  ;;  %v2661_v62 = vmul.f32 1.442695, %v2494_v12 }
 0x310   : > { %11298 = vst [vmem:[#allocation36_spill] sm:$0xff] %v9714_v5  ;;  %7433 = vpow2.f32 %v2689_v26  ;;  %v2493_v29 = vsub.f32 %v11308_v8, %v9452_v35  ;;  %v11315_v35 = vld [vmem:[#allocation48_spill] sm:$0xff] }
 0x311   : > { %7086 = vmatprep.subr.bf16.mxu0 %v9736_v61  ;;  %7435 = vpow2.f32 %v2657_v28  ;;  %v9758_v13 = vpop.eup %7425  ;;  %v2511_v8 = vsub.f32 %v11315_v35, %v9470_v40 }
 0x312   : > { %2451 = vmax.xlane.f32.xlu1 %v9716_v51  ;;  %2419 = vmax.xlane.f32.xlu0 %v9718_v39  ;;  %v2510_v39 = vsub.f32 %v11304_v20, %v9436_v37  ;;  %v2655_v37 = vmul.f32 1.442695, %v2491_v22  ;;  %11311 = vst [vmem:[#allocation40_spill] sm:$0xff] %v9758_v13  ;;  %v9762_v1 = vpop.eup %7427  ;;  %7437 = vpow2.f32 %v2687_v3  ;;  %v2691_v22 = vmul.f32 1.442695, %v2509_v33 }
 0x313   : > { %v9732_v5 = vpop.xlane.xlu1 %2383  ;;  %v9734_v15 = vpop.xlane.xlu0 %2351  ;;  %11313 = vst [vmem:[#allocation41_spill] sm:$0xff] %v9762_v1  ;;  %v2695_v40 = vmul.f32 1.442695, %v2511_v8 }
 0x314   : > { %v2693_v26 = vmul.f32 1.442695, %v2510_v39  ;;  %7439 = vpow2.f32 %v2655_v37  ;;  %v2659_v39 = vmul.f32 1.442695, %v2493_v29  ;;  %v9772_v12 = vpop.eup %7429  ;;  %v11322_v29 = vld [vmem:[#allocation50_spill] sm:$0xff] }
 0x315   : > { %11317 = vst [vmem:[#allocation42_spill] sm:$0xff] %v9772_v12 }
 0x316   : > { %2935 = vadd.xlane.f32.xlu1 %v9738_v46  ;;  %2903 = vadd.xlane.f32.xlu0 %v9743_v21  ;;  %v11314_v21 = vld [vmem:[#allocation47_spill] sm:$0xff]  ;;  %v11316_v46 = vld [vmem:[#allocation49_spill] sm:$0xff]  ;;  %7441 = vpow2.f32 %v2693_v26  ;;  %v2514_v26 = vsub.f32 %v11322_v29, %v9480_v23 }
 0x317   : > { %v9754_v20 = vpop.xlane.xlu1 %2389  ;;  %v9756_v51 = vpop.xlane.xlu0 %2357  ;;  %v2496_v28 = vsub.f32 %v11314_v21, %v9462_v11  ;;  %v2495_v56 = vsub.f32 %v11316_v46, %v9472_v27  ;;  %v2697_v11 = vmul.f32 1.442695, %v2512_v0  ;;  %7443 = vpow2.f32 %v2661_v62  ;;  %v11324_v62 = vld [vmem:[#allocation51_spill] sm:$0xff] }
 0x318   : > { %11309 = vst [vmem:[#allocation38_spill] sm:$0xff] %v9754_v20  ;;  %11310 = vst [vmem:[#allocation39_spill] sm:$0xff] %v9756_v51  ;;  %v9774_v21 = vpop.eup %7431  ;;  %7445 = vpow2.f32 %v2691_v22 }
 0x319   : > { %11318 = vst [vmem:[#allocation43_spill] sm:$0xff] %v9774_v21  ;;  %v2665_v3 = vmul.f32 1.442695, %v2496_v28  ;;  %7447 = vpow2.f32 %v2659_v39  ;;  %v2663_v33 = vmul.f32 1.442695, %v2495_v56  ;;  %v2498_v28 = vsub.f32 %v11324_v62, %v9482_v58  ;;  %v11328_v58 = vld [vmem:[#allocation52_spill] sm:$0xff] }
 0x31a   : > { %2941 = vadd.xlane.f32.xlu1 %v9758_v13  ;;  %2909 = vadd.xlane.f32.xlu0 %v9762_v1  ;;  %v9782_v46 = vpop.eup %7433  ;;  %7449 = vpow2.f32 %v2697_v11  ;;  %v2701_v39 = vmul.f32 1.442695, %v2514_v26 }
 0x31b   : > { %v2874_v19 = vpop.xlane.xlu1 %2873  ;;  %v2842_v51 = vpop.xlane.xlu0 %2841  ;;  %11321 = vst [vmem:[#allocation46_spill] sm:$0xff] %v9782_v46  ;;  %7451 = vpow2.f32 %v2665_v3  ;;  %v2669_v23 = vmul.f32 1.442695, %v2498_v28  ;;  %v2513_v3 = vsub.f32 %v11328_v58, %v9492_v38 }
 0x31c   : > { %v9786_v0 = vpop.eup %7435  ;;  %7453 = vpow2.f32 %v2695_v40 }
 0x31d   : > { %11323 = vst [vmem:[#allocation47_spill] sm:$0xff] %v9786_v0  ;;  %7455 = vpow2.f32 %v2663_v33  ;;  %v9792_v8 = vpop.eup %7437  ;;  %v11330_v33 = vld [vmem:[#allocation53_spill] sm:$0xff] }
 0x31e   : > { %2939 = vadd.xlane.f32.xlu1 %v9772_v12  ;;  %2907 = vadd.xlane.f32.xlu0 %v9774_v21  ;;  %11325 = vst [vmem:[#allocation48_spill] sm:$0xff] %v9792_v8  ;;  %7457 = vrcp.f32 %v2874_v19  ;;  %v9794_v56 = vpop.eup %7439  ;;  %v2497_v29 = vsub.f32 %v11330_v33, %v9494_v59  ;;  %v11340_v21 = vld [vmem:[#allocation93_spill] sm:$0xff] }
 0x31f   : > { %v9778_v37 = vpop.xlane.xlu1 %2387  ;;  %v9780_v27 = vpop.xlane.xlu0 %2355  ;;  %11326 = vst [vmem:[#allocation49_spill] sm:$0xff] %v9794_v56  ;;  %7459 = vrcp.f32 %v2842_v51  ;;  %v11332_v51 = vld [vmem:[#allocation54_spill] sm:$0xff] }
 0x320   : > { %11319 = vst [vmem:[#allocation44_spill] sm:$0xff] %v9778_v37  ;;  %11320 = vst [vmem:[#allocation45_spill] sm:$0xff] %v9780_v27  ;;  %v9796_v11 = vpop.eup %7441  ;;  %v2516_v28 = vsub.f32 %v11332_v51, %v9506_v36  ;;  %v2667_v36 = vmul.f32 1.442695, %v2497_v29  ;;  %v3223_v51 = vld [vmem:[%s8441_s14] sm:$0xff]  ;;  %v11336_v29 = vld [vmem:[#allocation56_spill] sm:$0xff] }
 0x321   : > { %11327 = vst [vmem:[#allocation50_spill] sm:$0xff] %v9796_v11  ;;  %v9802_v40 = vpop.eup %7443  ;;  %vm3351_vm1 = vcmp.ge.u32.totalorder %v3223_v51, 0  ;;  %v11341_v27 = vld [vmem:[#allocation96_spill] sm:$0xff] }
 0x322   : > { %2945 = vadd.xlane.f32.xlu1 %v9782_v46  ;;  %2913 = vadd.xlane.f32.xlu0 %v9786_v0  ;;  %11329 = vst [vmem:[#allocation51_spill] sm:$0xff] %v9802_v40  ;;  %v9806_v62 = vpop.eup %7445  ;;  %v2699_v46 = vmul.f32 1.442695, %v2513_v3 }
 0x323   : > { %v2872_v22 = vpop.xlane.xlu1 %2871  ;;  %v2840_v35 = vpop.xlane.xlu0 %2839  ;;  %11331 = vst [vmem:[#allocation52_spill] sm:$0xff] %v9806_v62 }
 0x324   : > { %7461 = vrcp.f32 %v2872_v22  ;;  %v9810_v38 = vpop.eup %7447  ;;  %v11334_v22 = vld [vmem:[#allocation55_spill] sm:$0xff] }
 0x325   : > { %7463 = vrcp.f32 %v2840_v35  ;;  %11333 = vst [vmem:[#allocation53_spill] sm:$0xff] %v9810_v38  ;;  %v2500_v58 = vsub.f32 %v11334_v22, %v9508_v41  ;;  %v9814_v0 = vpop.eup %7449  ;;  %v2705_v41 = vmul.f32 1.442695, %v2516_v28  ;;  %v3240_v22 = vld [vmem:[%s8441_s14 + $0x88] sm:$0xff] }
 0x326   : > { %2943 = vadd.xlane.f32.xlu1 %v9792_v8  ;;  %2911 = vadd.xlane.f32.xlu0 %v9794_v56  ;;  %7465 = vpow2.f32 %v2701_v39  ;;  %v9818_v59 = vpop.eup %7451  ;;  %v3224_v28 = vld [vmem:[%s8441_s14 + $0x8] sm:$0xff]  ;;  %vm3368_vm2 = vcmp.ge.u32.totalorder %v3240_v22, 0 }
 0x327   : > { %v2878_v19 = vpop.xlane.xlu1 %2877  ;;  %v2846_v26 = vpop.xlane.xlu0 %2845  ;;  %7467 = vpow2.f32 %v2669_v23  ;;  %11335 = vst [vmem:[#allocation54_spill] sm:$0xff] %v9818_v59  ;;  %v2673_v3 = vmul.f32 1.442695, %v2500_v58  ;;  %v11337_v58 = vld [vmem:[#allocation57_spill] sm:$0xff]  ;;  %vm3352_vm3 = vcmp.ge.u32.totalorder %v3224_v28, 0  ;;  %v676_v28 = vld [vmem:[%s8438_s23 + $0x128] sm:$0xff] }
 0x328   : > { %7469 = vrcp.f32 %v2878_v19  ;;  %v9820_v23 = vpop.eup %7453  ;;  %v3239_v19 = vld [vmem:[%s8441_s14 + $0x80] sm:$0xff] }
 0x329   : > { %7471 = vrcp.f32 %v2846_v26  ;;  %v9822_v33 = vpop.eup %7455  ;;  %v2515_v26 = vsub.f32 %v11336_v29, %v9516_v17  ;;  %vm3367_vm0 = vcmp.ge.u32.totalorder %v3239_v19, 0  ;;  %v689_v17 = vld [vmem:[%s8438_s23 + $0x190] sm:$0xff]  ;;  %v691_v19 = vld [vmem:[%s8438_s23 + $0x1a0] sm:$0xff] }
 0x32a   : > { %2949 = vadd.xlane.f32.xlu1 %v9796_v11  ;;  %2917 = vadd.xlane.f32.xlu0 %v9802_v40  ;;  %v7458_v11 = vpop.eup %7457 }
 0x32b   : > { %v2876_v35 = vpop.xlane.xlu1 %2875  ;;  %v2844_v39 = vpop.xlane.xlu0 %2843  ;;  %v3496_v12 = vmul.f32 %v7458_v11, %v11340_v21  ;;  %v3225_v21 = vld [vmem:[%s8441_s14 + $0x10] sm:$0xff]  ;;  %v3242_v11 = vld [vmem:[%s8441_s14 + $0x98] sm:$0xff] }
 0x32c   : > { %7473 = vrcp.f32 %v2876_v35  ;;  %v7460_v35 = vpop.eup %7459  ;;  %vm3353_vm5 = vcmp.ge.u32.totalorder %v3225_v21, 0  ;;  %vm3370_vm6 = vcmp.ge.u32.totalorder %v3242_v11, 0 }
 0x32d   : > { %7475 = vrcp.f32 %v2844_v39  ;;  %v2499_v39 = vsub.f32 %v11337_v58, %v9518_v25  ;;  %v673_v25 = vld [vmem:[%s8438_s23 + $0x110] sm:$0xff]  ;;  %v674_v58 = vld [vmem:[%s8438_s23 + $0x118] sm:$0xff] }
 0x32e   : > { %7477 = vpow2.f32 %v2699_v46  ;;  %2947 = vadd.xlane.f32.xlu1 %v9806_v62  ;;  %2915 = vadd.xlane.f32.xlu0 %v9810_v38  ;;  %v7462_v8 = vpop.eup %7461  ;;  %v690_v46 = vld [vmem:[%s8438_s23 + $0x198] sm:$0xff]  ;;  %v11339_v62 = vld [vmem:[#allocation97_spill] sm:$0xff] }
 0x32f   : > { %7479 = vpow2.f32 %v2667_v36  ;;  %v2882_v40 = vpop.xlane.xlu1 %2881  ;;  %v2850_v56 = vpop.xlane.xlu0 %2849  ;;  %v11338_v38 = vld [vmem:[#allocation58_spill] sm:$0xff]  ;;  %v3495_v1 = vmul.f32 %v7462_v8, %v11339_v62  ;;  %v2671_v62 = vmul.f32 1.442695, %v2499_v39  ;;  %v9857_v39 = vpack.c.bf16 %v674_v58, %v673_v25  ;;  %v11345_v25 = vld [vmem:[#allocation100_spill] sm:$0xff] }
 0x330   : > { %7481 = vpow2.f32 %v2705_v41  ;;  %v7464_v29 = vpop.eup %7463  ;;  %v2518_v36 = vsub.f32 %v11338_v38, %v9530_v50  ;;  %v2703_v41 = vmul.f32 1.442695, %v2515_v26  ;;  %v3241_v50 = vld [vmem:[%s8441_s14 + $0x90] sm:$0xff]  ;;  %v11342_v38 = vld [vmem:[#allocation92_spill] sm:$0xff] }
 0x331   : > { %7483 = vpow2.f32 %v2673_v3  ;;  %v9841_v13 = vpop.eup %7465  ;;  %v3479_v3 = vmul.f32 %v7464_v29, %v11341_v27  ;;  %v3480_v37 = vmul.f32 %v7460_v35, %v11342_v38  ;;  %6405 = vmatprep.mubr.msk.f32.mxu1 %vm3367_vm0, %v3495_v1  ;;  %v3226_v29 = vld [vmem:[%s8441_s14 + $0x18] sm:$0xff]  ;;  %vm3369_vm4 = vcmp.ge.u32.totalorder %v3241_v50, 0  ;;  %v692_v35 = vld [vmem:[%s8438_s23 + $0x1a8] sm:$0xff]  ;;  %v11347_v38 = vld [vmem:[#allocation63_spill] sm:$0xff] }
 0x332   : > { %7485 = vrcp.f32 %v2882_v40  ;;  %2953 = vadd.xlane.f32.xlu1 %v9814_v0  ;;  %2921 = vadd.xlane.f32.xlu0 %v9818_v59  ;;  %v9848_v8 = vpop.eup %7467  ;;  %v7121_v40 = vpack.c.bf16 %v690_v46, %v689_v17  ;;  %v2709_v1 = vmul.f32 1.442695, %v2518_v36  ;;  %v675_v17 = vld [vmem:[%s8438_s23 + $0x120] sm:$0xff]  ;;  %vm3354_vm7 = vcmp.ge.u32.totalorder %v3226_v29, 0  ;;  %v678_v50 = vld [vmem:[%s8438_s23 + $0x138] sm:$0xff] }
 0x333   : > { %7487 = vrcp.f32 %v2850_v56  ;;  %v2880_v26 = vpop.xlane.xlu1 %2879  ;;  %v2848_v20 = vpop.xlane.xlu0 %2847  ;;  %6349 = vmatprep.mubr.msk.f32.mxu0 %vm3351_vm1, %v3479_v3  ;;  %6406 = vmatmul.mubr.msk.f32.vlgmr.msra.gmra.mrb[64].mxu1 %vm3368_vm2, %v3496_v12  ;;  %v11343_v12 = vld [vmem:[#allocation59_spill] sm:$0xff] }
 0x334   : > { %v7470_v27 = vpop.eup %7469  ;;  %7489 = vrcp.f32 %v2880_v26  ;;  %6350 = vmatmul.mubr.msk.f32.vlgmr.msra.gmra.mrb[64].mxu0 %vm3352_vm3, %v3480_v37  ;;  %7120 = vmatpush3.bf16.msra.mxu1 %v9726_v14  ;;  %v2502_v22 = vsub.f32 %v11343_v12, %v9532_v7  ;;  %v11344_v14 = vld [vmem:[#allocation60_spill] sm:$0xff]  ;;  %v2536_v26 = vsub.f32 %v11347_v38, %v9554_v9  ;;  %v7093_v9 = vpack.c.bf16 %v676_v28, %v675_v17 }
 0x335   : > { %v7472_v56 = vpop.eup %7471  ;;  %7491 = vrcp.f32 %v2848_v20  ;;  %v2517_v37 = vsub.f32 %v11344_v14, %v9540_v24  ;;  %7088 = vmatpush3.bf16.msra.mxu0 %v9736_v61  ;;  %7122 = vmatprep.subr.bf16.mxu1 %v7121_v40  ;;  %v7125_v24 = vpack.c.bf16 %v692_v35, %v691_v19  ;;  %v694_v14 = vld [vmem:[%s8438_s23 + $0x1b8] sm:$0xff]  ;;  %v3243_v35 = vld [vmem:[%s8441_s14 + $0xa0] sm:$0xff]  ;;  %v3244_v17 = vld [vmem:[%s8441_s14 + $0xa8] sm:$0xff] }
 0x336   : > { %v7474_v51 = vpop.eup %7473  ;;  %7493 = vpow2.f32 %v2703_v41  ;;  %2951 = vadd.xlane.f32.xlu1 %v9820_v23  ;;  %2919 = vadd.xlane.f32.xlu0 %v9822_v33  ;;  %v11346_v41 = vld [vmem:[#allocation61_spill] sm:$0xff]  ;;  %v2677_v19 = vmul.f32 1.442695, %v2502_v22  ;;  %v3227_v22 = vld [vmem:[%s8441_s14 + $0x20] sm:$0xff]  ;;  %v3228_v38 = vld [vmem:[%s8441_s14 + $0x28] sm:$0xff]  ;;  %vm3371_vm8 = vcmp.ge.u32.totalorder %v3243_v35, 0 }
 0x337   : > { %v7476_v20 = vpop.eup %7475  ;;  %7495 = vpow2.f32 %v2671_v62  ;;  %v2886_v46 = vpop.xlane.xlu1 %2885  ;;  %v3497_v58 = vmul.f32 %v7474_v51, %v11345_v25  ;;  %v2501_v3 = vsub.f32 %v11346_v41, %v9542_v53  ;;  %v11348_v62 = vld [vmem:[#allocation101_spill] sm:$0xff]  ;;  %7090 = vmatprep.subr.bf16.mxu0 %v9857_v39  ;;  %v11349_v25 = vld [vmem:[#allocation98_spill] sm:$0xff]  ;;  %v11350_v41 = vld [vmem:[#allocation99_spill] sm:$0xff]  ;;  %vm3355_vm9 = vcmp.ge.u32.totalorder %v3227_v22, 0 }
 0x338   : > { %v2854_v36 = vpop.xlane.xlu0 %2853  ;;  %v9873_v7 = vpop.eup %7477  ;;  %v3481_v12 = vmul.f32 %v7476_v20, %v11348_v62  ;;  %v693_v51 = vld [vmem:[%s8438_s23 + $0x1b0] sm:$0xff]  ;;  %7497 = vpow2.f32 %v2709_v1  ;;  %v3498_v53 = vmul.f32 %v7470_v27, %v11349_v25  ;;  %v3482_v59 = vmul.f32 %v7472_v56, %v11350_v41  ;;  %7124 = vmatpush3.bf16.msra.mxu1 %v7121_v40  ;;  %v696_v62 = vld [vmem:[%s8438_s23 + $0x1c8] sm:$0xff] }
 0x339   : > { %v9883_v61 = vpop.eup %7479  ;;  %6408 = vmatprep.mubr.msk.f32.mxu1 %vm3369_vm4, %v3497_v58  ;;  %7499 = vrcp.f32 %v2886_v46  ;;  %v677_v1 = vld [vmem:[%s8438_s23 + $0x130] sm:$0xff]  ;;  %v2707_v27 = vmul.f32 1.442695, %v2517_v37  ;;  %v9901_v28 = vpack.c.bf16 %v694_v14, %v693_v51  ;;  %v2675_v46 = vmul.f32 1.442695, %v2501_v3  ;;  %7092 = vmatpush3.bf16.msra.mxu0 %v9857_v39  ;;  %v695_v39 = vld [vmem:[%s8438_s23 + $0x1c0] sm:$0xff] }
 0x33a   : > { %v9888_v20 = vpop.eup %7481  ;;  %2957 = vadd.xlane.f32.xlu1 %v9841_v13  ;;  %6352 = vmatprep.mubr.msk.f32.mxu0 %vm3353_vm5, %v3481_v12  ;;  %7501 = vrcp.f32 %v2854_v36  ;;  %v2745_v37 = vmul.f32 1.442695, %v2536_v26  ;;  %v11352_v36 = vld [vmem:[#allocation62_spill] sm:$0xff]  ;;  %vm3372_vm10 = vcmp.ge.u32.totalorder %v3244_v17, 0  ;;  %v11353_v12 = vld [vmem:[#allocation64_spill] sm:$0xff]  ;;  %vm3356_vm11 = vcmp.ge.u32.totalorder %v3228_v38, 0 }
 0x33b   : > { %v9895_v58 = vpop.eup %7483  ;;  %6409 = vmatmul.mubr.msk.f32.gmra.mrb[66].mxu1 %vm3370_vm6, %v3498_v53  ;;  %v2884_v40 = vpop.xlane.xlu1 %2883  ;;  %6353 = vmatmul.mubr.msk.f32.gmra.mrb[66].mxu0 %vm3354_vm7, %v3482_v59  ;;  %v7097_v59 = vpack.c.bf16 %v678_v50, %v677_v1  ;;  %v2520_v3 = vsub.f32 %v11352_v36, %v9556_v43  ;;  %v2535_v51 = vsub.f32 %v11353_v12, %v9564_v54  ;;  %v11354_v53 = vld [vmem:[#allocation104_spill] sm:$0xff]  ;;  %v679_v43 = vld [vmem:[%s8438_s23 + $0x140] sm:$0xff]  ;;  %v11357_v54 = vld [vmem:[#allocation105_spill] sm:$0xff] }
 0x33c   : > { %11351 = vst [vmem:[#allocation55_spill] sm:$0xff] %v9895_v58  ;;  %v2852_v56 = vpop.xlane.xlu0 %2851  ;;  %v7486_v21 = vpop.eup %7485  ;;  %7503 = vrcp.f32 %v2884_v40  ;;  %2925 = vadd.xlane.f32.xlu0 %v9848_v8  ;;  %7126 = vmatprep.subr.bf16.mxu1 %v7125_v24  ;;  %v11358_v36 = vld [vmem:[#allocation102_spill] sm:$0xff]  ;;  %v697_v38 = vld [vmem:[%s8438_s23 + $0x1d0] sm:$0xff] }
 0x33d   : > { %v7488_v11 = vpop.eup %7487  ;;  %7505 = vrcp.f32 %v2852_v56  ;;  %7094 = vmatprep.subr.bf16.mxu0 %v7093_v9  ;;  %7128 = vmatpush3.bf16.msra.mxu1 %v7125_v24  ;;  %v11355_v24 = vld [vmem:[#allocation65_spill] sm:$0xff]  ;;  %v3500_v12 = vmul.f32 %v7486_v21, %v11358_v36  ;;  %v2743_v35 = vmul.f32 1.442695, %v2535_v51 }
 0x33e   : > { %v7490_v29 = vpop.eup %7489  ;;  %7507 = vpow2.f32 %v2677_v19  ;;  %2955 = vadd.xlane.f32.xlu1 %v9873_v7  ;;  %7130 = vmatprep.subr.bf16.mxu1 %v9901_v28  ;;  %v680_v19 = vld [vmem:[%s8438_s23 + $0x148] sm:$0xff]  ;;  %v2519_v50 = vsub.f32 %v11355_v24, %v9566_v42  ;;  %v7133_v42 = vpack.c.bf16 %v696_v62, %v695_v39  ;;  %v2713_v24 = vmul.f32 1.442695, %v2520_v3  ;;  %v3229_v3 = vld [vmem:[%s8441_s14 + $0x30] sm:$0xff]  ;;  %v3246_v39 = vld [vmem:[%s8441_s14 + $0xb8] sm:$0xff] }
 0x33f   : > { %v7492_v26 = vpop.eup %7491  ;;  %7509 = vpow2.f32 %v2707_v27  ;;  %v2890_v14 = vpop.xlane.xlu1 %2889  ;;  %v3499_v41 = vmul.f32 %v7490_v29, %v11354_v53  ;;  %v11356_v27 = vld [vmem:[#allocation66_spill] sm:$0xff]  ;;  %7096 = vmatpush3.bf16.msra.mxu0 %v7093_v9  ;;  %v7101_v9 = vpack.c.bf16 %v680_v19, %v679_v43  ;;  %vm3357_vm13 = vcmp.ge.u32.totalorder %v3229_v3, 0 }
 0x340   : > { %v2858_v25 = vpop.xlane.xlu0 %2857  ;;  %v9917_v1 = vpop.eup %7493  ;;  %7511 = vpow2.f32 %v2675_v46  ;;  %v2538_v40 = vsub.f32 %v11356_v27, %v9578_v34  ;;  %2923 = vadd.xlane.f32.xlu0 %v9883_v61  ;;  %v3483_v56 = vmul.f32 %v7492_v26, %v11357_v54  ;;  %v11359_v46 = vld [vmem:[#allocation103_spill] sm:$0xff]  ;;  %7098 = vmatprep.subr.bf16.mxu0 %v7097_v59  ;;  %v3245_v34 = vld [vmem:[%s8441_s14 + $0xb0] sm:$0xff]  ;;  %v2711_v22 = vmul.f32 1.442695, %v2519_v50  ;;  %v3230_v26 = vld [vmem:[%s8441_s14 + $0x38] sm:$0xff] }
 0x341   : > { %v9925_v29 = vpop.eup %7495  ;;  %7513 = vpow2.f32 %v2745_v37  ;;  %6411 = vmatprep.mubr.msk.f32.mxu1 %vm3371_vm8, %v3499_v41  ;;  %v3484_v53 = vmul.f32 %v7488_v11, %v11359_v46  ;;  %7132 = vmatpush3.bf16.msra.mxu1 %v9901_v28  ;;  %vm3373_vm12 = vcmp.ge.u32.totalorder %v3245_v34, 0  ;;  %v11360_v41 = vld [vmem:[#allocation67_spill] sm:$0xff]  ;;  %vm3374_vm14 = vcmp.ge.u32.totalorder %v3246_v39, 0  ;;  %v681_v28 = vld [vmem:[%s8438_s23 + $0x150] sm:$0xff]  ;;  %v682_v19 = vld [vmem:[%s8438_s23 + $0x158] sm:$0xff] }
 0x342   : > { %7515 = vrcp.f32 %v2890_v14  ;;  %2961 = vadd.xlane.f32.xlu1 %v9888_v20  ;;  %6355 = vmatprep.mubr.msk.f32.mxu0 %vm3355_vm9, %v3483_v56  ;;  %v9933_v37 = vpop.eup %7497  ;;  %v2749_v17 = vmul.f32 1.442695, %v2538_v40  ;;  %v698_v14 = vld [vmem:[%s8438_s23 + $0x1d8] sm:$0xff]  ;;  %v2522_v43 = vsub.f32 %v11360_v41, %v9580_v57  ;;  %v11362_v56 = vld [vmem:[#allocation109_spill] sm:$0xff]  ;;  %vm3358_vm15 = vcmp.ge.u32.totalorder %v3230_v26, 0  ;;  %v699_v57 = vld [vmem:[%s8438_s23 + $0x1e0] sm:$0xff] }
 0x343   : > { %7517 = vrcp.f32 %v2858_v25  ;;  %6412 = vmatmul.mubr.msk.f32.gmra.mrb[68].mxu1 %vm3372_vm10, %v3500_v12  ;;  %v2888_v21 = vpop.xlane.xlu1 %2887  ;;  %6356 = vmatmul.mubr.msk.f32.gmra.mrb[68].mxu0 %vm3356_vm11, %v3484_v53  ;;  %v7500_v62 = vpop.eup %7499  ;;  %v11363_v46 = vld [vmem:[#allocation69_spill] sm:$0xff]  ;;  %v684_v41 = vld [vmem:[%s8438_s23 + $0x168] sm:$0xff]  ;;  %v702_v26 = vld [vmem:[%s8438_s23 + $0x1f8] sm:$0xff] }
 0x344   : > { %v2856_v11 = vpop.xlane.xlu0 %2855  ;;  %7519 = vrcp.f32 %v2888_v21  ;;  %2929 = vadd.xlane.f32.xlu0 %v9895_v58  ;;  %v7502_v51 = vpop.eup %7501  ;;  %7100 = vmatpush3.bf16.msra.mxu0 %v7097_v59  ;;  %v11361_v59 = vld [vmem:[#allocation68_spill] sm:$0xff]  ;;  %v2521_v53 = vsub.f32 %v11363_v46, %v9590_v6  ;;  %v7137_v21 = vpack.c.bf16 %v698_v14, %v697_v38  ;;  %v7105_v6 = vpack.c.bf16 %v682_v19, %v681_v28  ;;  %v686_v46 = vld [vmem:[%s8438_s23 + $0x178] sm:$0xff] }
 0x345   : > { %7521 = vrcp.f32 %v2856_v11  ;;  %7134 = vmatprep.subr.bf16.mxu1 %v7133_v42  ;;  %7102 = vmatprep.subr.bf16.mxu0 %v7101_v9  ;;  %v2537_v27 = vsub.f32 %v11361_v59, %v9588_v10  ;;  %v700_v10 = vld [vmem:[%s8438_s23 + $0x1e8] sm:$0xff]  ;;  %v683_v11 = vld [vmem:[%s8438_s23 + $0x160] sm:$0xff] }
 0x346   : > { %v7504_v25 = vpop.eup %7503  ;;  %7523 = vpow2.f32 %v2713_v24  ;;  %2959 = vadd.xlane.f32.xlu1 %v9917_v1  ;;  %v11364_v24 = vld [vmem:[#allocation111_spill] sm:$0xff]  ;;  %7136 = vmatpush3.bf16.msra.mxu1 %v7133_v42  ;;  %v2717_v42 = vmul.f32 1.442695, %v2522_v43  ;;  %v3248_v14 = vld [vmem:[%s8441_s14 + $0xc8] sm:$0xff]  ;;  %v7141_v43 = vpack.c.bf16 %v700_v10, %v699_v57  ;;  %v9978_v28 = vpack.c.bf16 %v684_v41, %v683_v11  ;;  %v685_v57 = vld [vmem:[%s8438_s23 + $0x170] sm:$0xff] }
 0x347   : > { %v7506_v50 = vpop.eup %7505  ;;  %7525 = vpow2.f32 %v2743_v35  ;;  %v2894_v40 = vpop.xlane.xlu1 %2893  ;;  %v3501_v36 = vmul.f32 %v7504_v25, %v11362_v56  ;;  %v11365_v25 = vld [vmem:[#allocation107_spill] sm:$0xff]  ;;  %v11366_v56 = vld [vmem:[#allocation108_spill] sm:$0xff]  ;;  %v2747_v38 = vmul.f32 1.442695, %v2537_v27  ;;  %7138 = vmatprep.subr.bf16.mxu1 %v7137_v21  ;;  %v2715_v27 = vmul.f32 1.442695, %v2521_v53 }
 0x348   : > { %v2862_v54 = vpop.xlane.xlu0 %2861  ;;  %v9953_v12 = vpop.eup %7507  ;;  %7527 = vpow2.f32 %v2711_v22  ;;  %2927 = vadd.xlane.f32.xlu0 %v9925_v29  ;;  %v3485_v35 = vmul.f32 %v7506_v50, %v11364_v24  ;;  %v3502_v22 = vmul.f32 %v7500_v62, %v11365_v25  ;;  %v3486_v58 = vmul.f32 %v7502_v51, %v11366_v56  ;;  %7104 = vmatpush3.bf16.msra.mxu0 %v7101_v9  ;;  %v3231_v51 = vld [vmem:[%s8441_s14 + $0x40] sm:$0xff]  ;;  %v3232_v19 = vld [vmem:[%s8441_s14 + $0x48] sm:$0xff] }
 0x349   : > { %v9962_v59 = vpop.eup %7509  ;;  %7529 = vpow2.f32 %v2749_v17  ;;  %6414 = vmatprep.mubr.msk.f32.mxu1 %vm3373_vm12, %v3501_v36  ;;  %v3247_v17 = vld [vmem:[%s8441_s14 + $0xc0] sm:$0xff]  ;;  %7106 = vmatprep.subr.bf16.mxu0 %v7105_v6  ;;  %vm3359_vm1 = vcmp.ge.u32.totalorder %v3231_v51, 0  ;;  %vm3376_vm2 = vcmp.ge.u32.totalorder %v3248_v14, 0  ;;  %vm3360_vm3 = vcmp.ge.u32.totalorder %v3232_v19, 0  ;;  %v11369_v41 = vld [vmem:[#allocation72_spill] sm:$0xff]  ;;  %v3234_v19 = vld [vmem:[%s8441_s14 + $0x58] sm:$0xff] }
 0x34a   : > { %v9967_v50 = vpop.eup %7511  ;;  %7531 = vrcp.f32 %v2894_v40  ;;  %2965 = vadd.xlane.f32.xlu1 %v9933_v37  ;;  %6358 = vmatprep.mubr.msk.f32.mxu0 %vm3357_vm13, %v3485_v35  ;;  %vm3375_vm0 = vcmp.ge.u32.totalorder %v3247_v17, 0  ;;  %v11368_v53 = vld [vmem:[#allocation71_spill] sm:$0xff]  ;;  %v2539_v25 = vsub.f32 %v11369_v41, %v9612_v2  ;;  %v7113_v2 = vpack.c.bf16 %v686_v46, %v685_v57  ;;  %v3233_v46 = vld [vmem:[%s8441_s14 + $0x50] sm:$0xff] }
 0x34b   : > { %v9972_v34 = vpop.eup %7513  ;;  %7533 = vrcp.f32 %v2862_v54  ;;  %6415 = vmatmul.mubr.msk.f32.gmra.mrb[70].mxu1 %vm3374_vm14, %v3502_v22  ;;  %v2892_v62 = vpop.xlane.xlu1 %2891  ;;  %6359 = vmatmul.mubr.msk.f32.gmra.mrb[70].mxu0 %vm3358_vm15, %v3486_v58  ;;  %v701_v58 = vld [vmem:[%s8438_s23 + $0x1f0] sm:$0xff]  ;;  %v11367_v54 = vld [vmem:[#allocation70_spill] sm:$0xff]  ;;  %v2524_v35 = vsub.f32 %v11368_v53, %v9604_v48  ;;  %v703_v17 = vld [vmem:[%s8438_s23 + $0x200] sm:$0xff]  ;;  %vm3361_vm5 = vcmp.ge.u32.totalorder %v3233_v46, 0  ;;  %vm3362_vm7 = vcmp.ge.u32.totalorder %v3234_v19, 0 }
 0x34c   : > { %v2860_v9 = vpop.xlane.xlu0 %2859  ;;  %v7516_v3 = vpop.eup %7515  ;;  %7535 = vrcp.f32 %v2892_v62  ;;  %2933 = vadd.xlane.f32.xlu0 %v9953_v12  ;;  %7140 = vmatpush3.bf16.msra.mxu1 %v7137_v21  ;;  %v2540_v36 = vsub.f32 %v11367_v54, %v9602_v49  ;;  %v11370_v22 = vld [vmem:[#allocation73_spill] sm:$0xff]  ;;  %v11372_v62 = vld [vmem:[#allocation23_spill] sm:$0xff]  ;;  %v2751_v57 = vmul.f32 1.442695, %v2539_v25  ;;  %v3250_v53 = vld [vmem:[%s8441_s14 + $0xd8] sm:$0xff] }
 0x34d   : > { %v7518_v39 = vpop.eup %7517  ;;  %7537 = vrcp.f32 %v2860_v9  ;;  %7108 = vmatpush3.bf16.msra.mxu0 %v7105_v6  ;;  %7142 = vmatprep.subr.bf16.mxu1 %v7141_v43  ;;  %v2523_v56 = vsub.f32 %v11370_v22, %v9614_v55  ;;  %v720_v55 = vld [vmem:[%s8438_s23 + $0x288] sm:$0xff]  ;;  %v11374_v22 = vld [vmem:[#allocation26_spill] sm:$0xff]  ;;  %vm3378_vm6 = vcmp.ge.u32.totalorder %v3250_v53, 0 }
 0x34e   : > { %v7520_v40 = vpop.eup %7519  ;;  %7539 = vpow2.f32 %v2717_v42  ;;  %2963 = vadd.xlane.f32.xlu1 %v9962_v59  ;;  %7110 = vmatprep.subr.bf16.mxu0 %v9978_v28  ;;  %v11371_v42 = vld [vmem:[#allocation22_spill] sm:$0xff]  ;;  %v3488_v9 = vmul.f32 %v7518_v39, %v11372_v62  ;;  %v11377_v62 = vld [vmem:[#allocation75_spill] sm:$0xff] }
 0x34f   : > { %v7522_v24 = vpop.eup %7521  ;;  %7541 = vpow2.f32 %v2747_v38  ;;  %v2898_v21 = vpop.xlane.xlu1 %2897  ;;  %v3503_v11 = vmul.f32 %v7520_v40, %v9426_v52  ;;  %v7145_v52 = vpack.c.bf16 %v702_v26, %v701_v58  ;;  %v3504_v38 = vmul.f32 %v7516_v3, %v11371_v42  ;;  %v719_v40 = vld [vmem:[%s8438_s23 + $0x280] sm:$0xff]  ;;  %v3249_v58 = vld [vmem:[%s8441_s14 + $0xd0] sm:$0xff] }
 0x350   : > { %v2866_v10 = vpop.xlane.xlu0 %2865  ;;  %v9993_v49 = vpop.eup %7523  ;;  %2931 = vadd.xlane.f32.xlu0 %v9967_v50  ;;  %v3487_v48 = vmul.f32 %v7522_v24, %v9428_v4  ;;  %7543 = vpow2.f32 %v2715_v27  ;;  %7144 = vmatpush3.bf16.msra.mxu1 %v7141_v43  ;;  %v2753_v4 = vmul.f32 1.442695, %v2540_v36  ;;  %v2721_v3 = vmul.f32 1.442695, %v2524_v35  ;;  %v704_v36 = vld [vmem:[%s8438_s23 + $0x208] sm:$0xff]  ;;  %v11375_v42 = vld [vmem:[#allocation27_spill] sm:$0xff] }
 0x351   : > { %v10001_v6 = vpop.eup %7525  ;;  %6417 = vmatprep.mubr.msk.f32.mxu1 %vm3375_vm0, %v3503_v11  ;;  %7545 = vrcp.f32 %v2898_v21  ;;  %v10018_v26 = vpack.c.bf16 %v720_v55, %v719_v40  ;;  %7112 = vmatpush3.bf16.msra.mxu0 %v9978_v28  ;;  %v2719_v24 = vmul.f32 1.442695, %v2523_v56  ;;  %v10026_v35 = vpack.c.bf16 %v704_v36, %v703_v17  ;;  %v11373_v11 = vld [vmem:[#allocation74_spill] sm:$0xff]  ;;  %v11378_v40 = vld [vmem:[#allocation24_spill] sm:$0xff] }
 0x352   : > { %v10008_v54 = vpop.eup %7527  ;;  %3001 = vadd.xlane.f32.xlu1 %v9972_v34  ;;  %6361 = vmatprep.mubr.msk.f32.mxu0 %vm3359_vm1, %v3487_v48  ;;  %7547 = vrcp.f32 %v2866_v10  ;;  %vm3377_vm4 = vcmp.ge.u32.totalorder %v3249_v58, 0  ;;  %v2542_v28 = vsub.f32 %v11373_v11, %v9626_v16  ;;  %v11376_v16 = vld [vmem:[#allocation141_spill] sm:$0xff]  ;;  %v3236_v11 = vld [vmem:[%s8441_s14 + $0x68] sm:$0xff] }
 0x353   : > { %v10013_v27 = vpop.eup %7529  ;;  %6418 = vmatmul.mubr.msk.f32.gmra.mrb[72].mxu1 %vm3376_vm2, %v3504_v38  ;;  %v2896_v43 = vpop.xlane.xlu1 %2895  ;;  %6362 = vmatmul.mubr.msk.f32.gmra.mrb[72].mxu0 %vm3360_vm3, %v3488_v9  ;;  %v2526_v9 = vsub.f32 %v11377_v62, %v11376_v16  ;;  %v11384_v16 = vld [vmem:[#allocation79_spill] sm:$0xff]  ;;  %vm3364_vm11 = vcmp.ge.u32.totalorder %v3236_v11, 0 }
 0x354   : > { %v2864_v39 = vpop.xlane.xlu0 %2863  ;;  %v7532_v51 = vpop.eup %7531  ;;  %7549 = vrcp.f32 %v2896_v43  ;;  %2969 = vadd.xlane.f32.xlu0 %v9993_v49  ;;  %7146 = vmatprep.subr.bf16.mxu1 %v7145_v52  ;;  %v11380_v43 = vld [vmem:[#allocation76_spill] sm:$0xff]  ;;  %v2528_v62 = vsub.f32 %v11384_v16, %v9656_v31 }
 0x355   : > { %v7534_v14 = vpop.eup %7533  ;;  %7551 = vrcp.f32 %v2864_v39  ;;  %7114 = vmatprep.subr.bf16.mxu0 %v7113_v2  ;;  %7148 = vmatpush3.bf16.msra.mxu1 %v7145_v52  ;;  %v3506_v55 = vmul.f32 %v7532_v51, %v11378_v40  ;;  %v2541_v39 = vsub.f32 %v11380_v43, %v9640_v44  ;;  %v3251_v51 = vld [vmem:[%s8441_s14 + $0xe0] sm:$0xff]  ;;  %v3252_v44 = vld [vmem:[%s8441_s14 + $0xe8] sm:$0xff] }
 0x356   : > { %v7536_v21 = vpop.eup %7535  ;;  %7553 = vpow2.f32 %v2753_v4  ;;  %2999 = vadd.xlane.f32.xlu1 %v10001_v6  ;;  %7182 = vmatprep.subr.bf16.mxu1 %v10018_v26  ;;  %v11379_v4 = vld [vmem:[#allocation25_spill] sm:$0xff]  ;;  %vm3379_vm8 = vcmp.ge.u32.totalorder %v3251_v51, 0  ;;  %vm3380_vm10 = vcmp.ge.u32.totalorder %v3252_v44, 0 }
 0x357   : > { %v7538_v10 = vpop.eup %7537  ;;  %7555 = vpow2.f32 %v2721_v3  ;;  %v2902_v41 = vpop.xlane.xlu1 %2901  ;;  %v3505_v56 = vmul.f32 %v7536_v21, %v11374_v22  ;;  %7116 = vmatpush3.bf16.msra.mxu0 %v7113_v2  ;;  %v3490_v17 = vmul.f32 %v7534_v14, %v11379_v4  ;;  %v2757_v3 = vmul.f32 1.442695, %v2542_v28  ;;  %v11381_v21 = vld [vmem:[#allocation77_spill] sm:$0xff]  ;;  %v11387_v4 = vld [vmem:[#allocation28_spill] sm:$0xff] }
 0x358   : > { %v2870_v25 = vpop.xlane.xlu0 %2869  ;;  %v10033_v48 = vpop.eup %7539  ;;  %7557 = vpow2.f32 %v2751_v57  ;;  %2967 = vadd.xlane.f32.xlu0 %v10008_v54  ;;  %v3489_v38 = vmul.f32 %v7538_v10, %v11375_v42  ;;  %7150 = vmatprep.subr.bf16.mxu0 %v10026_v35  ;;  %v3235_v57 = vld [vmem:[%s8441_s14 + $0x60] sm:$0xff]  ;;  %v2525_v10 = vsub.f32 %v11381_v21, %v9642_v47  ;;  %v2755_v28 = vmul.f32 1.442695, %v2541_v39  ;;  %v11383_v42 = vld [vmem:[#allocation113_spill] sm:$0xff] }
 0x359   : > { %v10037_v52 = vpop.eup %7541  ;;  %7559 = vpow2.f32 %v2719_v24  ;;  %6420 = vmatprep.mubr.msk.f32.mxu1 %vm3377_vm4, %v3505_v56  ;;  %v2725_v24 = vmul.f32 1.442695, %v2526_v9  ;;  %vm3363_vm9 = vcmp.ge.u32.totalorder %v3235_v57, 0  ;;  %v11385_v9 = vld [vmem:[#allocation114_spill] sm:$0xff]  ;;  %v3237_v21 = vld [vmem:[%s8441_s14 + $0x70] sm:$0xff] }
 0x35a   : > { %7561 = vrcp.f32 %v2902_v41  ;;  %3005 = vadd.xlane.f32.xlu1 %v10013_v27  ;;  %6364 = vmatprep.mubr.msk.f32.mxu0 %vm3361_vm5, %v3489_v38  ;;  %v10047_v2 = vpop.eup %7543  ;;  %v11382_v41 = vld [vmem:[#allocation78_spill] sm:$0xff]  ;;  %vm3365_vm13 = vcmp.ge.u32.totalorder %v3237_v21, 0 }
 0x35b   : > { %7563 = vrcp.f32 %v2870_v25  ;;  %6421 = vmatmul.mubr.msk.f32.gmra.mrb[74].mxu1 %vm3378_vm6, %v3506_v55  ;;  %v2900_v58 = vpop.xlane.xlu1 %2899  ;;  %6365 = vmatmul.mubr.msk.f32.gmra.mrb[74].mxu0 %vm3362_vm7, %v3490_v17  ;;  %v7546_v14 = vpop.eup %7545  ;;  %v2544_v25 = vsub.f32 %v11382_v41, %v9654_v30  ;;  %v2723_v30 = vmul.f32 1.442695, %v2525_v10  ;;  %v2729_v10 = vmul.f32 1.442695, %v2528_v62  ;;  %v3254_v41 = vld [vmem:[%s8441_s14 + $0xf8] sm:$0xff] }
 0x35c   : > { %v2868_v36 = vpop.xlane.xlu0 %2867  ;;  %7565 = vrcp.f32 %v2900_v58  ;;  %2973 = vadd.xlane.f32.xlu0 %v10033_v48  ;;  %v7548_v46 = vpop.eup %7547  ;;  %v3508_v17 = vmul.f32 %v7546_v14, %v11387_v4  ;;  %v11394_v4 = vld [vmem:[#allocation118_spill] sm:$0xff]  ;;  %vm3382_vm14 = vcmp.ge.u32.totalorder %v3254_v41, 0 }
 0x35d   : > { %7567 = vrcp.f32 %v2868_v36  ;;  %v2761_v58 = vmul.f32 1.442695, %v2544_v25  ;;  %v11389_v36 = vld [vmem:[#allocation80_spill] sm:$0xff] }
 0x35e   : > { %v7550_v53 = vpop.eup %7549  ;;  %3003 = vadd.xlane.f32.xlu1 %v10037_v52  ;;  %7569 = vpow2.f32 %v2757_v3  ;;  %v11388_v3 = vld [vmem:[#allocation29_spill] sm:$0xff]  ;;  %v2543_v51 = vsub.f32 %v11389_v36, %v9668_v18  ;;  %v3238_v18 = vld [vmem:[%s8441_s14 + $0x78] sm:$0xff] }
 0x35f   : > { %v7552_v19 = vpop.eup %7551  ;;  %v10063_v22 = vpop.xlane.xlu1 %2425  ;;  %v3507_v47 = vmul.f32 %v7550_v53, %v11383_v42  ;;  %7571 = vpow2.f32 %v2725_v24  ;;  %v3492_v43 = vmul.f32 %v7548_v46, %v11388_v3  ;;  %v3253_v46 = vld [vmem:[%s8441_s14 + $0xf0] sm:$0xff]  ;;  %v11390_v53 = vld [vmem:[#allocation32_spill] sm:$0xff]  ;;  %vm3366_vm15 = vcmp.ge.u32.totalorder %v3238_v18, 0 }
 0x360   : > { %v10065_v56 = vpop.xlane.xlu0 %2393  ;;  %v10068_v38 = vpop.eup %7553  ;;  %2971 = vadd.xlane.f32.xlu0 %v10047_v2  ;;  %v3491_v40 = vmul.f32 %v7552_v19, %v11385_v9  ;;  %7573 = vpow2.f32 %v2755_v28  ;;  %v11391_v19 = vld [vmem:[#allocation81_spill] sm:$0xff]  ;;  %vm3381_vm12 = vcmp.ge.u32.totalorder %v3253_v46, 0  ;;  %v2759_v42 = vmul.f32 1.442695, %v2543_v51  ;;  %v11400_v18 = vld [vmem:[#allocation84_spill] sm:$0xff] }
 0x361   : > { %v10074_v55 = vpop.eup %7555  ;;  %6423 = vmatprep.mubr.msk.f32.mxu1 %vm3379_vm8, %v3507_v47  ;;  %7575 = vpow2.f32 %v2723_v30  ;;  %v2527_v28 = vsub.f32 %v11391_v19, %v11390_v53  ;;  %v11392_v47 = vld [vmem:[#allocation82_spill] sm:$0xff]  ;;  %v11398_v53 = vld [vmem:[#allocation116_spill] sm:$0xff] }
 0x362   : > { %11386 = vst [vmem:[#allocation56_spill] sm:$0xff] %v10074_v55  ;;  %v10079_v39 = vpop.eup %7557  ;;  %3009 = vadd.xlane.f32.xlu1 %v10068_v38  ;;  %6367 = vmatprep.mubr.msk.f32.mxu0 %vm3363_vm9, %v3491_v40  ;;  %7577 = vpow2.f32 %v2761_v58  ;;  %v2546_v16 = vsub.f32 %v11392_v47, %v9686_v45  ;;  %v11393_v40 = vld [vmem:[#allocation117_spill] sm:$0xff]  ;;  %v11396_v58 = vld [vmem:[#allocation83_spill] sm:$0xff]  ;;  %v11405_v47 = vld [vmem:[#allocation86_spill] sm:$0xff] }
 0x363   : > { %v10083_v31 = vpop.eup %7559  ;;  %6424 = vmatmul.mubr.msk.f32.gmra.mrb[76].mxu1 %vm3380_vm10, %v3508_v17  ;;  %v10087_v24 = vpop.xlane.xlu1 %2423  ;;  %6368 = vmatmul.mubr.msk.f32.gmra.mrb[76].mxu0 %vm3364_vm11, %v3492_v43  ;;  %7579 = vpow2.f32 %v2729_v10  ;;  %v2727_v43 = vmul.f32 1.442695, %v2527_v28  ;;  %v2530_v36 = vsub.f32 %v11396_v58, %v9688_v60  ;;  %v11397_v45 = vld [vmem:[#allocation115_spill] sm:$0xff]  ;;  %v2545_v28 = vsub.f32 %v11400_v18, %v9696_v32 }
 0x364   : > { %v10090_v14 = vpop.xlane.xlu0 %2391  ;;  %v7562_v57 = vpop.eup %7561  ;;  %2977 = vadd.xlane.f32.xlu0 %v10074_v55  ;;  %7581 = vpow2.f32 %v2759_v42  ;;  %v2765_v41 = vmul.f32 1.442695, %v2546_v16  ;;  %v2548_v16 = vsub.f32 %v11405_v47, %v9712_v63  ;;  %v11408_v58 = vld [vmem:[#allocation87_spill] sm:$0xff]  ;;  %v11410_v63 = vld [vmem:[#allocation88_spill] sm:$0xff] }
 0x365   : > { %v7564_v44 = vpop.eup %7563  ;;  %v3510_v51 = vmul.f32 %v7562_v57, %v11397_v45  ;;  %7583 = vpow2.f32 %v2727_v43  ;;  %v2733_v21 = vmul.f32 1.442695, %v2530_v36  ;;  %v11402_v57 = vld [vmem:[#allocation106_spill] sm:$0xff]  ;;  %v2763_v32 = vmul.f32 1.442695, %v2545_v28  ;;  %v11407_v43 = vld [vmem:[#allocation36_spill] sm:$0xff] }
 0x366   : > { %v7566_v25 = vpop.eup %7565  ;;  %3007 = vadd.xlane.f32.xlu1 %v10079_v39  ;;  %v3494_v19 = vmul.f32 %v7564_v44, %v11398_v53  ;;  %v11403_v44 = vld [vmem:[#allocation85_spill] sm:$0xff]  ;;  %7585 = vpow2.f32 %v2765_v41  ;;  %v2532_v36 = vsub.f32 %v11408_v58, %v11407_v43  ;;  %v2547_v53 = vsub.f32 %v11410_v63, %v9732_v5  ;;  %v11414_v5 = vld [vmem:[#allocation38_spill] sm:$0xff] }
 0x367   : > { %v7568_v11 = vpop.eup %7567  ;;  %v10102_v62 = vpop.xlane.xlu1 %2429  ;;  %v3509_v30 = vmul.f32 %v7566_v25, %v11393_v40  ;;  %7587 = vpow2.f32 %v2733_v21  ;;  %v11412_v21 = vld [vmem:[#allocation89_spill] sm:$0xff] }
 0x368   : > { %v10104_v9 = vpop.xlane.xlu0 %2397  ;;  %2975 = vadd.xlane.f32.xlu0 %v10083_v31  ;;  %v3493_v17 = vmul.f32 %v7568_v11, %v11394_v4  ;;  %v10109_v3 = vpop.eup %7569  ;;  %v2529_v11 = vsub.f32 %v11403_v44, %v11402_v57  ;;  %7589 = vpow2.f32 %v2763_v32  ;;  %v2737_v28 = vmul.f32 1.442695, %v2532_v36  ;;  %v11415_v32 = vld [vmem:[#allocation90_spill] sm:$0xff]  ;;  %v11418_v36 = vld [vmem:[#allocation91_spill] sm:$0xff] }
 0x369   : > { %11395 = vst [vmem:[#allocation57_spill] sm:$0xff] %v10109_v3  ;;  %6426 = vmatprep.mubr.msk.f32.mxu1 %vm3381_vm12, %v3509_v30  ;;  %v10118_v10 = vpop.eup %7571  ;;  %v2531_v57 = vsub.f32 %v11412_v21, %v9734_v15  ;;  %v2550_v47 = vsub.f32 %v11415_v32, %v11414_v5  ;;  %v11417_v15 = vld [vmem:[#allocation39_spill] sm:$0xff]  ;;  %v11420_v21 = vld [vmem:[#allocation44_spill] sm:$0xff]  ;;  %v11421_v5 = vld [vmem:[#allocation94_spill] sm:$0xff] }
 0x36a   : > { %3013 = vadd.xlane.f32.xlu1 %v10109_v3  ;;  %6370 = vmatprep.mubr.msk.f32.mxu0 %vm3365_vm13, %v3493_v17  ;;  %11399 = vst [vmem:[#allocation58_spill] sm:$0xff] %v10118_v10  ;;  %v10127_v46 = vpop.eup %7573  ;;  %v2731_v17 = vmul.f32 1.442695, %v2529_v11  ;;  %v2767_v11 = vmul.f32 1.442695, %v2547_v53  ;;  %v2534_v63 = vsub.f32 %v11418_v36, %v11417_v15  ;;  %v2549_v32 = vsub.f32 %v11421_v5, %v11420_v21  ;;  %v11423_v15 = vld [vmem:[#allocation45_spill] sm:$0xff] }
 0x36b   : > { %6427 = vmatmul.mubr.msk.f32.gmra.mrb[78].mxu1 %vm3382_vm14, %v3510_v51  ;;  %v10122_v25 = vpop.xlane.xlu1 %2427  ;;  %6371 = vmatmul.mubr.msk.f32.gmra.mrb[78].mxu0 %vm3366_vm15, %v3494_v19  ;;  %11401 = vst [vmem:[#allocation97_spill] sm:$0xff] %v10127_v46  ;;  %v10132_v42 = vpop.eup %7575  ;;  %v2769_v51 = vmul.f32 1.442695, %v2548_v16  ;;  %v2735_v58 = vmul.f32 1.442695, %v2531_v57  ;;  %v11424_v36 = vld [vmem:[#allocation95_spill] sm:$0xff] }
 0x36c   : > { %v10124_v60 = vpop.xlane.xlu0 %2395  ;;  %2981 = vadd.xlane.f32.xlu0 %v10118_v10  ;;  %11404 = vst [vmem:[#allocation93_spill] sm:$0xff] %v10132_v42  ;;  %v10141_v4 = vpop.eup %7577  ;;  %7591 = vpow2.f32 %v2731_v17  ;;  %v2773_v53 = vmul.f32 1.442695, %v2550_v47  ;;  %v2741_v57 = vmul.f32 1.442695, %v2534_v63  ;;  %v11426_v21 = vld [vmem:[#allocation120_spill] sm:$0xff] }
 0x36d   : > { %11406 = vst [vmem:[#allocation96_spill] sm:$0xff] %v10141_v4  ;;  %v10145_v45 = vpop.eup %7579  ;;  %7593 = vpow2.f32 %v2769_v51  ;;  %v2771_v47 = vmul.f32 1.442695, %v2549_v32  ;;  %v2568_v5 = vsub.f32 %v11426_v21, %v10063_v22  ;;  %v11430_v22 = vld [vmem:[#allocation121_spill] sm:$0xff] }
 0x36e   : > { %3011 = vadd.xlane.f32.xlu1 %v10127_v46  ;;  %11409 = vst [vmem:[#allocation92_spill] sm:$0xff] %v10145_v45  ;;  %v10155_v18 = vpop.eup %7581  ;;  %7595 = vpow2.f32 %v2737_v28  ;;  %v2567_v21 = vsub.f32 %v11430_v22, %v10087_v24  ;;  %v11434_v24 = vld [vmem:[#allocation124_spill] sm:$0xff]  ;;  %v3273_v3 = vld [vmem:[%s8441_s14 + $0x190] sm:$0xff] }
 0x36f   : > { %v10136_v40 = vpop.xlane.xlu1 %2433  ;;  %11411 = vst [vmem:[#allocation59_spill] sm:$0xff] %v10155_v18  ;;  %v10160_v44 = vpop.eup %7583  ;;  %7597 = vpow2.f32 %v2767_v11  ;;  %v2809_v32 = vmul.f32 1.442695, %v2568_v5  ;;  %v2570_v22 = vsub.f32 %v11434_v24, %v10102_v62  ;;  %v11438_v62 = vld [vmem:[#allocation125_spill] sm:$0xff]  ;;  %vm3401_vm4 = vcmp.ge.u32.totalorder %v3273_v3, 0 }
 0x370   : > { %v10138_v30 = vpop.xlane.xlu0 %2401  ;;  %2979 = vadd.xlane.f32.xlu0 %v10132_v42  ;;  %11413 = vst [vmem:[#allocation60_spill] sm:$0xff] %v10160_v44  ;;  %v10169_v17 = vpop.eup %7585  ;;  %7599 = vpow2.f32 %v2735_v58  ;;  %v2807_v5 = vmul.f32 1.442695, %v2567_v21  ;;  %v2569_v24 = vsub.f32 %v11438_v62, %v10122_v25  ;;  %v11442_v25 = vld [vmem:[#allocation128_spill] sm:$0xff] }
 0x371   : > { %11416 = vst [vmem:[#allocation100_spill] sm:$0xff] %v10169_v17  ;;  %v10174_v51 = vpop.eup %7587  ;;  %7601 = vpow2.f32 %v2773_v53  ;;  %v2813_v21 = vmul.f32 1.442695, %v2570_v22  ;;  %v2572_v62 = vsub.f32 %v11442_v25, %v10136_v40  ;;  %v11446_v40 = vld [vmem:[#allocation129_spill] sm:$0xff] }
 0x372   : > { %3017 = vadd.xlane.f32.xlu1 %v10141_v4  ;;  %11419 = vst [vmem:[#allocation61_spill] sm:$0xff] %v10174_v51  ;;  %v10183_v28 = vpop.eup %7589  ;;  %7603 = vpow2.f32 %v2741_v57  ;;  %v2811_v22 = vmul.f32 1.442695, %v2569_v24 }
 0x373   : > { %v10150_v19 = vpop.xlane.xlu1 %2431  ;;  %11422 = vst [vmem:[#allocation63_spill] sm:$0xff] %v10183_v28  ;;  %7605 = vpow2.f32 %v2771_v47  ;;  %v2817_v24 = vmul.f32 1.442695, %v2572_v62 }
 0x374   : > { %v10152_v41 = vpop.xlane.xlu0 %2399  ;;  %2985 = vadd.xlane.f32.xlu0 %v10145_v45  ;;  %v2571_v25 = vsub.f32 %v11446_v40, %v10150_v19  ;;  %v11450_v19 = vld [vmem:[#allocation132_spill] sm:$0xff] }
 0x376   : > { %3015 = vadd.xlane.f32.xlu1 %v10155_v18  ;;  %v10188_v11 = vpop.eup %7591  ;;  %v2815_v62 = vmul.f32 1.442695, %v2571_v25  ;;  %v11454_v25 = vld [vmem:[#allocation134_spill] sm:$0xff] }
 0x377   : > { %v10164_v16 = vpop.xlane.xlu1 %2437  ;;  %11425 = vst [vmem:[#allocation101_spill] sm:$0xff] %v10188_v11  ;;  %v10197_v58 = vpop.eup %7593 }
 0x378   : > { %v10166_v43 = vpop.xlane.xlu0 %2405  ;;  %2983 = vadd.xlane.f32.xlu0 %v10160_v44  ;;  %11427 = vst [vmem:[#allocation98_spill] sm:$0xff] %v10197_v58  ;;  %v10202_v53 = vpop.eup %7595  ;;  %v2574_v40 = vsub.f32 %v11450_v19, %v10164_v16 }
 0x379   : > { %11429 = vst [vmem:[#allocation99_spill] sm:$0xff] %v10202_v53  ;;  %v10211_v57 = vpop.eup %7597 }
 0x37a   : > { %3021 = vadd.xlane.f32.xlu1 %v10169_v17  ;;  %v2533_v17 = vsub.f32 %v11424_v36, %v11423_v15  ;;  %v11428_v15 = vld [vmem:[#allocation119_spill] sm:$0xff]  ;;  %11431 = vst [vmem:[#allocation62_spill] sm:$0xff] %v10211_v57  ;;  %v10216_v47 = vpop.eup %7599  ;;  %v2821_v19 = vmul.f32 1.442695, %v2574_v40 }
 0x37b   : > { %v10178_v45 = vpop.xlane.xlu1 %2435  ;;  %v2552_v36 = vsub.f32 %v11428_v15, %v10065_v56  ;;  %v11432_v56 = vld [vmem:[#allocation122_spill] sm:$0xff]  ;;  %11433 = vst [vmem:[#allocation64_spill] sm:$0xff] %v10216_v47 }
 0x37c   : > { %v10180_v4 = vpop.xlane.xlu0 %2403  ;;  %2989 = vadd.xlane.f32.xlu0 %v10174_v51  ;;  %v2739_v63 = vmul.f32 1.442695, %v2533_v17  ;;  %v2551_v15 = vsub.f32 %v11432_v56, %v10090_v14  ;;  %v11436_v14 = vld [vmem:[#allocation123_spill] sm:$0xff] }
 0x37d   : > { %v2777_v17 = vmul.f32 1.442695, %v2552_v36  ;;  %v2554_v56 = vsub.f32 %v11436_v14, %v10104_v9  ;;  %v11440_v9 = vld [vmem:[#allocation126_spill] sm:$0xff] }
 0x37e   : > { %3019 = vadd.xlane.f32.xlu1 %v10183_v28  ;;  %7607 = vpow2.f32 %v2739_v63  ;;  %v10225_v63 = vpop.eup %7601  ;;  %v2775_v36 = vmul.f32 1.442695, %v2551_v15  ;;  %v2553_v14 = vsub.f32 %v11440_v9, %v10124_v60  ;;  %v11444_v60 = vld [vmem:[#allocation127_spill] sm:$0xff] }
 0x37f   : > { %v10192_v44 = vpop.xlane.xlu1 %2441  ;;  %7609 = vpow2.f32 %v2809_v32  ;;  %11435 = vst [vmem:[#allocation104_spill] sm:$0xff] %v10225_v63  ;;  %v10230_v32 = vpop.eup %7603  ;;  %v2781_v15 = vmul.f32 1.442695, %v2554_v56  ;;  %v2556_v9 = vsub.f32 %v11444_v60, %v10138_v30  ;;  %v11448_v30 = vld [vmem:[#allocation130_spill] sm:$0xff] }
 0x380   : > { %v10194_v18 = vpop.xlane.xlu0 %2409  ;;  %2987 = vadd.xlane.f32.xlu0 %v10188_v11  ;;  %7611 = vpow2.f32 %v2777_v17  ;;  %11437 = vst [vmem:[#allocation65_spill] sm:$0xff] %v10230_v32  ;;  %v10239_v17 = vpop.eup %7605  ;;  %v2779_v56 = vmul.f32 1.442695, %v2553_v14  ;;  %v2555_v60 = vsub.f32 %v11448_v30, %v10152_v41  ;;  %v11453_v30 = vld [vmem:[#allocation133_spill] sm:$0xff] }
 0x381   : > { %7613 = vpow2.f32 %v2807_v5  ;;  %11439 = vst [vmem:[#allocation66_spill] sm:$0xff] %v10239_v17  ;;  %v2785_v14 = vmul.f32 1.442695, %v2556_v9 }
 0x382   : > { %3025 = vadd.xlane.f32.xlu1 %v10197_v58  ;;  %7615 = vpow2.f32 %v2775_v36  ;;  %v2783_v41 = vmul.f32 1.442695, %v2555_v60 }
 0x383   : > { %v10206_v51 = vpop.xlane.xlu1 %2439  ;;  %7617 = vpow2.f32 %v2813_v21 }
 0x384   : > { %v10208_v28 = vpop.xlane.xlu0 %2407  ;;  %2993 = vadd.xlane.f32.xlu0 %v10202_v53  ;;  %7619 = vpow2.f32 %v2781_v15 }
 0x385   : > { %7621 = vpow2.f32 %v2811_v22 }
 0x386   : > { %3023 = vadd.xlane.f32.xlu1 %v10211_v57  ;;  %7623 = vpow2.f32 %v2779_v56 }
 0x387   : > { %v10220_v58 = vpop.xlane.xlu1 %2445  ;;  %7625 = vpow2.f32 %v2817_v24  ;;  %v2573_v24 = vsub.f32 %v11453_v30, %v10178_v45 }
 0x388   : > { %v10222_v11 = vpop.xlane.xlu0 %2413  ;;  %2991 = vadd.xlane.f32.xlu0 %v10216_v47  ;;  %v10244_v5 = vpop.eup %7607  ;;  %7627 = vpow2.f32 %v2785_v14 }
 0x389   : > { %11441 = vst [vmem:[#allocation105_spill] sm:$0xff] %v10244_v5  ;;  %v10253_v36 = vpop.eup %7609  ;;  %7629 = vpow2.f32 %v2815_v62  ;;  %v2819_v45 = vmul.f32 1.442695, %v2573_v24 }
 0x38a   : > { %3029 = vadd.xlane.f32.xlu1 %v10225_v63  ;;  %11443 = vst [vmem:[#allocation102_spill] sm:$0xff] %v10253_v36  ;;  %v10258_v21 = vpop.eup %7611  ;;  %7631 = vpow2.f32 %v2783_v41 }
 0x38b   : > { %v10234_v53 = vpop.xlane.xlu1 %2443  ;;  %11445 = vst [vmem:[#allocation103_spill] sm:$0xff] %v10258_v21  ;;  %v10267_v15 = vpop.eup %7613  ;;  %7633 = vpow2.f32 %v2821_v19 }
 0x38c   : > { %v10236_v57 = vpop.xlane.xlu0 %2411  ;;  %2997 = vadd.xlane.f32.xlu0 %v10230_v32  ;;  %11447 = vst [vmem:[#allocation67_spill] sm:$0xff] %v10267_v15  ;;  %v10272_v22 = vpop.eup %7615 }
 0x38d   : > { %11449 = vst [vmem:[#allocation68_spill] sm:$0xff] %v10272_v22  ;;  %v10283_v9 = vpop.eup %7617 }
 0x38e   : > { %3027 = vadd.xlane.f32.xlu1 %v10239_v17  ;;  %11452 = vst [vmem:[#allocation109_spill] sm:$0xff] %v10283_v9  ;;  %v10290_v16 = vpop.eup %7619 }
 0x38f   : > { %v10248_v63 = vpop.xlane.xlu1 %2449  ;;  %11455 = vst [vmem:[#allocation69_spill] sm:$0xff] %v10290_v16  ;;  %v10295_v14 = vpop.eup %7621 }
 0x390   : > { %v10250_v47 = vpop.xlane.xlu0 %2417  ;;  %2995 = vadd.xlane.f32.xlu0 %v10244_v5  ;;  %11457 = vst [vmem:[#allocation111_spill] sm:$0xff] %v10295_v14 }
 0x392   : > { %3065 = vadd.xlane.f32.xlu1 %v10253_v36 }
 0x393   : > { %v10262_v32 = vpop.xlane.xlu1 %2447 }
 0x394   : > { %v10264_v17 = vpop.xlane.xlu0 %2415  ;;  %3033 = vadd.xlane.f32.xlu0 %v10258_v21  ;;  %v11451_v21 = vld [vmem:[#allocation131_spill] sm:$0xff] }
 0x395   : > { %v2558_v56 = vsub.f32 %v11451_v21, %v10166_v43  ;;  %v11456_v43 = vld [vmem:[#allocation136_spill] sm:$0xff] }
 0x396   : > { %3063 = vadd.xlane.f32.xlu1 %v10267_v15  ;;  %v2557_v15 = vsub.f32 %v11454_v25, %v10180_v4  ;;  %v2576_v21 = vsub.f32 %v11456_v43, %v10192_v44  ;;  %v10298_v4 = vpop.eup %7623  ;;  %v11459_v44 = vld [vmem:[#allocation135_spill] sm:$0xff] }
 0x397   : > { %v10276_v36 = vpop.xlane.xlu1 %2453  ;;  %v2789_v42 = vmul.f32 1.442695, %v2558_v56  ;;  %11458 = vst [vmem:[#allocation107_spill] sm:$0xff] %v10298_v4  ;;  %v2560_v56 = vsub.f32 %v11459_v44, %v10194_v18  ;;  %v10307_v25 = vpop.eup %7625 }
 0x398   : > { %v10278_v5 = vpop.xlane.xlu0 %2421  ;;  %3031 = vadd.xlane.f32.xlu0 %v10272_v22  ;;  %v2787_v60 = vmul.f32 1.442695, %v2557_v15  ;;  %v2825_v62 = vmul.f32 1.442695, %v2576_v21  ;;  %11460 = vst [vmem:[#allocation108_spill] sm:$0xff] %v10307_v25  ;;  %v11461_v15 = vld [vmem:[#allocation137_spill] sm:$0xff]  ;;  %v10312_v24 = vpop.eup %7627 }
 0x399   : > { %7635 = vpow2.f32 %v2789_v42  ;;  %v2575_v41 = vsub.f32 %v11461_v15, %v10206_v51  ;;  %11462 = vst [vmem:[#allocation70_spill] sm:$0xff] %v10312_v24  ;;  %v2793_v42 = vmul.f32 1.442695, %v2560_v56  ;;  %v10315_v18 = vpop.eup %7629  ;;  %v11467_v15 = vld [vmem:[#allocation139_spill] sm:$0xff] }
 0x39a   : > { %3069 = vadd.xlane.f32.xlu1 %v10283_v9  ;;  %7637 = vpow2.f32 %v2819_v45  ;;  %11463 = vst [vmem:[#allocation71_spill] sm:$0xff] %v10315_v18  ;;  %v11464_v45 = vld [vmem:[#allocation138_spill] sm:$0xff]  ;;  %v10320_v51 = vpop.eup %7631 }
 0x39b   : > { %v2938_v22 = vpop.xlane.xlu1 %2937  ;;  %7639 = vpow2.f32 %v2787_v60  ;;  %v2823_v21 = vmul.f32 1.442695, %v2575_v41  ;;  %v2559_v44 = vsub.f32 %v11464_v45, %v10208_v28  ;;  %11465 = vst [vmem:[#allocation72_spill] sm:$0xff] %v10320_v51  ;;  %v11466_v60 = vld [vmem:[#allocation140_spill] sm:$0xff]  ;;  %v11469_v28 = vld [vmem:[#allocation31_spill] sm:$0xff] }
 0x39c   : > { %v2906_v10 = vpop.xlane.xlu0 %2905  ;;  %3037 = vadd.xlane.f32.xlu0 %v10290_v16  ;;  %7641 = vpow2.f32 %v2825_v62  ;;  %v2578_v62 = vsub.f32 %v11466_v60, %v10220_v58  ;;  %v2577_v41 = vsub.f32 %v11469_v28, %v10234_v53  ;;  %v3271_v53 = vld [vmem:[%s8441_s14 + $0x180] sm:$0xff]  ;;  %v3272_v28 = vld [vmem:[%s8441_s14 + $0x188] sm:$0xff] }
 0x39d   : > { %7643 = vrcp.f32 %v2938_v22  ;;  %v2791_v45 = vmul.f32 1.442695, %v2559_v44  ;;  %vm3399_vm0 = vcmp.ge.u32.totalorder %v3271_v53, 0  ;;  %vm3400_vm2 = vcmp.ge.u32.totalorder %v3272_v28, 0 }
 0x39e   : > { %3067 = vadd.xlane.f32.xlu1 %v10295_v14  ;;  %7645 = vrcp.f32 %v2906_v10  ;;  %v10327_v10 = vpop.eup %7633  ;;  %v11479_v14 = vld [vmem:[#allocation110_spill] sm:$0xff] }
 0x39f   : > { %v10300_v40 = vpop.xlane.xlu1 %2451  ;;  %11468 = vst [vmem:[#allocation73_spill] sm:$0xff] %v10327_v10 }
 0x3a0   : > { %v10302_v30 = vpop.xlane.xlu0 %2419  ;;  %3035 = vadd.xlane.f32.xlu0 %v10298_v4  ;;  %v705_v4 = vld [vmem:[%s8438_s23 + $0x210] sm:$0xff] }
 0x3a2   : > { %3073 = vadd.xlane.f32.xlu1 %v10307_v25 }
 0x3a3   : > { %v2936_v19 = vpop.xlane.xlu1 %2935 }
 0x3a4   : > { %v2904_v43 = vpop.xlane.xlu0 %2903  ;;  %3041 = vadd.xlane.f32.xlu0 %v10312_v24  ;;  %7647 = vrcp.f32 %v2936_v19  ;;  %v2562_v24 = vsub.f32 %v11467_v15, %v10222_v11  ;;  %v10331_v19 = vpop.eup %7635  ;;  %v2829_v11 = vmul.f32 1.442695, %v2578_v62  ;;  %v3255_v15 = vld [vmem:[%s8441_s14 + $0x100] sm:$0xff]  ;;  %v11473_v62 = vld [vmem:[#allocation30_spill] sm:$0xff] }
 0x3a5   : > { %7649 = vrcp.f32 %v2904_v43  ;;  %11470 = vst [vmem:[#allocation22_spill] sm:$0xff] %v10331_v19  ;;  %v10334_v58 = vpop.eup %7637  ;;  %vm3383_vm1 = vcmp.ge.u32.totalorder %v3255_v15, 0 }
 0x3a6   : > { %3071 = vadd.xlane.f32.xlu1 %v10315_v18  ;;  %7651 = vpow2.f32 %v2793_v42  ;;  %11471 = vst [vmem:[#allocation23_spill] sm:$0xff] %v10334_v58  ;;  %v10336_v60 = vpop.eup %7639 }
 0x3a7   : > { %v2942_v56 = vpop.xlane.xlu1 %2941  ;;  %7653 = vpow2.f32 %v2823_v21  ;;  %11472 = vst [vmem:[#allocation74_spill] sm:$0xff] %v10336_v60  ;;  %v2797_v21 = vmul.f32 1.442695, %v2562_v24  ;;  %v10340_v44 = vpop.eup %7641  ;;  %v3256_v24 = vld [vmem:[%s8441_s14 + $0x108] sm:$0xff] }
 0x3a8   : > { %v2910_v22 = vpop.xlane.xlu0 %2909  ;;  %3039 = vadd.xlane.f32.xlu0 %v10320_v51  ;;  %7655 = vrcp.f32 %v2942_v56  ;;  %v2827_v56 = vmul.f32 1.442695, %v2577_v41  ;;  %vm3384_vm3 = vcmp.ge.u32.totalorder %v3256_v24, 0  ;;  %v11483_v24 = vld [vmem:[#allocation42_spill] sm:$0xff] }
 0x3a9   : > { %7657 = vrcp.f32 %v2910_v22  ;;  %v2561_v22 = vsub.f32 %v11473_v62, %v10236_v57  ;;  %v721_v57 = vld [vmem:[%s8438_s23 + $0x290] sm:$0xff] }
 0x3aa   : > { %3077 = vadd.xlane.f32.xlu1 %v10327_v10  ;;  %v7644_v10 = vpop.eup %7643 }
 0x3ab   : > { %v2940_v43 = vpop.xlane.xlu1 %2939 }
 0x3ac   : > { %v2908_v42 = vpop.xlane.xlu0 %2907  ;;  %7659 = vrcp.f32 %v2940_v43  ;;  %3045 = vadd.xlane.f32.xlu0 %v10331_v19  ;;  %v7646_v43 = vpop.eup %7645  ;;  %v11474_v19 = vld [vmem:[#allocation143_spill] sm:$0xff] }
 0x3ad   : > { %7661 = vrcp.f32 %v2908_v42  ;;  %v2580_v51 = vsub.f32 %v11474_v19, %v10248_v63  ;;  %v11476_v63 = vld [vmem:[#allocation33_spill] sm:$0xff] }
 0x3ae   : > { %7663 = vpow2.f32 %v2791_v45  ;;  %3075 = vadd.xlane.f32.xlu1 %v10334_v58  ;;  %v7648_v42 = vpop.eup %7647  ;;  %v11475_v45 = vld [vmem:[#allocation142_spill] sm:$0xff]  ;;  %v2579_v19 = vsub.f32 %v11476_v63, %v10262_v32  ;;  %v11477_v58 = vld [vmem:[#allocation112_spill] sm:$0xff] }
 0x3af   : > { %7665 = vpow2.f32 %v2829_v11  ;;  %v2946_v25 = vpop.xlane.xlu1 %2945  ;;  %v2564_v18 = vsub.f32 %v11475_v45, %v10250_v47  ;;  %v722_v11 = vld [vmem:[%s8438_s23 + $0x298] sm:$0xff]  ;;  %v7650_v62 = vpop.eup %7649  ;;  %v3527_v16 = vmul.f32 %v7648_v42, %v11477_v58  ;;  %v2795_v45 = vmul.f32 1.442695, %v2561_v22  ;;  %v11480_v42 = vld [vmem:[#allocation20_spill] sm:$0xff]  ;;  %v3257_v22 = vld [vmem:[%s8441_s14 + $0x110] sm:$0xff] }
 0x3b0   : > { %v2914_v41 = vpop.xlane.xlu0 %2913  ;;  %7667 = vpow2.f32 %v2797_v21  ;;  %3043 = vadd.xlane.f32.xlu0 %v10336_v60  ;;  %v706_v21 = vld [vmem:[%s8438_s23 + $0x218] sm:$0xff]  ;;  %v10360_v47 = vpop.eup %7651  ;;  %v11478_v60 = vld [vmem:[#allocation35_spill] sm:$0xff]  ;;  %v2833_v58 = vmul.f32 1.442695, %v2580_v51  ;;  %v3512_v63 = vmul.f32 %v7646_v43, %v11480_v42  ;;  %v2831_v53 = vmul.f32 1.442695, %v2579_v19 }
 0x3b1   : > { %7669 = vpow2.f32 %v2827_v56  ;;  %v3528_v9 = vmul.f32 %v7644_v10, %v11478_v60  ;;  %v3511_v56 = vmul.f32 %v7650_v62, %v11479_v14  ;;  %v10366_v32 = vpop.eup %7653  ;;  %6517 = vmatprep.mubr.msk.f32.mxu1 %vm3399_vm0, %v3527_v16  ;;  %v3274_v10 = vld [vmem:[%s8441_s14 + $0x198] sm:$0xff]  ;;  %v2801_v14 = vmul.f32 1.442695, %v2564_v18  ;;  %v723_v16 = vld [vmem:[%s8438_s23 + $0x2a0] sm:$0xff]  ;;  %v11481_v18 = vld [vmem:[#allocation144_spill] sm:$0xff] }
 0x3b2   : > { %7671 = vrcp.f32 %v2946_v25  ;;  %3081 = vadd.xlane.f32.xlu1 %v10340_v44  ;;  %v10372_v25 = vpack.c.bf16 %v722_v11, %v721_v57  ;;  %v7656_v60 = vpop.eup %7655  ;;  %v3258_v51 = vld [vmem:[%s8441_s14 + $0x118] sm:$0xff]  ;;  %v7153_v43 = vpack.c.bf16 %v706_v21, %v705_v4  ;;  %v724_v57 = vld [vmem:[%s8438_s23 + $0x2a8] sm:$0xff]  ;;  %vm3385_vm5 = vcmp.ge.u32.totalorder %v3257_v22, 0 }
 0x3b3   : > { %7673 = vrcp.f32 %v2914_v41  ;;  %v2944_v46 = vpop.xlane.xlu1 %2943  ;;  %6461 = vmatprep.mubr.msk.f32.mxu0 %vm3383_vm1, %v3511_v56  ;;  %6518 = vmatmul.mubr.msk.f32.vlgmr.msra.gmra.mrb[80].mxu1 %vm3400_vm2, %v3528_v9  ;;  %v7658_v41 = vpop.eup %7657  ;;  %v2563_v9 = vsub.f32 %v11481_v18, %v10264_v17  ;;  %vm3402_vm6 = vcmp.ge.u32.totalorder %v3274_v10, 0  ;;  %vm3386_vm7 = vcmp.ge.u32.totalorder %v3258_v51, 0  ;;  %v707_v17 = vld [vmem:[%s8438_s23 + $0x220] sm:$0xff]  ;;  %v708_v19 = vld [vmem:[%s8438_s23 + $0x228] sm:$0xff]  ;;  %v11488_v18 = vld [vmem:[#allocation41_spill] sm:$0xff] }
 0x3b4   : > { %v2912_v55 = vpop.xlane.xlu0 %2911  ;;  %7675 = vrcp.f32 %v2944_v46  ;;  %3049 = vadd.xlane.f32.xlu0 %v10360_v47  ;;  %6462 = vmatmul.mubr.msk.f32.vlgmr.msra.gmra.mrb[80].mxu0 %vm3384_vm3, %v3512_v63  ;;  %v11485_v56 = vld [vmem:[#allocation43_spill] sm:$0xff]  ;;  %v11486_v63 = vld [vmem:[#allocation37_spill] sm:$0xff]  ;;  %v726_v51 = vld [vmem:[%s8438_s23 + $0x2b8] sm:$0xff] }
 0x3b5   : > { %7677 = vrcp.f32 %v2912_v55  ;;  %7184 = vmatpush3.bf16.msra.mxu1 %v10018_v26  ;;  %v11482_v55 = vld [vmem:[#allocation21_spill] sm:$0xff]  ;;  %7152 = vmatpush3.bf16.msra.mxu0 %v10026_v35  ;;  %v11484_v26 = vld [vmem:[#allocation34_spill] sm:$0xff]  ;;  %v2565_v35 = vsub.f32 %v11486_v63, %v10302_v30  ;;  %v7157_v30 = vpack.c.bf16 %v708_v19, %v707_v17 }
 0x3b6   : > { %v7660_v11 = vpop.eup %7659  ;;  %7679 = vpow2.f32 %v2795_v45  ;;  %3079 = vadd.xlane.f32.xlu1 %v10366_v32  ;;  %v2581_v4 = vsub.f32 %v11482_v55, %v10300_v40  ;;  %7186 = vmatprep.subr.bf16.mxu1 %v10372_v25  ;;  %v2582_v45 = vsub.f32 %v11484_v26, %v10276_v36  ;;  %v7189_v40 = vpack.c.bf16 %v724_v57, %v723_v16  ;;  %v3275_v16 = vld [vmem:[%s8441_s14 + $0x1a0] sm:$0xff]  ;;  %v710_v17 = vld [vmem:[%s8438_s23 + $0x238] sm:$0xff] }
 0x3b7   : > { %v7662_v46 = vpop.eup %7661  ;;  %7681 = vpow2.f32 %v2833_v58  ;;  %v2950_v15 = vpop.xlane.xlu1 %2949  ;;  %v3529_v62 = vmul.f32 %v7660_v11, %v11483_v24  ;;  %7154 = vmatprep.subr.bf16.mxu0 %v7153_v43  ;;  %v11487_v11 = vld [vmem:[#allocation40_spill] sm:$0xff]  ;;  %v3514_v36 = vmul.f32 %v7658_v41, %v11488_v18  ;;  %v3259_v57 = vld [vmem:[%s8441_s14 + $0x120] sm:$0xff]  ;;  %vm3403_vm8 = vcmp.ge.u32.totalorder %v3275_v16, 0 }
 0x3b8   : > { %v2918_v28 = vpop.xlane.xlu0 %2917  ;;  %v10392_v21 = vpop.eup %7663  ;;  %7683 = vpow2.f32 %v2801_v14  ;;  %v3513_v58 = vmul.f32 %v7662_v46, %v11485_v56  ;;  %v3530_v14 = vmul.f32 %v7656_v60, %v11487_v11  ;;  %v2799_v46 = vmul.f32 1.442695, %v2563_v9  ;;  %v3260_v24 = vld [vmem:[%s8441_s14 + $0x128] sm:$0xff]  ;;  %v11489_v26 = vld [vmem:[#allocation19_spill] sm:$0xff] }
 0x3b9   : > { %v10397_v42 = vpop.eup %7665  ;;  %7685 = vpow2.f32 %v2831_v53  ;;  %3047 = vadd.xlane.f32.xlu0 %v10392_v21  ;;  %6520 = vmatprep.mubr.msk.f32.mxu1 %vm3401_vm4, %v3529_v62  ;;  %v2835_v3 = vmul.f32 1.442695, %v2581_v4  ;;  %v2837_v9 = vmul.f32 1.442695, %v2582_v45  ;;  %v725_v4 = vld [vmem:[%s8438_s23 + $0x2b0] sm:$0xff]  ;;  %v2566_v45 = vsub.f32 %v11489_v26, %v10278_v5 }
 0x3ba   : > { %v10405_v55 = vpop.eup %7667  ;;  %7687 = vrcp.f32 %v2950_v15  ;;  %3085 = vadd.xlane.f32.xlu1 %v10397_v42  ;;  %6464 = vmatprep.mubr.msk.f32.mxu0 %vm3385_vm5, %v3513_v58  ;;  %v3276_v15 = vld [vmem:[%s8441_s14 + $0x1a8] sm:$0xff]  ;;  %v709_v62 = vld [vmem:[%s8438_s23 + $0x230] sm:$0xff]  ;;  %vm3387_vm9 = vcmp.ge.u32.totalorder %v3259_v57, 0  ;;  %vm3388_vm11 = vcmp.ge.u32.totalorder %v3260_v24, 0  ;;  %v7193_v18 = vpack.c.bf16 %v726_v51, %v725_v4 }
 0x3bb   : > { %v10409_v53 = vpop.eup %7669  ;;  %7689 = vrcp.f32 %v2918_v28  ;;  %6521 = vmatmul.mubr.msk.f32.gmra.mrb[82].mxu1 %vm3402_vm6, %v3530_v14  ;;  %v2948_v60 = vpop.xlane.xlu1 %2947  ;;  %6465 = vmatmul.mubr.msk.f32.gmra.mrb[82].mxu0 %vm3386_vm7, %v3514_v36  ;;  %v2803_v28 = vmul.f32 1.442695, %v2565_v35  ;;  %v11490_v58 = vld [vmem:[#allocation48_spill] sm:$0xff]  ;;  %vm3404_vm10 = vcmp.ge.u32.totalorder %v3276_v15, 0  ;;  %v727_v35 = vld [vmem:[%s8438_s23 + $0x2c0] sm:$0xff]  ;;  %v11491_v5 = vld [vmem:[#allocation49_spill] sm:$0xff]  ;;  %v7161_v36 = vpack.c.bf16 %v710_v17, %v709_v62 }
 0x3bc   : > { %v2916_v41 = vpop.xlane.xlu0 %2915  ;;  %v7672_v22 = vpop.eup %7671  ;;  %7691 = vrcp.f32 %v2948_v60  ;;  %7188 = vmatpush3.bf16.msra.mxu1 %v10372_v25  ;;  %7156 = vmatpush3.bf16.msra.mxu0 %v7153_v43  ;;  %v711_v60 = vld [vmem:[%s8438_s23 + $0x240] sm:$0xff]  ;;  %v3277_v4 = vld [vmem:[%s8441_s14 + $0x1b0] sm:$0xff]  ;;  %v3278_v15 = vld [vmem:[%s8441_s14 + $0x1b8] sm:$0xff] }
 0x3bd   : > { %v7674_v10 = vpop.eup %7673  ;;  %3053 = vadd.xlane.f32.xlu0 %v10405_v55  ;;  %7693 = vrcp.f32 %v2916_v41  ;;  %7190 = vmatprep.subr.bf16.mxu1 %v7189_v40  ;;  %v3261_v57 = vld [vmem:[%s8441_s14 + $0x130] sm:$0xff]  ;;  %v3262_v17 = vld [vmem:[%s8441_s14 + $0x138] sm:$0xff]  ;;  %vm3405_vm12 = vcmp.ge.u32.totalorder %v3277_v4, 0  ;;  %vm3406_vm14 = vcmp.ge.u32.totalorder %v3278_v15, 0 }
 0x3be   : > { %v7676_v19 = vpop.eup %7675  ;;  %7695 = vpow2.f32 %v2799_v46  ;;  %3083 = vadd.xlane.f32.xlu1 %v10409_v53  ;;  %7158 = vmatprep.subr.bf16.mxu0 %v7157_v30  ;;  %v728_v46 = vld [vmem:[%s8438_s23 + $0x2c8] sm:$0xff]  ;;  %vm3389_vm13 = vcmp.ge.u32.totalorder %v3261_v57, 0  ;;  %vm3390_vm15 = vcmp.ge.u32.totalorder %v3262_v17, 0  ;;  %v731_v57 = vld [vmem:[%s8438_s23 + $0x2e0] sm:$0xff] }
 0x3bf   : > { %v7678_v25 = vpop.eup %7677  ;;  %7697 = vpow2.f32 %v2835_v3  ;;  %v2954_v43 = vpop.xlane.xlu1 %2953  ;;  %v3531_v63 = vmul.f32 %v7676_v19, %v11490_v58  ;;  %v712_v3 = vld [vmem:[%s8438_s23 + $0x248] sm:$0xff]  ;;  %v11492_v19 = vld [vmem:[#allocation46_spill] sm:$0xff] }
 0x3c0   : > { %v2922_v56 = vpop.xlane.xlu0 %2921  ;;  %v10428_v11 = vpop.eup %7679  ;;  %7699 = vpow2.f32 %v2837_v9  ;;  %v3515_v14 = vmul.f32 %v7678_v25, %v11491_v5  ;;  %7192 = vmatpush3.bf16.msra.mxu1 %v7189_v40  ;;  %7160 = vmatpush3.bf16.msra.mxu0 %v7157_v30  ;;  %v3532_v26 = vmul.f32 %v7672_v22, %v11492_v19  ;;  %v11493_v9 = vld [vmem:[#allocation47_spill] sm:$0xff]  ;;  %v2805_v40 = vmul.f32 1.442695, %v2566_v45  ;;  %v729_v45 = vld [vmem:[%s8438_s23 + $0x2d0] sm:$0xff]  ;;  %v3264_v17 = vld [vmem:[%s8441_s14 + $0x148] sm:$0xff] }
 0x3c1   : > { %v10434_v41 = vpop.eup %7681  ;;  %7701 = vpow2.f32 %v2803_v28  ;;  %3051 = vadd.xlane.f32.xlu0 %v10428_v11  ;;  %6523 = vmatprep.mubr.msk.f32.mxu1 %vm3403_vm8, %v3531_v63  ;;  %v3516_v58 = vmul.f32 %v7674_v10, %v11493_v9  ;;  %v7197_v10 = vpack.c.bf16 %v728_v46, %v727_v35  ;;  %v7165_v28 = vpack.c.bf16 %v712_v3, %v711_v60  ;;  %v11494_v35 = vld [vmem:[#allocation52_spill] sm:$0xff]  ;;  %v714_v46 = vld [vmem:[%s8438_s23 + $0x258] sm:$0xff] }
 0x3c2   : > { %v10440_v25 = vpop.eup %7683  ;;  %7703 = vrcp.f32 %v2954_v43  ;;  %3089 = vadd.xlane.f32.xlu1 %v10434_v41  ;;  %6467 = vmatprep.mubr.msk.f32.mxu0 %vm3387_vm9, %v3515_v14  ;;  %v730_v43 = vld [vmem:[%s8438_s23 + $0x2d8] sm:$0xff]  ;;  %v713_v14 = vld [vmem:[%s8438_s23 + $0x250] sm:$0xff]  ;;  %vm3392_vm3 = vcmp.ge.u32.totalorder %v3264_v17, 0 }
 0x3c3   : > { %v10444_v30 = vpop.eup %7685  ;;  %7705 = vrcp.f32 %v2922_v56  ;;  %6524 = vmatmul.mubr.msk.f32.gmra.mrb[84].mxu1 %vm3404_vm10, %v3532_v26  ;;  %v2952_v16 = vpop.xlane.xlu1 %2951  ;;  %6468 = vmatmul.mubr.msk.f32.gmra.mrb[84].mxu0 %vm3388_vm11, %v3516_v58  ;;  %v11496_v26 = vld [vmem:[#allocation50_spill] sm:$0xff]  ;;  %v11497_v58 = vld [vmem:[#allocation51_spill] sm:$0xff]  ;;  %v7169_v15 = vpack.c.bf16 %v714_v46, %v713_v14  ;;  %v716_v14 = vld [vmem:[%s8438_s23 + $0x268] sm:$0xff] }
 0x3c4   : > { %v2920_v22 = vpop.xlane.xlu0 %2919  ;;  %v7688_v51 = vpop.eup %7687  ;;  %7707 = vrcp.f32 %v2952_v16  ;;  %7194 = vmatprep.subr.bf16.mxu1 %v7193_v18  ;;  %7162 = vmatprep.subr.bf16.mxu0 %v7161_v36  ;;  %v7201_v16 = vpack.c.bf16 %v730_v43, %v729_v45  ;;  %v3280_v43 = vld [vmem:[%s8441_s14 + $0x1c8] sm:$0xff] }
 0x3c5   : > { %v7690_v62 = vpop.eup %7689  ;;  %3057 = vadd.xlane.f32.xlu0 %v10440_v25  ;;  %7709 = vrcp.f32 %v2920_v22  ;;  %7196 = vmatpush3.bf16.msra.mxu1 %v7193_v18  ;;  %v11495_v18 = vld [vmem:[#allocation53_spill] sm:$0xff]  ;;  %v3534_v9 = vmul.f32 %v7688_v51, %v11496_v26  ;;  %v3279_v51 = vld [vmem:[%s8441_s14 + $0x1c0] sm:$0xff]  ;;  %vm3408_vm2 = vcmp.ge.u32.totalorder %v3280_v43, 0 }
 0x3c6   : > { %v7692_v24 = vpop.eup %7691  ;;  %7711 = vpow2.f32 %v2805_v40  ;;  %3087 = vadd.xlane.f32.xlu1 %v10444_v30  ;;  %7164 = vmatpush3.bf16.msra.mxu0 %v7161_v36  ;;  %v3518_v40 = vmul.f32 %v7690_v62, %v11497_v58  ;;  %v3263_v62 = vld [vmem:[%s8441_s14 + $0x140] sm:$0xff]  ;;  %vm3407_vm0 = vcmp.ge.u32.totalorder %v3279_v51, 0  ;;  %v718_v58 = vld [vmem:[%s8438_s23 + $0x278] sm:$0xff] }
 0x3c7   : > { %v7694_v56 = vpop.eup %7693  ;;  %v2958_v63 = vpop.xlane.xlu1 %2957  ;;  %v3533_v5 = vmul.f32 %v7692_v24, %v11494_v35  ;;  %7198 = vmatprep.subr.bf16.mxu1 %v7197_v10  ;;  %7166 = vmatprep.subr.bf16.mxu0 %v7165_v28  ;;  %vm3391_vm1 = vcmp.ge.u32.totalorder %v3263_v62, 0  ;;  %v3282_v51 = vld [vmem:[%s8441_s14 + $0x1d8] sm:$0xff]  ;;  %v736_v62 = vld [vmem:[%s8438_s23 + $0x308] sm:$0xff] }
 0x3c8   : > { %v10459_v60 = vpop.eup %7695  ;;  %v3517_v3 = vmul.f32 %v7694_v56, %v11495_v18  ;;  %7713 = vrcp.f32 %v2958_v63  ;;  %v732_v56 = vld [vmem:[%s8438_s23 + $0x2e8] sm:$0xff]  ;;  %vm3410_vm5 = vcmp.ge.u32.totalorder %v3282_v51, 0 }
 0x3c9   : > { %v10462_v19 = vpop.eup %7697  ;;  %3055 = vadd.xlane.f32.xlu0 %v10459_v60  ;;  %v2926_v36 = vpop.xlane.xlu0 %2925  ;;  %6526 = vmatprep.mubr.msk.f32.mxu1 %vm3405_vm12, %v3533_v5  ;;  %v715_v5 = vld [vmem:[%s8438_s23 + $0x260] sm:$0xff]  ;;  %v7205_v26 = vpack.c.bf16 %v732_v56, %v731_v57  ;;  %v11499_v57 = vld [vmem:[#allocation54_spill] sm:$0xff] }
 0x3ca   : > { %v10468_v22 = vpop.eup %7699  ;;  %3091 = vadd.xlane.f32.xlu1 %v10462_v19  ;;  %6470 = vmatprep.mubr.msk.f32.mxu0 %vm3389_vm13, %v3517_v3 }
 0x3cb   : > { %11498 = vst [vmem:[#allocation26_spill] sm:$0xff] %v10468_v22  ;;  %v10472_v24 = vpop.eup %7701  ;;  %6527 = vmatmul.mubr.msk.f32.gmra.mrb[86].mxu1 %vm3406_vm14, %v3534_v9  ;;  %v2956_v4 = vpop.xlane.xlu1 %2955  ;;  %6471 = vmatmul.mubr.msk.f32.gmra.mrb[86].mxu0 %vm3390_vm15, %v3518_v40  ;;  %v717_v9 = vld [vmem:[%s8438_s23 + $0x270] sm:$0xff] }
 0x3cc   : > { %v7704_v45 = vpop.eup %7703  ;;  %7715 = vrcp.f32 %v2956_v4  ;;  %7200 = vmatpush3.bf16.msra.mxu1 %v7197_v10  ;;  %7168 = vmatpush3.bf16.msra.mxu0 %v7165_v28  ;;  %v733_v10 = vld [vmem:[%s8438_s23 + $0x2f0] sm:$0xff]  ;;  %v734_v28 = vld [vmem:[%s8438_s23 + $0x2f8] sm:$0xff] }
 0x3cd   : > { %v7706_v35 = vpop.eup %7705  ;;  %7717 = vrcp.f32 %v2926_v36  ;;  %3059 = vadd.xlane.f32.xlu0 %v10472_v24  ;;  %v2924_v63 = vpop.xlane.xlu0 %2923  ;;  %7202 = vmatprep.subr.bf16.mxu1 %v7201_v16 }
 0x3ce   : > { %v7708_v46 = vpop.eup %7707  ;;  %7719 = vrcp.f32 %v2924_v63  ;;  %3093 = vadd.xlane.f32.xlu1 %v10468_v22  ;;  %7170 = vmatprep.subr.bf16.mxu0 %v7169_v15  ;;  %v3536_v63 = vmul.f32 %v7704_v45, %v9814_v0  ;;  %v7173_v22 = vpack.c.bf16 %v716_v14, %v715_v5  ;;  %v3520_v56 = vmul.f32 %v7706_v35, %v11499_v57  ;;  %v752_v45 = vld [vmem:[%s8438_s23 + $0x388] sm:$0xff]  ;;  %v735_v35 = vld [vmem:[%s8438_s23 + $0x300] sm:$0xff]  ;;  %v3265_v5 = vld [vmem:[%s8441_s14 + $0x150] sm:$0xff] }
 0x3cf   : > { %v7710_v18 = vpop.eup %7709  ;;  %v2962_v3 = vpop.xlane.xlu1 %2961  ;;  %v3535_v36 = vmul.f32 %v7708_v46, %v9820_v23  ;;  %v7209_v46 = vpack.c.bf16 %v734_v28, %v733_v10  ;;  %v7177_v0 = vpack.c.bf16 %v718_v58, %v717_v9  ;;  %v3266_v10 = vld [vmem:[%s8441_s14 + $0x158] sm:$0xff]  ;;  %vm3393_vm6 = vcmp.ge.u32.totalorder %v3265_v5, 0 }
 0x3d0   : > { %v10490_v40 = vpop.eup %7711  ;;  %v3519_v4 = vmul.f32 %v7710_v18, %v9822_v33  ;;  %7204 = vmatpush3.bf16.msra.mxu1 %v7201_v16  ;;  %7172 = vmatpush3.bf16.msra.mxu0 %v7169_v15  ;;  %7721 = vrcp.f32 %v2962_v3  ;;  %v3281_v16 = vld [vmem:[%s8441_s14 + $0x1d0] sm:$0xff]  ;;  %v751_v15 = vld [vmem:[%s8438_s23 + $0x380] sm:$0xff]  ;;  %vm3394_vm7 = vcmp.ge.u32.totalorder %v3266_v10, 0  ;;  %v3286_v5 = vld [vmem:[%s8441_s14 + $0x1f8] sm:$0xff] }
 0x3d1   : > { %3061 = vadd.xlane.f32.xlu0 %v10490_v40  ;;  %v2930_v23 = vpop.xlane.xlu0 %2929  ;;  %6529 = vmatprep.mubr.msk.f32.mxu1 %vm3407_vm0, %v3535_v36  ;;  %vm3409_vm4 = vcmp.ge.u32.totalorder %v3281_v16, 0  ;;  %v10507_v28 = vpack.c.bf16 %v752_v45, %v751_v15  ;;  %v3269_v10 = vld [vmem:[%s8441_s14 + $0x170] sm:$0xff]  ;;  %vm3414_vm13 = vcmp.ge.u32.totalorder %v3286_v5, 0 }
 0x3d2   : > { %6473 = vmatprep.mubr.msk.f32.mxu0 %vm3391_vm1, %v3519_v4  ;;  %6530 = vmatmul.mubr.msk.f32.gmra.mrb[88].mxu1 %vm3408_vm2, %v3536_v63  ;;  %v7714_v17 = vpop.eup %7713  ;;  %vm3397_vm14 = vcmp.ge.u32.totalorder %v3269_v10, 0  ;;  %v740_v10 = vld [vmem:[%s8438_s23 + $0x328] sm:$0xff] }
 0x3d3   : > { %v2960_v33 = vpop.xlane.xlu1 %2959  ;;  %6474 = vmatmul.mubr.msk.f32.gmra.mrb[88].mxu0 %vm3392_vm3, %v3520_v56  ;;  %7206 = vmatprep.subr.bf16.mxu1 %v7205_v26  ;;  %v3267_v56 = vld [vmem:[%s8441_s14 + $0x160] sm:$0xff] }
 0x3d4   : > { %7723 = vrcp.f32 %v2960_v33  ;;  %7208 = vmatpush3.bf16.msra.mxu1 %v7205_v26  ;;  %7174 = vmatprep.subr.bf16.mxu0 %v7173_v22  ;;  %v10510_v26 = vpack.c.bf16 %v736_v62, %v735_v35  ;;  %vm3395_vm10 = vcmp.ge.u32.totalorder %v3267_v56, 0  ;;  %v11500_v62 = vld [vmem:[#allocation55_spill] sm:$0xff]  ;;  %v754_v56 = vld [vmem:[%s8438_s23 + $0x398] sm:$0xff] }
 0x3d5   : > { %7725 = vrcp.f32 %v2930_v23  ;;  %v2928_v43 = vpop.xlane.xlu0 %2927  ;;  %7176 = vmatpush3.bf16.msra.mxu0 %v7173_v22  ;;  %7210 = vmatprep.subr.bf16.mxu1 %v7209_v46  ;;  %v3538_v22 = vmul.f32 %v7714_v17, %v9841_v13  ;;  %v3283_v23 = vld [vmem:[%s8441_s14 + $0x1e0] sm:$0xff]  ;;  %v3284_v13 = vld [vmem:[%s8441_s14 + $0x1e8] sm:$0xff] }
 0x3d6   : > { %v7716_v14 = vpop.eup %7715  ;;  %7727 = vrcp.f32 %v2928_v43  ;;  %7178 = vmatprep.subr.bf16.mxu0 %v7177_v0  ;;  %vm3411_vm8 = vcmp.ge.u32.totalorder %v3283_v23, 0  ;;  %vm3412_vm9 = vcmp.ge.u32.totalorder %v3284_v13, 0  ;;  %v3303_v23 = vld [vmem:[%s8441_s14 + $0x280] sm:$0xff] }
 0x3d7   : > { %v7718_v18 = vpop.eup %7717  ;;  %v2966_v3 = vpop.xlane.xlu1 %2965  ;;  %v3537_v36 = vmul.f32 %v7716_v14, %v9873_v7  ;;  %vm3431_vm0 = vcmp.ge.u32.totalorder %v3303_v23, 0  ;;  %v742_v23 = vld [vmem:[%s8438_s23 + $0x338] sm:$0xff] }
 0x3d8   : > { %v7720_v9 = vpop.eup %7719  ;;  %7212 = vmatpush3.bf16.msra.mxu1 %v7209_v46  ;;  %v3522_v7 = vmul.f32 %v7718_v18, %v9848_v8  ;;  %7729 = vrcp.f32 %v2966_v3  ;;  %v3268_v8 = vld [vmem:[%s8441_s14 + $0x168] sm:$0xff] }
 0x3d9   : > { %v2934_v58 = vpop.xlane.xlu0 %2933  ;;  %6532 = vmatprep.mubr.msk.f32.mxu1 %vm3409_vm4, %v3537_v36  ;;  %v3521_v4 = vmul.f32 %v7720_v9, %v9883_v61  ;;  %7180 = vmatpush3.bf16.msra.mxu0 %v7177_v0  ;;  %vm3396_vm11 = vcmp.ge.u32.totalorder %v3268_v8, 0 }
 0x3da   : > { %6533 = vmatmul.mubr.msk.f32.gmra.mrb[90].mxu1 %vm3410_vm5, %v3538_v22  ;;  %7246 = vmatprep.subr.bf16.mxu1 %v10507_v28  ;;  %v7722_v57 = vpop.eup %7721 }
 0x3db   : > { %6476 = vmatprep.mubr.msk.f32.mxu0 %vm3393_vm6, %v3521_v4  ;;  %v2964_v63 = vpop.xlane.xlu1 %2963  ;;  %7214 = vmatprep.subr.bf16.mxu0 %v10510_v26  ;;  %v3540_v45 = vmul.f32 %v7722_v57, %v9888_v20 }
 0x3dc   : > { %7731 = vrcp.f32 %v2964_v63  ;;  %6477 = vmatmul.mubr.msk.f32.gmra.mrb[90].mxu0 %vm3394_vm7, %v3522_v7 }
 0x3dd   : > { %7733 = vrcp.f32 %v2934_v58  ;;  %v2932_v61 = vpop.xlane.xlu0 %2931 }
 0x3de   : > { %v7724_v46 = vpop.eup %7723  ;;  %7735 = vrcp.f32 %v2932_v61  ;;  %v3287_v61 = vld [vmem:[%s8441_s14 + $0x200] sm:$0xff] }
 0x3df   : > { %v7726_v0 = vpop.eup %7725  ;;  %v3002_v33 = vpop.xlane.xlu1 %3001  ;;  %v3539_v16 = vmul.f32 %v7724_v46, %v9917_v1  ;;  %v3285_v1 = vld [vmem:[%s8441_s14 + $0x1f0] sm:$0xff]  ;;  %vm3415_vm2 = vcmp.ge.u32.totalorder %v3287_v61, 0 }
 0x3e0   : > { %v7728_v15 = vpop.eup %7727  ;;  %v3524_v17 = vmul.f32 %v7726_v0, %v11500_v62  ;;  %7737 = vrcp.f32 %v3002_v33  ;;  %vm3413_vm12 = vcmp.ge.u32.totalorder %v3285_v1, 0  ;;  %v756_v1 = vld [vmem:[%s8438_s23 + $0x3a8] sm:$0xff] }
 0x3e1   : > { %v2970_v51 = vpop.xlane.xlu0 %2969  ;;  %6535 = vmatprep.mubr.msk.f32.mxu1 %vm3411_vm8, %v3539_v16  ;;  %v3523_v35 = vmul.f32 %v7728_v15, %v9925_v29  ;;  %v3270_v29 = vld [vmem:[%s8441_s14 + $0x178] sm:$0xff]  ;;  %v737_v16 = vld [vmem:[%s8438_s23 + $0x310] sm:$0xff] }
 0x3e2   : > { %6536 = vmatmul.mubr.msk.f32.gmra.mrb[92].mxu1 %vm3412_vm9, %v3540_v45  ;;  %v7730_v14 = vpop.eup %7729  ;;  %vm3398_vm15 = vcmp.ge.u32.totalorder %v3270_v29, 0  ;;  %v738_v15 = vld [vmem:[%s8438_s23 + $0x318] sm:$0xff] }
 0x3e3   : > { %6479 = vmatprep.mubr.msk.f32.mxu0 %vm3395_vm10, %v3523_v35  ;;  %v3000_v43 = vpop.xlane.xlu1 %2999  ;;  %v3542_v58 = vmul.f32 %v7730_v14, %v9933_v37  ;;  %v3304_v37 = vld [vmem:[%s8441_s14 + $0x288] sm:$0xff]  ;;  %v7217_v5 = vpack.c.bf16 %v738_v15, %v737_v16  ;;  %v3305_v14 = vld [vmem:[%s8441_s14 + $0x290] sm:$0xff]  ;;  %v3291_v15 = vld [vmem:[%s8441_s14 + $0x220] sm:$0xff] }
 0x3e4   : > { %7739 = vrcp.f32 %v3000_v43  ;;  %6480 = vmatmul.mubr.msk.f32.gmra.mrb[92].mxu0 %vm3396_vm11, %v3524_v17  ;;  %vm3432_vm1 = vcmp.ge.u32.totalorder %v3304_v37, 0  ;;  %v755_v43 = vld [vmem:[%s8438_s23 + $0x3a0] sm:$0xff]  ;;  %vm3433_vm4 = vcmp.ge.u32.totalorder %v3305_v14, 0  ;;  %vm3419_vm10 = vcmp.ge.u32.totalorder %v3291_v15, 0 }
 0x3e5   : > { %7741 = vrcp.f32 %v2970_v51  ;;  %v2968_v20 = vpop.xlane.xlu0 %2967 }
 0x3e6   : > { %v7732_v18 = vpop.eup %7731  ;;  %7743 = vrcp.f32 %v2968_v20  ;;  %v739_v20 = vld [vmem:[%s8438_s23 + $0x320] sm:$0xff] }
 0x3e7   : > { %v7734_v3 = vpop.eup %7733  ;;  %v3006_v36 = vpop.xlane.xlu1 %3005  ;;  %v3541_v9 = vmul.f32 %v7732_v18, %v9962_v59  ;;  %v7253_v18 = vpack.c.bf16 %v756_v1, %v755_v43 }
 0x3e8   : > { %v7736_v22 = vpop.eup %7735  ;;  %v3526_v63 = vmul.f32 %v7734_v3, %v9953_v12  ;;  %7745 = vrcp.f32 %v3006_v36  ;;  %v3288_v12 = vld [vmem:[%s8441_s14 + $0x208] sm:$0xff]  ;;  %v3289_v3 = vld [vmem:[%s8441_s14 + $0x210] sm:$0xff] }
 0x3e9   : > { %v2974_v4 = vpop.xlane.xlu0 %2973  ;;  %6538 = vmatprep.mubr.msk.f32.mxu1 %vm3413_vm12, %v3541_v9  ;;  %v3525_v7 = vmul.f32 %v7736_v22, %v9967_v50  ;;  %v753_v50 = vld [vmem:[%s8438_s23 + $0x390] sm:$0xff]  ;;  %vm3416_vm3 = vcmp.ge.u32.totalorder %v3288_v12, 0  ;;  %v758_v9 = vld [vmem:[%s8438_s23 + $0x3b8] sm:$0xff]  ;;  %vm3417_vm6 = vcmp.ge.u32.totalorder %v3289_v3, 0  ;;  %v3307_v12 = vld [vmem:[%s8441_s14 + $0x2a0] sm:$0xff] }
 0x3ea   : > { %6539 = vmatmul.mubr.msk.f32.gmra.mrb[94].mxu1 %vm3414_vm13, %v3542_v58  ;;  %v7738_v13 = vpop.eup %7737  ;;  %v7249_v35 = vpack.c.bf16 %v754_v56, %v753_v50  ;;  %v757_v36 = vld [vmem:[%s8438_s23 + $0x3b0] sm:$0xff]  ;;  %v7221_v58 = vpack.c.bf16 %v740_v10, %v739_v20  ;;  %v760_v50 = vld [vmem:[%s8438_s23 + $0x3c8] sm:$0xff]  ;;  %vm3435_vm8 = vcmp.ge.u32.totalorder %v3307_v12, 0 }
 0x3eb   : > { %6482 = vmatprep.mubr.msk.f32.mxu0 %vm3397_vm14, %v3525_v7  ;;  %v3004_v59 = vpop.xlane.xlu1 %3003  ;;  %v3560_v51 = vmul.f32 %v7738_v13, %v9972_v34  ;;  %v7257_v13 = vpack.c.bf16 %v758_v9, %v757_v36  ;;  %v3309_v9 = vld [vmem:[%s8441_s14 + $0x2b0] sm:$0xff] }
 0x3ec   : > { %7747 = vrcp.f32 %v3004_v59  ;;  %6483 = vmatmul.mubr.msk.f32.gmra.mrb[94].mxu0 %vm3398_vm15, %v3526_v63  ;;  %v741_v59 = vld [vmem:[%s8438_s23 + $0x330] sm:$0xff]  ;;  %vm3437_vm12 = vcmp.ge.u32.totalorder %v3309_v9, 0 }
 0x3ed   : > { %7749 = vrcp.f32 %v2974_v4  ;;  %v2972_v57 = vpop.xlane.xlu0 %2971 }
 0x3ee   : > { %v7740_v46 = vpop.eup %7739  ;;  %7751 = vrcp.f32 %v2972_v57 }
 0x3ef   : > { %v7742_v8 = vpop.eup %7741  ;;  %v3010_v0 = vpop.xlane.xlu1 %3009  ;;  %v3559_v33 = vmul.f32 %v7740_v46, %v10001_v6 }
 0x3f0   : > { %v7744_v45 = vpop.eup %7743  ;;  %v3544_v6 = vmul.f32 %v7742_v8, %v9993_v49  ;;  %7753 = vrcp.f32 %v3010_v0  ;;  %v744_v8 = vld [vmem:[%s8438_s23 + $0x348] sm:$0xff] }
 0x3f1   : > { %v2978_v62 = vpop.xlane.xlu0 %2977  ;;  %6629 = vmatprep.mubr.msk.f32.mxu1 %vm3431_vm0, %v3559_v33  ;;  %v3543_v17 = vmul.f32 %v7744_v45, %v10008_v54  ;;  %v3306_v54 = vld [vmem:[%s8441_s14 + $0x298] sm:$0xff]  ;;  %v3308_v0 = vld [vmem:[%s8441_s14 + $0x2a8] sm:$0xff]  ;;  %v761_v45 = vld [vmem:[%s8438_s23 + $0x3d0] sm:$0xff] }
 0x3f2   : > { %6630 = vmatmul.mubr.msk.f32.vlgmr.msra.gmra.mrb[96].mxu1 %vm3432_vm1, %v3560_v51  ;;  %v7746_v49 = vpop.eup %7745  ;;  %vm3434_vm5 = vcmp.ge.u32.totalorder %v3306_v54, 0  ;;  %v762_v51 = vld [vmem:[%s8438_s23 + $0x3d8] sm:$0xff]  ;;  %vm3436_vm9 = vcmp.ge.u32.totalorder %v3308_v0, 0  ;;  %v11503_v0 = vld [vmem:[#allocation57_spill] sm:$0xff] }
 0x3f3   : > { %6573 = vmatprep.mubr.msk.f32.mxu0 %vm3415_vm2, %v3543_v17  ;;  %v3008_v34 = vpop.xlane.xlu1 %3007  ;;  %7248 = vmatpush3.bf16.msra.mxu1 %v10507_v28  ;;  %v3290_v28 = vld [vmem:[%s8441_s14 + $0x218] sm:$0xff]  ;;  %v7265_v10 = vpack.c.bf16 %v762_v51, %v761_v45  ;;  %v11504_v45 = vld [vmem:[#allocation93_spill] sm:$0xff] }
 0x3f4   : > { %7755 = vrcp.f32 %v3008_v34  ;;  %6574 = vmatmul.mubr.msk.f32.vlgmr.msra.gmra.mrb[96].mxu0 %vm3416_vm3, %v3544_v6  ;;  %7250 = vmatprep.subr.bf16.mxu1 %v7249_v35  ;;  %vm3418_vm7 = vcmp.ge.u32.totalorder %v3290_v28, 0  ;;  %v746_v34 = vld [vmem:[%s8438_s23 + $0x358] sm:$0xff] }
 0x3f5   : > { %7757 = vrcp.f32 %v2978_v62  ;;  %v2976_v29 = vpop.xlane.xlu0 %2975  ;;  %7216 = vmatpush3.bf16.msra.mxu0 %v10510_v26  ;;  %v3562_v26 = vmul.f32 %v7746_v49, %v10013_v27  ;;  %v7225_v27 = vpack.c.bf16 %v742_v23, %v741_v59  ;;  %v3292_v62 = vld [vmem:[%s8441_s14 + $0x228] sm:$0xff]  ;;  %v3310_v28 = vld [vmem:[%s8441_s14 + $0x2b8] sm:$0xff]  ;;  %v765_v59 = vld [vmem:[%s8438_s23 + $0x3f0] sm:$0xff] }
 0x3f6   : > { %v7748_v22 = vpop.eup %7747  ;;  %7759 = vrcp.f32 %v2976_v29  ;;  %7218 = vmatprep.subr.bf16.mxu0 %v7217_v5  ;;  %vm3420_vm11 = vcmp.ge.u32.totalorder %v3292_v62, 0  ;;  %v764_v49 = vld [vmem:[%s8438_s23 + $0x3e8] sm:$0xff]  ;;  %v766_v23 = vld [vmem:[%s8438_s23 + $0x3f8] sm:$0xff]  ;;  %vm3438_vm13 = vcmp.ge.u32.totalorder %v3310_v28, 0 }
 0x3f7   : > { %v7750_v4 = vpop.eup %7749  ;;  %v3014_v7 = vpop.xlane.xlu1 %3013  ;;  %v3561_v63 = vmul.f32 %v7748_v22, %v10037_v52  ;;  %7252 = vmatpush3.bf16.msra.mxu1 %v7249_v35  ;;  %v759_v52 = vld [vmem:[%s8438_s23 + $0x3c0] sm:$0xff]  ;;  %v11501_v29 = vld [vmem:[#allocation56_spill] sm:$0xff] }
 0x3f8   : > { %v7752_v37 = vpop.eup %7751  ;;  %7254 = vmatprep.subr.bf16.mxu1 %v7253_v18  ;;  %v3546_v56 = vmul.f32 %v7750_v4, %v10033_v48  ;;  %7761 = vrcp.f32 %v3014_v7  ;;  %v7261_v48 = vpack.c.bf16 %v760_v50, %v759_v52  ;;  %v748_v22 = vld [vmem:[%s8438_s23 + $0x368] sm:$0xff]  ;;  %v11502_v50 = vld [vmem:[#allocation97_spill] sm:$0xff] }
 0x3f9   : > { %v2982_v57 = vpop.xlane.xlu0 %2981  ;;  %6632 = vmatprep.mubr.msk.f32.mxu1 %vm3433_vm4, %v3561_v63  ;;  %v3545_v61 = vmul.f32 %v7752_v37, %v10047_v2  ;;  %7220 = vmatpush3.bf16.msra.mxu0 %v7217_v5  ;;  %v743_v2 = vld [vmem:[%s8438_s23 + $0x340] sm:$0xff]  ;;  %v745_v5 = vld [vmem:[%s8438_s23 + $0x350] sm:$0xff] }
 0x3fa   : > { %6633 = vmatmul.mubr.msk.f32.gmra.mrb[98].mxu1 %vm3434_vm5, %v3562_v26  ;;  %7222 = vmatprep.subr.bf16.mxu0 %v7221_v58  ;;  %v7754_v33 = vpop.eup %7753  ;;  %v7229_v17 = vpack.c.bf16 %v744_v8, %v743_v2  ;;  %v3293_v63 = vld [vmem:[%s8441_s14 + $0x230] sm:$0xff]  ;;  %v3294_v26 = vld [vmem:[%s8441_s14 + $0x238] sm:$0xff] }
 0x3fb   : > { %6576 = vmatprep.mubr.msk.f32.mxu0 %vm3417_vm6, %v3545_v61  ;;  %v3012_v46 = vpop.xlane.xlu1 %3011  ;;  %7256 = vmatpush3.bf16.msra.mxu1 %v7253_v18  ;;  %v3564_v20 = vmul.f32 %v7754_v33, %v10068_v38  ;;  %v7233_v38 = vpack.c.bf16 %v746_v34, %v745_v5  ;;  %vm3421_vm14 = vcmp.ge.u32.totalorder %v3293_v63, 0  ;;  %v7273_v33 = vpack.c.bf16 %v766_v23, %v765_v59  ;;  %v3313_v23 = vld [vmem:[%s8441_s14 + $0x2d0] sm:$0xff] }
 0x3fc   : > { %7763 = vrcp.f32 %v3012_v46  ;;  %6577 = vmatmul.mubr.msk.f32.gmra.mrb[98].mxu0 %vm3418_vm7, %v3546_v56  ;;  %7258 = vmatprep.subr.bf16.mxu1 %v7257_v13  ;;  %v750_v46 = vld [vmem:[%s8438_s23 + $0x378] sm:$0xff]  ;;  %vm3422_vm15 = vcmp.ge.u32.totalorder %v3294_v26, 0  ;;  %vm3441_vm4 = vcmp.ge.u32.totalorder %v3313_v23, 0 }
 0x3fd   : > { %7765 = vrcp.f32 %v2982_v57  ;;  %v2980_v16 = vpop.xlane.xlu0 %2979  ;;  %7224 = vmatpush3.bf16.msra.mxu0 %v7221_v58  ;;  %v3318_v23 = vld [vmem:[%s8441_s14 + $0x2f8] sm:$0xff] }
 0x3fe   : > { %v7756_v35 = vpop.eup %7755  ;;  %7767 = vrcp.f32 %v2980_v16  ;;  %7226 = vmatprep.subr.bf16.mxu0 %v7225_v27 }
 0x3ff   : > { %v7758_v43 = vpop.eup %7757  ;;  %v3018_v1 = vpop.xlane.xlu1 %3017  ;;  %v3563_v6 = vmul.f32 %v7756_v35, %v10079_v39  ;;  %7260 = vmatpush3.bf16.msra.mxu1 %v7257_v13  ;;  %v763_v39 = vld [vmem:[%s8438_s23 + $0x3e0] sm:$0xff]  ;;  %v11505_v35 = vld [vmem:[#allocation58_spill] sm:$0xff] }
 0x400   : > { %v7760_v14 = vpop.eup %7759  ;;  %7262 = vmatprep.subr.bf16.mxu1 %v7261_v48  ;;  %v3548_v3 = vmul.f32 %v7758_v43, %v11501_v29  ;;  %7769 = vrcp.f32 %v3018_v1  ;;  %v7269_v58 = vpack.c.bf16 %v764_v49, %v763_v39  ;;  %v3311_v1 = vld [vmem:[%s8441_s14 + $0x2c0] sm:$0xff] }
 0x401   : > { %v2986_v54 = vpop.xlane.xlu0 %2985  ;;  %6635 = vmatprep.mubr.msk.f32.mxu1 %vm3435_vm8, %v3563_v6  ;;  %v3547_v18 = vmul.f32 %v7760_v14, %v10083_v31  ;;  %7228 = vmatpush3.bf16.msra.mxu0 %v7225_v27  ;;  %v747_v31 = vld [vmem:[%s8438_s23 + $0x360] sm:$0xff]  ;;  %v749_v27 = vld [vmem:[%s8438_s23 + $0x370] sm:$0xff]  ;;  %v3312_v6 = vld [vmem:[%s8441_s14 + $0x2c8] sm:$0xff]  ;;  %vm3439_vm0 = vcmp.ge.u32.totalorder %v3311_v1, 0 }
 0x402   : > { %6636 = vmatmul.mubr.msk.f32.gmra.mrb[100].mxu1 %vm3436_vm9, %v3564_v20  ;;  %7230 = vmatprep.subr.bf16.mxu0 %v7229_v17  ;;  %v7762_v4 = vpop.eup %7761  ;;  %v7237_v13 = vpack.c.bf16 %v748_v22, %v747_v31  ;;  %v3295_v14 = vld [vmem:[%s8441_s14 + $0x240] sm:$0xff]  ;;  %vm3440_vm1 = vcmp.ge.u32.totalorder %v3312_v6, 0  ;;  %v11507_v31 = vld [vmem:[#allocation96_spill] sm:$0xff] }
 0x403   : > { %6579 = vmatprep.mubr.msk.f32.mxu0 %vm3419_vm10, %v3547_v18  ;;  %v3016_v36 = vpop.xlane.xlu1 %3015  ;;  %7264 = vmatpush3.bf16.msra.mxu1 %v7261_v48  ;;  %v3566_v48 = vmul.f32 %v7762_v4, %v11503_v0  ;;  %v3296_v18 = vld [vmem:[%s8441_s14 + $0x248] sm:$0xff]  ;;  %vm3423_vm2 = vcmp.ge.u32.totalorder %v3295_v14, 0 }
 0x404   : > { %7771 = vrcp.f32 %v3016_v36  ;;  %6580 = vmatmul.mubr.msk.f32.gmra.mrb[100].mxu0 %vm3420_vm11, %v3548_v3  ;;  %7266 = vmatprep.subr.bf16.mxu1 %v7265_v10  ;;  %v11506_v3 = vld [vmem:[#allocation59_spill] sm:$0xff]  ;;  %vm3424_vm3 = vcmp.ge.u32.totalorder %v3296_v18, 0  ;;  %v3316_v1 = vld [vmem:[%s8441_s14 + $0x2e8] sm:$0xff] }
 0x405   : > { %7773 = vrcp.f32 %v2986_v54  ;;  %v2984_v7 = vpop.xlane.xlu0 %2983  ;;  %7232 = vmatpush3.bf16.msra.mxu0 %v7229_v17  ;;  %v7241_v17 = vpack.c.bf16 %v750_v46, %v749_v27  ;;  %vm3444_vm9 = vcmp.ge.u32.totalorder %v3316_v1, 0 }
 0x406   : > { %v7764_v37 = vpop.eup %7763  ;;  %7775 = vrcp.f32 %v2984_v7  ;;  %7234 = vmatprep.subr.bf16.mxu0 %v7233_v38  ;;  %v6407_v61 = vpop.f32.mrb[64].mxu1  ;;  %v11509_v7 = vld [vmem:[#allocation92_spill] sm:$0xff] }
 0x407   : > { %v7766_v57 = vpop.eup %7765  ;;  %v3022_v52 = vpop.xlane.xlu1 %3021  ;;  %v3565_v56 = vmul.f32 %v7764_v37, %v11502_v50  ;;  %7268 = vmatpush3.bf16.msra.mxu1 %v7265_v10  ;;  %4912 = vst [vmem:[%s10601_s29 + $0x88] sm:$0xff] %v6407_v61  ;;  %v3314_v37 = vld [vmem:[%s8441_s14 + $0x2d8] sm:$0xff] }
 0x408   : > { %v7768_v12 = vpop.eup %7767  ;;  %v6351_v2 = vpop.f32.mrb[64].mxu0  ;;  %7270 = vmatprep.subr.bf16.mxu1 %v7269_v58  ;;  %v3550_v62 = vmul.f32 %v7766_v57, %v11505_v35  ;;  %7777 = vrcp.f32 %v3022_v52  ;;  %v3297_v57 = vld [vmem:[%s8441_s14 + $0x250] sm:$0xff]  ;;  %vm3442_vm5 = vcmp.ge.u32.totalorder %v3314_v37, 0 }
 0x409   : > { %v3946_v8 = vpop.f32.mrb[65].mxu1  ;;  %4896 = vst [vmem:[%s10601_s29 + $0x8] sm:$0xff] %v6351_v2  ;;  %v3801_v16 = vpop.f32.mrb[65].mxu0  ;;  %6638 = vmatprep.mubr.msk.f32.mxu1 %vm3437_vm12, %v3565_v56  ;;  %v3549_v51 = vmul.f32 %v7768_v12, %v11504_v45  ;;  %7236 = vmatpush3.bf16.msra.mxu0 %v7233_v38  ;;  %v3298_v56 = vld [vmem:[%s8441_s14 + $0x258] sm:$0xff]  ;;  %v11510_v2 = vld [vmem:[#allocation63_spill] sm:$0xff]  ;;  %vm3425_vm6 = vcmp.ge.u32.totalorder %v3297_v57, 0 }
 0x40a   : > { %4911 = vst [vmem:[%s10601_s29 + $0x80] sm:$0xff] %v3946_v8  ;;  %v2990_v15 = vpop.xlane.xlu0 %2989  ;;  %4895 = vst [vmem:[%s10601_s29] sm:$0xff] %v3801_v16  ;;  %6639 = vmatmul.mubr.msk.f32.gmra.mrb[102].mxu1 %vm3438_vm13, %v3566_v48  ;;  %7238 = vmatprep.subr.bf16.mxu0 %v7237_v13  ;;  %v7770_v5 = vpop.eup %7769  ;;  %v11512_v45 = vld [vmem:[#allocation101_spill] sm:$0xff]  ;;  %vm3426_vm7 = vcmp.ge.u32.totalorder %v3298_v56, 0  ;;  %vm3446_vm13 = vcmp.ge.u32.totalorder %v3318_v23, 0 }
 0x40b   : > { %6582 = vmatprep.mubr.msk.f32.mxu0 %vm3421_vm14, %v3549_v51  ;;  %v3020_v43 = vpop.xlane.xlu1 %3019  ;;  %7272 = vmatpush3.bf16.msra.mxu1 %v7269_v58  ;;  %v3568_v22 = vmul.f32 %v7770_v5, %v11507_v31  ;;  %v11508_v58 = vld [vmem:[#allocation60_spill] sm:$0xff]  ;;  %v11513_v35 = vld [vmem:[#allocation61_spill] sm:$0xff] }
 0x40c   : > { %7779 = vrcp.f32 %v3020_v43  ;;  %6583 = vmatmul.mubr.msk.f32.gmra.mrb[102].mxu0 %vm3422_vm15, %v3550_v62  ;;  %7274 = vmatprep.subr.bf16.mxu1 %v7273_v33  ;;  %v3315_v43 = vld [vmem:[%s8441_s14 + $0x2e0] sm:$0xff] }
 0x40d   : > { %7781 = vrcp.f32 %v2990_v15  ;;  %7240 = vmatpush3.bf16.msra.mxu0 %v7237_v13  ;;  %vm3443_vm8 = vcmp.ge.u32.totalorder %v3315_v43, 0  ;;  %v3336_v43 = vld [vmem:[%s8441_s14 + $0x388] sm:$0xff] }
 0x40e   : > { %v2988_v34 = vpop.xlane.xlu0 %2987  ;;  %v7772_v20 = vpop.eup %7771  ;;  %7242 = vmatprep.subr.bf16.mxu0 %v7241_v17 }
 0x40f   : > { %7783 = vrcp.f32 %v2988_v34  ;;  %v6410_v10 = vpop.f32.mrb[66].mxu1  ;;  %v6354_v54 = vpop.f32.mrb[66].mxu0  ;;  %v3567_v38 = vmul.f32 %v7772_v20, %v11506_v3  ;;  %7276 = vmatpush3.bf16.msra.mxu1 %v7273_v33  ;;  %v11511_v33 = vld [vmem:[#allocation100_spill] sm:$0xff]  ;;  %v3299_v34 = vld [vmem:[%s8441_s14 + $0x260] sm:$0xff] }
 0x410   : > { %v7774_v39 = vpop.eup %7773  ;;  %4914 = vst [vmem:[%s10601_s29 + $0x98] sm:$0xff] %v6410_v10  ;;  %4898 = vst [vmem:[%s10601_s29 + $0x18] sm:$0xff] %v6354_v54  ;;  %v3956_v49 = vpop.f32.mrb[67].mxu1  ;;  %v3300_v54 = vld [vmem:[%s8441_s14 + $0x268] sm:$0xff]  ;;  %vm3427_vm10 = vcmp.ge.u32.totalorder %v3299_v34, 0 }
 0x411   : > { %v3026_v29 = vpop.xlane.xlu1 %3025  ;;  %v7776_v36 = vpop.eup %7775  ;;  %4913 = vst [vmem:[%s10601_s29 + $0x90] sm:$0xff] %v3956_v49  ;;  %6641 = vmatprep.mubr.msk.f32.mxu1 %vm3439_vm0, %v3567_v38  ;;  %7244 = vmatpush3.bf16.msra.mxu0 %v7241_v17  ;;  %v3552_v63 = vmul.f32 %v7774_v39, %v11509_v7  ;;  %vm3428_vm11 = vcmp.ge.u32.totalorder %v3300_v54, 0 }
 0x412   : > { %v3811_v9 = vpop.f32.mrb[67].mxu0  ;;  %v2994_v28 = vpop.xlane.xlu0 %2993  ;;  %v3551_v4 = vmul.f32 %v7776_v36, %v11508_v58  ;;  %6642 = vmatmul.mubr.msk.f32.gmra.mrb[104].mxu1 %vm3440_vm1, %v3568_v22  ;;  %7785 = vrcp.f32 %v3026_v29  ;;  %v11514_v29 = vld [vmem:[#allocation62_spill] sm:$0xff]  ;;  %vm3464_vm1 = vcmp.ge.u32.totalorder %v3336_v43, 0 }
 0x413   : > { %4897 = vst [vmem:[%s10601_s29 + $0x10] sm:$0xff] %v3811_v9  ;;  %v7778_v26 = vpop.eup %7777  ;;  %v11515_v9 = vld [vmem:[#allocation98_spill] sm:$0xff] }
 0x414   : > { %6585 = vmatprep.mubr.msk.f32.mxu0 %vm3423_vm2, %v3551_v4  ;;  %v3570_v16 = vmul.f32 %v7778_v26, %v11511_v33  ;;  %v11517_v4 = vld [vmem:[#allocation99_spill] sm:$0xff] }
 0x415   : > { %v3024_v59 = vpop.xlane.xlu1 %3023  ;;  %6586 = vmatmul.mubr.msk.f32.gmra.mrb[104].mxu0 %vm3424_vm3, %v3552_v63 }
 0x416   : > { %7787 = vrcp.f32 %v3024_v59  ;;  %v2992_v13 = vpop.xlane.xlu0 %2991  ;;  %v7780_v61 = vpop.eup %7779  ;;  %v3317_v59 = vld [vmem:[%s8441_s14 + $0x2f0] sm:$0xff] }
 0x417   : > { %7789 = vrcp.f32 %v2994_v28  ;;  %v6413_v52 = vpop.f32.mrb[68].mxu1  ;;  %v6357_v50 = vpop.f32.mrb[68].mxu0  ;;  %v3569_v8 = vmul.f32 %v7780_v61, %v11510_v2  ;;  %v11516_v28 = vld [vmem:[#allocation64_spill] sm:$0xff]  ;;  %vm3445_vm12 = vcmp.ge.u32.totalorder %v3317_v59, 0  ;;  %v3338_v59 = vld [vmem:[%s8441_s14 + $0x398] sm:$0xff] }
 0x418   : > { %7791 = vrcp.f32 %v2992_v13  ;;  %v7782_v27 = vpop.eup %7781  ;;  %4916 = vst [vmem:[%s10601_s29 + $0xa8] sm:$0xff] %v6413_v52  ;;  %4900 = vst [vmem:[%s10601_s29 + $0x28] sm:$0xff] %v6357_v50  ;;  %v3966_v46 = vpop.f32.mrb[69].mxu1  ;;  %v3301_v13 = vld [vmem:[%s8441_s14 + $0x270] sm:$0xff]  ;;  %v3302_v50 = vld [vmem:[%s8441_s14 + $0x278] sm:$0xff] }
 0x419   : > { %v3030_v12 = vpop.xlane.xlu1 %3029  ;;  %v7784_v0 = vpop.eup %7783  ;;  %4915 = vst [vmem:[%s10601_s29 + $0xa0] sm:$0xff] %v3966_v46  ;;  %6644 = vmatprep.mubr.msk.f32.mxu1 %vm3441_vm4, %v3569_v8  ;;  %v3554_v62 = vmul.f32 %v7782_v27, %v11513_v35  ;;  %vm3429_vm14 = vcmp.ge.u32.totalorder %v3301_v13, 0  ;;  %vm3430_vm15 = vcmp.ge.u32.totalorder %v3302_v50, 0 }
 0x41a   : > { %v3821_v48 = vpop.f32.mrb[69].mxu0  ;;  %v2998_v15 = vpop.xlane.xlu0 %2997  ;;  %v3553_v51 = vmul.f32 %v7784_v0, %v11512_v45  ;;  %6645 = vmatmul.mubr.msk.f32.gmra.mrb[106].mxu1 %vm3442_vm5, %v3570_v16  ;;  %7793 = vrcp.f32 %v3030_v12  ;;  %v11518_v12 = vld [vmem:[#allocation66_spill] sm:$0xff]  ;;  %vm3466_vm5 = vcmp.ge.u32.totalorder %v3338_v59, 0 }
 0x41b   : > { %4899 = vst [vmem:[%s10601_s29 + $0x20] sm:$0xff] %v3821_v48  ;;  %v11519_v48 = vld [vmem:[#allocation104_spill] sm:$0xff] }
 0x41c   : > { %6588 = vmatprep.mubr.msk.f32.mxu0 %vm3425_vm6, %v3553_v51  ;;  %v7786_v6 = vpop.eup %7785  ;;  %v11521_v51 = vld [vmem:[#allocation65_spill] sm:$0xff] }
 0x41d   : > { %v3028_v17 = vpop.xlane.xlu1 %3027  ;;  %6589 = vmatmul.mubr.msk.f32.gmra.mrb[106].mxu0 %vm3426_vm7, %v3554_v62  ;;  %v3572_v31 = vmul.f32 %v7786_v6, %v11515_v9 }
 0x41e   : > { %7795 = vrcp.f32 %v3028_v17  ;;  %v2996_v5 = vpop.xlane.xlu0 %2995  ;;  %v6416_v20 = vpop.f32.mrb[70].mxu1  ;;  %v3335_v17 = vld [vmem:[%s8441_s14 + $0x380] sm:$0xff] }
 0x41f   : > { %7797 = vrcp.f32 %v2998_v15  ;;  %v6360_v10 = vpop.f32.mrb[70].mxu0  ;;  %4918 = vst [vmem:[%s10601_s29 + $0xb8] sm:$0xff] %v6416_v20  ;;  %v3976_v39 = vpop.f32.mrb[71].mxu1  ;;  %v11520_v15 = vld [vmem:[#allocation105_spill] sm:$0xff]  ;;  %vm3463_vm0 = vcmp.ge.u32.totalorder %v3335_v17, 0  ;;  %v3340_v17 = vld [vmem:[%s8441_s14 + $0x3a8] sm:$0xff] }
 0x420   : > { %v7788_v14 = vpop.eup %7787  ;;  %7799 = vrcp.f32 %v2996_v5  ;;  %4902 = vst [vmem:[%s10601_s29 + $0x38] sm:$0xff] %v6360_v10  ;;  %4917 = vst [vmem:[%s10601_s29 + $0xb0] sm:$0xff] %v3976_v39  ;;  %v3831_v36 = vpop.f32.mrb[71].mxu0  ;;  %v3319_v5 = vld [vmem:[%s8441_s14 + $0x300] sm:$0xff]  ;;  %v3320_v10 = vld [vmem:[%s8441_s14 + $0x308] sm:$0xff] }
 0x421   : > { %v7790_v18 = vpop.eup %7789  ;;  %v3066_v49 = vpop.xlane.xlu1 %3065  ;;  %v3571_v3 = vmul.f32 %v7788_v14, %v11514_v29  ;;  %4901 = vst [vmem:[%s10601_s29 + $0x30] sm:$0xff] %v3831_v36  ;;  %vm3447_vm2 = vcmp.ge.u32.totalorder %v3319_v5, 0  ;;  %vm3448_vm3 = vcmp.ge.u32.totalorder %v3320_v10, 0 }
 0x422   : > { %v7792_v38 = vpop.eup %7791  ;;  %v3034_v22 = vpop.xlane.xlu0 %3033  ;;  %v3556_v7 = vmul.f32 %v7790_v18, %v11517_v4  ;;  %7801 = vrcp.f32 %v3066_v49  ;;  %v11522_v49 = vld [vmem:[#allocation67_spill] sm:$0xff] }
 0x423   : > { %6647 = vmatprep.mubr.msk.f32.mxu1 %vm3443_vm8, %v3571_v3  ;;  %v3555_v58 = vmul.f32 %v7792_v38, %v11516_v28  ;;  %v11523_v38 = vld [vmem:[#allocation102_spill] sm:$0xff] }
 0x424   : > { %6648 = vmatmul.mubr.msk.f32.gmra.mrb[108].mxu1 %vm3444_vm9, %v3572_v31  ;;  %v7794_v37 = vpop.eup %7793  ;;  %vm3468_vm9 = vcmp.ge.u32.totalorder %v3340_v17, 0 }
 0x425   : > { %6591 = vmatprep.mubr.msk.f32.mxu0 %vm3427_vm10, %v3555_v58  ;;  %v3064_v63 = vpop.xlane.xlu1 %3063  ;;  %v3574_v33 = vmul.f32 %v7794_v37, %v11519_v48  ;;  %v11525_v58 = vld [vmem:[#allocation103_spill] sm:$0xff] }
 0x426   : > { %7803 = vrcp.f32 %v3064_v63  ;;  %6592 = vmatmul.mubr.msk.f32.gmra.mrb[108].mxu0 %vm3428_vm11, %v3556_v7  ;;  %v3032_v26 = vpop.xlane.xlu0 %3031  ;;  %v6419_v61 = vpop.f32.mrb[72].mxu1  ;;  %v3337_v63 = vld [vmem:[%s8441_s14 + $0x390] sm:$0xff] }
 0x427   : > { %7805 = vrcp.f32 %v3034_v22  ;;  %v6363_v52 = vpop.f32.mrb[72].mxu0  ;;  %4920 = vst [vmem:[%s10601_s29 + $0xc8] sm:$0xff] %v6419_v61  ;;  %v3986_v27 = vpop.f32.mrb[73].mxu1  ;;  %v11524_v22 = vld [vmem:[#allocation68_spill] sm:$0xff]  ;;  %vm3465_vm4 = vcmp.ge.u32.totalorder %v3337_v63, 0  ;;  %v3342_v63 = vld [vmem:[%s8441_s14 + $0x3b8] sm:$0xff] }
 0x428   : > { %v7796_v57 = vpop.eup %7795  ;;  %7807 = vrcp.f32 %v3032_v26  ;;  %4904 = vst [vmem:[%s10601_s29 + $0x48] sm:$0xff] %v6363_v52  ;;  %4919 = vst [vmem:[%s10601_s29 + $0xc0] sm:$0xff] %v3986_v27  ;;  %v3841_v0 = vpop.f32.mrb[73].mxu0  ;;  %v3321_v26 = vld [vmem:[%s8441_s14 + $0x310] sm:$0xff]  ;;  %v3322_v52 = vld [vmem:[%s8441_s14 + $0x318] sm:$0xff] }
 0x429   : > { %v7798_v56 = vpop.eup %7797  ;;  %v3070_v46 = vpop.xlane.xlu1 %3069  ;;  %v3573_v2 = vmul.f32 %v7796_v57, %v11518_v12  ;;  %4903 = vst [vmem:[%s10601_s29 + $0x40] sm:$0xff] %v3841_v0  ;;  %vm3449_vm6 = vcmp.ge.u32.totalorder %v3321_v26, 0  ;;  %v11527_v0 = vld [vmem:[#allocation109_spill] sm:$0xff]  ;;  %vm3450_vm7 = vcmp.ge.u32.totalorder %v3322_v52, 0  ;;  %v11534_v52 = vld [vmem:[#allocation23_spill] sm:$0xff] }
 0x42a   : > { %v7800_v8 = vpop.eup %7799  ;;  %v3038_v16 = vpop.xlane.xlu0 %3037  ;;  %v3558_v35 = vmul.f32 %v7798_v56, %v11521_v51  ;;  %7809 = vrcp.f32 %v3070_v46  ;;  %v11526_v46 = vld [vmem:[#allocation111_spill] sm:$0xff] }
 0x42b   : > { %6650 = vmatprep.mubr.msk.f32.mxu1 %vm3445_vm12, %v3573_v2  ;;  %v3557_v45 = vmul.f32 %v7800_v8, %v11520_v15 }
 0x42c   : > { %6651 = vmatmul.mubr.msk.f32.gmra.mrb[110].mxu1 %vm3446_vm13, %v3574_v33  ;;  %v7802_v1 = vpop.eup %7801  ;;  %vm3470_vm13 = vcmp.ge.u32.totalorder %v3342_v63, 0 }
 0x42d   : > { %6594 = vmatprep.mubr.msk.f32.mxu0 %vm3429_vm14, %v3557_v45  ;;  %v3068_v62 = vpop.xlane.xlu1 %3067  ;;  %v3592_v36 = vmul.f32 %v7802_v1, %v11523_v38  ;;  %v11529_v45 = vld [vmem:[#allocation69_spill] sm:$0xff]  ;;  %v11531_v38 = vld [vmem:[#allocation108_spill] sm:$0xff] }
 0x42e   : > { %7811 = vrcp.f32 %v3068_v62  ;;  %6595 = vmatmul.mubr.msk.f32.gmra.mrb[110].mxu0 %vm3430_vm15, %v3558_v35  ;;  %v3036_v6 = vpop.xlane.xlu0 %3035  ;;  %v6422_v14 = vpop.f32.mrb[74].mxu1  ;;  %v3339_v62 = vld [vmem:[%s8441_s14 + $0x3a0] sm:$0xff] }
 0x42f   : > { %7813 = vrcp.f32 %v3038_v16  ;;  %v6366_v20 = vpop.f32.mrb[74].mxu0  ;;  %4922 = vst [vmem:[%s10601_s29 + $0xd8] sm:$0xff] %v6422_v14  ;;  %v3996_v18 = vpop.f32.mrb[75].mxu1  ;;  %v11528_v16 = vld [vmem:[#allocation107_spill] sm:$0xff]  ;;  %vm3467_vm8 = vcmp.ge.u32.totalorder %v3339_v62, 0 }
 0x430   : > { %v7804_v34 = vpop.eup %7803  ;;  %7815 = vrcp.f32 %v3036_v6  ;;  %4906 = vst [vmem:[%s10601_s29 + $0x58] sm:$0xff] %v6366_v20  ;;  %4921 = vst [vmem:[%s10601_s29 + $0xd0] sm:$0xff] %v3996_v18  ;;  %v3851_v9 = vpop.f32.mrb[75].mxu0  ;;  %v3323_v6 = vld [vmem:[%s8441_s14 + $0x320] sm:$0xff]  ;;  %v3324_v20 = vld [vmem:[%s8441_s14 + $0x328] sm:$0xff] }
 0x431   : > { %v7806_v54 = vpop.eup %7805  ;;  %v3074_v39 = vpop.xlane.xlu1 %3073  ;;  %v3591_v29 = vmul.f32 %v7804_v34, %v11522_v49  ;;  %4905 = vst [vmem:[%s10601_s29 + $0x50] sm:$0xff] %v3851_v9  ;;  %vm3451_vm10 = vcmp.ge.u32.totalorder %v3323_v6, 0  ;;  %v11532_v9 = vld [vmem:[#allocation72_spill] sm:$0xff]  ;;  %vm3452_vm11 = vcmp.ge.u32.totalorder %v3324_v20, 0  ;;  %v3327_v62 = vld [vmem:[%s8441_s14 + $0x340] sm:$0xff] }
 0x432   : > { %v7808_v3 = vpop.eup %7807  ;;  %v3042_v31 = vpop.xlane.xlu0 %3041  ;;  %v3576_v4 = vmul.f32 %v7806_v54, %v11525_v58  ;;  %7817 = vrcp.f32 %v3074_v39  ;;  %v11530_v39 = vld [vmem:[#allocation71_spill] sm:$0xff] }
 0x433   : > { %6741 = vmatprep.mubr.msk.f32.mxu1 %vm3463_vm0, %v3591_v29  ;;  %v3575_v28 = vmul.f32 %v7808_v3, %v11524_v22 }
 0x434   : > { %6742 = vmatmul.mubr.msk.f32.vlgmr.msra.gmra.mrb[112].mxu1 %vm3464_vm1, %v3592_v36  ;;  %v7810_v23 = vpop.eup %7809 }
 0x435   : > { %6685 = vmatprep.mubr.msk.f32.mxu0 %vm3447_vm2, %v3575_v28  ;;  %v3072_v7 = vpop.xlane.xlu1 %3071  ;;  %v3594_v48 = vmul.f32 %v7810_v23, %v11527_v0  ;;  %v11533_v28 = vld [vmem:[#allocation70_spill] sm:$0xff]  ;;  %v3325_v23 = vld [vmem:[%s8441_s14 + $0x330] sm:$0xff]  ;;  %vm3455_vm2 = vcmp.ge.u32.totalorder %v3327_v62, 0 }
 0x436   : > { %7819 = vrcp.f32 %v3072_v7  ;;  %6686 = vmatmul.mubr.msk.f32.vlgmr.msra.gmra.mrb[112].mxu0 %vm3448_vm3, %v3576_v4  ;;  %v3040_v37 = vpop.xlane.xlu0 %3039  ;;  %v6425_v57 = vpop.f32.mrb[76].mxu1  ;;  %v3341_v7 = vld [vmem:[%s8441_s14 + $0x3b0] sm:$0xff]  ;;  %vm3453_vm14 = vcmp.ge.u32.totalorder %v3325_v23, 0  ;;  %v11537_v0 = vld [vmem:[#allocation22_spill] sm:$0xff]  ;;  %v3332_v23 = vld [vmem:[%s8441_s14 + $0x368] sm:$0xff] }
 0x437   : > { %7821 = vrcp.f32 %v3042_v31  ;;  %v6369_v61 = vpop.f32.mrb[76].mxu0  ;;  %4924 = vst [vmem:[%s10601_s29 + $0xe8] sm:$0xff] %v6425_v57  ;;  %v4006_v56 = vpop.f32.mrb[77].mxu1  ;;  %vm3469_vm12 = vcmp.ge.u32.totalorder %v3341_v7, 0 }
 0x438   : > { %v7812_v13 = vpop.eup %7811  ;;  %7823 = vrcp.f32 %v3040_v37  ;;  %4908 = vst [vmem:[%s10601_s29 + $0x68] sm:$0xff] %v6369_v61  ;;  %4923 = vst [vmem:[%s10601_s29 + $0xe0] sm:$0xff] %v4006_v56  ;;  %v3861_v8 = vpop.f32.mrb[77].mxu0 }
 0x439   : > { %v7814_v50 = vpop.eup %7813  ;;  %v3078_v27 = vpop.xlane.xlu1 %3077  ;;  %v3593_v12 = vmul.f32 %v7812_v13, %v11526_v46  ;;  %4907 = vst [vmem:[%s10601_s29 + $0x60] sm:$0xff] %v3861_v8  ;;  %v3326_v13 = vld [vmem:[%s8441_s14 + $0x338] sm:$0xff] }
 0x43a   : > { %v7816_v2 = vpop.eup %7815  ;;  %v3046_v33 = vpop.xlane.xlu0 %3045  ;;  %v3578_v51 = vmul.f32 %v7814_v50, %v11529_v45  ;;  %7825 = vrcp.f32 %v3078_v27  ;;  %v11535_v27 = vld [vmem:[#allocation73_spill] sm:$0xff]  ;;  %vm3454_vm15 = vcmp.ge.u32.totalorder %v3326_v13, 0 }
 0x43b   : > { %6744 = vmatprep.mubr.msk.f32.mxu1 %vm3465_vm4, %v3593_v12  ;;  %v3577_v15 = vmul.f32 %v7816_v2, %v11528_v16  ;;  %v11536_v12 = vld [vmem:[#allocation74_spill] sm:$0xff]  ;;  %v3343_v16 = vld [vmem:[%s8441_s14 + $0x3c0] sm:$0xff] }
 0x43c   : > { %6745 = vmatmul.mubr.msk.f32.gmra.mrb[114].mxu1 %vm3466_vm5, %v3594_v48  ;;  %v7818_v43 = vpop.eup %7817  ;;  %vm3471_vm0 = vcmp.ge.u32.totalorder %v3343_v16, 0 }
 0x43d   : > { %6688 = vmatprep.mubr.msk.f32.mxu0 %vm3449_vm6, %v3577_v15  ;;  %v3076_v35 = vpop.xlane.xlu1 %3075  ;;  %v3596_v36 = vmul.f32 %v7818_v43, %v11531_v38  ;;  %v3344_v15 = vld [vmem:[%s8441_s14 + $0x3c8] sm:$0xff]  ;;  %v3330_v38 = vld [vmem:[%s8441_s14 + $0x358] sm:$0xff] }
 0x43e   : > { %7827 = vrcp.f32 %v3076_v35  ;;  %6689 = vmatmul.mubr.msk.f32.gmra.mrb[114].mxu0 %vm3450_vm7, %v3578_v51  ;;  %v3044_v1 = vpop.xlane.xlu0 %3043  ;;  %v6428_v34 = vpop.f32.mrb[78].mxu1  ;;  %vm3472_vm1 = vcmp.ge.u32.totalorder %v3344_v15, 0  ;;  %vm3458_vm7 = vcmp.ge.u32.totalorder %v3330_v38, 0 }
 0x43f   : > { %7829 = vrcp.f32 %v3046_v33  ;;  %v6372_v14 = vpop.f32.mrb[78].mxu0  ;;  %4926 = vst [vmem:[%s10601_s29 + $0xf8] sm:$0xff] %v6428_v34  ;;  %v4016_v54 = vpop.f32.mrb[79].mxu1 }
 0x440   : > { %v7820_v5 = vpop.eup %7819  ;;  %7831 = vrcp.f32 %v3044_v1  ;;  %4910 = vst [vmem:[%s10601_s29 + $0x78] sm:$0xff] %v6372_v14  ;;  %4925 = vst [vmem:[%s10601_s29 + $0xf0] sm:$0xff] %v4016_v54  ;;  %v3871_v3 = vpop.f32.mrb[79].mxu0  ;;  %v3328_v1 = vld [vmem:[%s8441_s14 + $0x348] sm:$0xff] }
 0x441   : > { %v7822_v10 = vpop.eup %7821  ;;  %v3082_v18 = vpop.xlane.xlu1 %3081  ;;  %v3595_v49 = vmul.f32 %v7820_v5, %v11530_v39  ;;  %4909 = vst [vmem:[%s10601_s29 + $0x70] sm:$0xff] %v3871_v3  ;;  %vm3456_vm3 = vcmp.ge.u32.totalorder %v3328_v1, 0 }
 0x442   : > { %v7824_v29 = vpop.eup %7823  ;;  %v3050_v22 = vpop.xlane.xlu0 %3049  ;;  %v3580_v58 = vmul.f32 %v7822_v10, %v11533_v28  ;;  %7833 = vrcp.f32 %v3082_v18  ;;  %v3346_v18 = vld [vmem:[%s8441_s14 + $0x3d8] sm:$0xff] }
 0x443   : > { %6747 = vmatprep.mubr.msk.f32.mxu1 %vm3467_vm8, %v3595_v49  ;;  %v3579_v31 = vmul.f32 %v7824_v29, %v11532_v9  ;;  %v3329_v29 = vld [vmem:[%s8441_s14 + $0x350] sm:$0xff]  ;;  %vm3474_vm5 = vcmp.ge.u32.totalorder %v3346_v18, 0 }
 0x444   : > { %6748 = vmatmul.mubr.msk.f32.gmra.mrb[116].mxu1 %vm3468_vm9, %v3596_v36  ;;  %v7826_v59 = vpop.eup %7825  ;;  %vm3457_vm6 = vcmp.ge.u32.totalorder %v3329_v29, 0 }
 0x445   : > { %6691 = vmatprep.mubr.msk.f32.mxu0 %vm3451_vm10, %v3579_v31  ;;  %v3080_v4 = vpop.xlane.xlu1 %3079  ;;  %v3598_v46 = vmul.f32 %v7826_v59, %v11535_v27  ;;  %v3331_v59 = vld [vmem:[%s8441_s14 + $0x360] sm:$0xff] }
 0x446   : > { %7835 = vrcp.f32 %v3080_v4  ;;  %6692 = vmatmul.mubr.msk.f32.gmra.mrb[116].mxu0 %vm3452_vm11, %v3580_v58  ;;  %v3048_v26 = vpop.xlane.xlu0 %3047  ;;  %v3347_v58 = vld [vmem:[%s8441_s14 + $0x3e0] sm:$0xff]  ;;  %v3348_v4 = vld [vmem:[%s8441_s14 + $0x3e8] sm:$0xff]  ;;  %vm3459_vm10 = vcmp.ge.u32.totalorder %v3331_v59, 0  ;;  %vm3460_vm11 = vcmp.ge.u32.totalorder %v3332_v23, 0 }
 0x447   : > { %7837 = vrcp.f32 %v3050_v22  ;;  %vm3475_vm8 = vcmp.ge.u32.totalorder %v3347_v58, 0  ;;  %vm3476_vm9 = vcmp.ge.u32.totalorder %v3348_v4, 0 }
 0x448   : > { %v7828_v37 = vpop.eup %7827  ;;  %7839 = vrcp.f32 %v3048_v26 }
 0x449   : > { %v7830_v57 = vpop.eup %7829  ;;  %v3086_v61 = vpop.xlane.xlu1 %3085  ;;  %v3597_v50 = vmul.f32 %v7828_v37, %v11534_v52  ;;  %v3349_v37 = vld [vmem:[%s8441_s14 + $0x3f0] sm:$0xff] }
 0x44a   : > { %v7832_v56 = vpop.eup %7831  ;;  %v3054_v8 = vpop.xlane.xlu0 %3053  ;;  %v3582_v48 = vmul.f32 %v7830_v57, %v11537_v0  ;;  %7841 = vrcp.f32 %v3086_v61  ;;  %v3333_v52 = vld [vmem:[%s8441_s14 + $0x370] sm:$0xff] }
 0x44b   : > { %6750 = vmatprep.mubr.msk.f32.mxu1 %vm3469_vm12, %v3597_v50  ;;  %v3581_v2 = vmul.f32 %v7832_v56, %v11536_v12  ;;  %vm3477_vm12 = vcmp.ge.u32.totalorder %v3349_v37, 0  ;;  %v3350_v56 = vld [vmem:[%s8441_s14 + $0x3f8] sm:$0xff] }
 0x44c   : > { %6751 = vmatmul.mubr.msk.f32.gmra.mrb[118].mxu1 %vm3470_vm13, %v3598_v46  ;;  %v7834_v45 = vpop.eup %7833  ;;  %vm3461_vm13 = vcmp.ge.u32.totalorder %v3333_v52, 0  ;;  %v3334_v46 = vld [vmem:[%s8441_s14 + $0x378] sm:$0xff] }
 0x44d   : > { %6694 = vmatprep.mubr.msk.f32.mxu0 %vm3453_vm14, %v3581_v2  ;;  %v3084_v33 = vpop.xlane.xlu1 %3083  ;;  %v3600_v5 = vmul.f32 %v7834_v45, %v10340_v44  ;;  %vm3478_vm14 = vcmp.ge.u32.totalorder %v3350_v56, 0  ;;  %v11538_v12 = vld [vmem:[#allocation26_spill] sm:$0xff] }
 0x44e   : > { %7843 = vrcp.f32 %v3084_v33  ;;  %6695 = vmatmul.mubr.msk.f32.gmra.mrb[118].mxu0 %vm3454_vm15, %v3582_v48  ;;  %v3052_v35 = vpop.xlane.xlu0 %3051  ;;  %vm3462_vm15 = vcmp.ge.u32.totalorder %v3334_v46, 0 }
 0x44f   : > { %7845 = vrcp.f32 %v3054_v8 }
 0x450   : > { %v7836_v51 = vpop.eup %7835  ;;  %7847 = vrcp.f32 %v3052_v35 }
 0x451   : > { %v3090_v17 = vpop.xlane.xlu1 %3089  ;;  %v3599_v43 = vmul.f32 %v7836_v51, %v10366_v32  ;;  %v7838_v6 = vpop.eup %7837  ;;  %v3345_v32 = vld [vmem:[%s8441_s14 + $0x3d0] sm:$0xff] }
 0x452   : > { %v7840_v34 = vpop.eup %7839  ;;  %v3058_v14 = vpop.xlane.xlu0 %3057  ;;  %7849 = vrcp.f32 %v3090_v17  ;;  %v3584_v54 = vmul.f32 %v7838_v6, %v10360_v47  ;;  %vm3473_vm4 = vcmp.ge.u32.totalorder %v3345_v32, 0 }
 0x453   : > { %6753 = vmatprep.mubr.msk.f32.mxu1 %vm3471_vm0, %v3599_v43  ;;  %v3583_v20 = vmul.f32 %v7840_v34, %v10392_v21 }
 0x454   : > { %6754 = vmatmul.mubr.msk.f32.gmra.mrb[120].mxu1 %vm3472_vm1, %v3600_v5  ;;  %v7842_v39 = vpop.eup %7841 }
 0x455   : > { %v3088_v10 = vpop.xlane.xlu1 %3087  ;;  %6697 = vmatprep.mubr.msk.f32.mxu0 %vm3455_vm2, %v3583_v20  ;;  %v3602_v36 = vmul.f32 %v7842_v39, %v10397_v42 }
 0x456   : > { %7851 = vrcp.f32 %v3088_v10  ;;  %6698 = vmatmul.mubr.msk.f32.gmra.mrb[120].mxu0 %vm3456_vm3, %v3584_v54  ;;  %v3056_v49 = vpop.xlane.xlu0 %3055 }
 0x457   : > { %7853 = vrcp.f32 %v3058_v14 }
 0x458   : > { %v7844_v44 = vpop.eup %7843  ;;  %7855 = vrcp.f32 %v3056_v49 }
 0x459   : > { %v3092_v21 = vpop.xlane.xlu1 %3091  ;;  %v3601_v3 = vmul.f32 %v7844_v44, %v10409_v53  ;;  %v7846_v47 = vpop.eup %7845 }
 0x45a   : > { %7857 = vrcp.f32 %v3092_v21  ;;  %v7848_v9 = vpop.eup %7847  ;;  %v3060_v31 = vpop.xlane.xlu0 %3059  ;;  %v3586_v28 = vmul.f32 %v7846_v47, %v10405_v55 }
 0x45b   : > { %6756 = vmatprep.mubr.msk.f32.mxu1 %vm3473_vm4, %v3601_v3  ;;  %v3585_v22 = vmul.f32 %v7848_v9, %v10428_v11  ;;  %7859 = vrcp.f32 %v3060_v31 }
 0x45c   : > { %6757 = vmatmul.mubr.msk.f32.gmra.mrb[122].mxu1 %vm3474_vm5, %v3602_v36  ;;  %v7850_v42 = vpop.eup %7849 }
 0x45d   : > { %v3094_v53 = vpop.xlane.xlu1 %3093  ;;  %6700 = vmatprep.mubr.msk.f32.mxu0 %vm3457_vm6, %v3585_v22  ;;  %v3604_v55 = vmul.f32 %v7850_v42, %v10434_v41 }
 0x45e   : > { %7861 = vrcp.f32 %v3094_v53  ;;  %6701 = vmatmul.mubr.msk.f32.gmra.mrb[122].mxu0 %vm3458_vm7, %v3586_v28  ;;  %v3062_v63 = vpop.xlane.xlu0 %3061 }
 0x45f   : > { %7863 = vrcp.f32 %v3062_v63 }
 0x460   : > { %v7852_v7 = vpop.eup %7851 }
 0x461   : > { %v3603_v11 = vmul.f32 %v7852_v7, %v10444_v30  ;;  %v7854_v26 = vpop.eup %7853 }
 0x462   : > { %v7856_v13 = vpop.eup %7855  ;;  %v3588_v30 = vmul.f32 %v7854_v26, %v10440_v25 }
 0x463   : > { %6759 = vmatprep.mubr.msk.f32.mxu1 %vm3475_vm8, %v3603_v11  ;;  %v3587_v61 = vmul.f32 %v7856_v13, %v10459_v60 }
 0x464   : > { %v7858_v57 = vpop.eup %7857  ;;  %6760 = vmatmul.mubr.msk.f32.gmra.mrb[124].mxu1 %vm3476_vm9, %v3604_v55 }
 0x465   : > { %v3605_v50 = vmul.f32 %v7858_v57, %v10462_v19  ;;  %6703 = vmatprep.mubr.msk.f32.mxu0 %vm3459_vm10, %v3587_v61  ;;  %v7860_v27 = vpop.eup %7859 }
 0x466   : > { %6704 = vmatmul.mubr.msk.f32.gmra.mrb[124].mxu0 %vm3460_vm11, %v3588_v30  ;;  %v3589_v60 = vmul.f32 %v7860_v27, %v10472_v24 }
 0x467   : > { %6762 = vmatprep.mubr.msk.f32.mxu1 %vm3477_vm12, %v3605_v50 }
 0x468   : > { %v7862_v41 = vpop.eup %7861  ;;  %6706 = vmatprep.mubr.msk.f32.mxu0 %vm3461_vm13, %v3589_v60 }
 0x469   : > { %v3606_v2 = vmul.f32 %v7862_v41, %v11538_v12  ;;  %v7864_v25 = vpop.eup %7863 }
 0x46a   : > { %v3590_v19 = vmul.f32 %v7864_v25, %v10490_v40 }
 0x46b   : > { %6763 = vmatmul.mubr.msk.f32.gmra.mrb[126].mxu1 %vm3478_vm14, %v3606_v2 }
 0x46c   : > { %6707 = vmatmul.mubr.msk.f32.gmra.mrb[126].mxu0 %vm3462_vm15, %v3590_v19 }
 0x486   : > { %v6519_v8 = vpop.f32.mrb[80].mxu1 }
 0x487   : > { %4944 = vst [vmem:[%s10601_s29 + $0x188] sm:$0xff] %v6519_v8  ;;  %v6463_v0 = vpop.f32.mrb[80].mxu0  ;;  %v4236_v24 = vpop.f32.mrb[81].mxu1 }
 0x488   : > { %4928 = vst [vmem:[%s10601_s29 + $0x108] sm:$0xff] %v6463_v0  ;;  %4943 = vst [vmem:[%s10601_s29 + $0x180] sm:$0xff] %v4236_v24  ;;  %v4091_v48 = vpop.f32.mrb[81].mxu0 }
 0x489   : > { %4927 = vst [vmem:[%s10601_s29 + $0x100] sm:$0xff] %v4091_v48 }
 0x48e   : > { %v6522_v33 = vpop.f32.mrb[82].mxu1  ;;  %v6466_v16 = vpop.f32.mrb[82].mxu0 }
 0x48f   : > { %4946 = vst [vmem:[%s10601_s29 + $0x198] sm:$0xff] %v6522_v33  ;;  %4930 = vst [vmem:[%s10601_s29 + $0x118] sm:$0xff] %v6466_v16  ;;  %v4246_v40 = vpop.f32.mrb[83].mxu1  ;;  %v4101_v15 = vpop.f32.mrb[83].mxu0 }
 0x490   : > { %4945 = vst [vmem:[%s10601_s29 + $0x190] sm:$0xff] %v4246_v40  ;;  %4929 = vst [vmem:[%s10601_s29 + $0x110] sm:$0xff] %v4101_v15 }
 0x496   : > { %v6525_v45 = vpop.f32.mrb[84].mxu1  ;;  %v6469_v51 = vpop.f32.mrb[84].mxu0 }
 0x497   : > { %4948 = vst [vmem:[%s10601_s29 + $0x1a8] sm:$0xff] %v6525_v45  ;;  %4932 = vst [vmem:[%s10601_s29 + $0x128] sm:$0xff] %v6469_v51  ;;  %v4256_v35 = vpop.f32.mrb[85].mxu1  ;;  %v4111_v62 = vpop.f32.mrb[85].mxu0 }
 0x498   : > { %4947 = vst [vmem:[%s10601_s29 + $0x1a0] sm:$0xff] %v4256_v35  ;;  %4931 = vst [vmem:[%s10601_s29 + $0x120] sm:$0xff] %v4111_v62 }
 0x49e   : > { %v6528_v17 = vpop.f32.mrb[86].mxu1  ;;  %v6472_v43 = vpop.f32.mrb[86].mxu0 }
 0x49f   : > { %4950 = vst [vmem:[%s10601_s29 + $0x1b8] sm:$0xff] %v6528_v17  ;;  %4934 = vst [vmem:[%s10601_s29 + $0x138] sm:$0xff] %v6472_v43  ;;  %v4266_v1 = vpop.f32.mrb[87].mxu1  ;;  %v4121_v6 = vpop.f32.mrb[87].mxu0 }
 0x4a0   : > { %4949 = vst [vmem:[%s10601_s29 + $0x1b0] sm:$0xff] %v4266_v1  ;;  %4933 = vst [vmem:[%s10601_s29 + $0x130] sm:$0xff] %v4121_v6 }
 0x4a5   : > { %v6531_v5 = vpop.f32.mrb[88].mxu1 }
 0x4a6   : > { %4952 = vst [vmem:[%s10601_s29 + $0x1c8] sm:$0xff] %v6531_v5  ;;  %v6475_v34 = vpop.f32.mrb[88].mxu0  ;;  %v4276_v14 = vpop.f32.mrb[89].mxu1 }
 0x4a7   : > { %4936 = vst [vmem:[%s10601_s29 + $0x148] sm:$0xff] %v6475_v34  ;;  %4951 = vst [vmem:[%s10601_s29 + $0x1c0] sm:$0xff] %v4276_v14  ;;  %v4131_v20 = vpop.f32.mrb[89].mxu0 }
 0x4a8   : > { %4935 = vst [vmem:[%s10601_s29 + $0x140] sm:$0xff] %v4131_v20 }
 0x4ad   : > { %v6534_v10 = vpop.f32.mrb[90].mxu1 }
 0x4ae   : > { %4954 = vst [vmem:[%s10601_s29 + $0x1d8] sm:$0xff] %v6534_v10  ;;  %v4286_v54 = vpop.f32.mrb[91].mxu1 }
 0x4af   : > { %v6478_v32 = vpop.f32.mrb[90].mxu0  ;;  %4953 = vst [vmem:[%s10601_s29 + $0x1d0] sm:$0xff] %v4286_v54 }
 0x4b0   : > { %4938 = vst [vmem:[%s10601_s29 + $0x158] sm:$0xff] %v6478_v32  ;;  %v4141_v18 = vpop.f32.mrb[91].mxu0 }
 0x4b1   : > { %4937 = vst [vmem:[%s10601_s29 + $0x150] sm:$0xff] %v4141_v18 }
 0x4b5   : > { %v6537_v39 = vpop.f32.mrb[92].mxu1 }
 0x4b6   : > { %4956 = vst [vmem:[%s10601_s29 + $0x1e8] sm:$0xff] %v6537_v39  ;;  %v4296_v44 = vpop.f32.mrb[93].mxu1 }
 0x4b7   : > { %v6481_v49 = vpop.f32.mrb[92].mxu0  ;;  %4955 = vst [vmem:[%s10601_s29 + $0x1e0] sm:$0xff] %v4296_v44 }
 0x4b8   : > { %4940 = vst [vmem:[%s10601_s29 + $0x168] sm:$0xff] %v6481_v49  ;;  %v4151_v29 = vpop.f32.mrb[93].mxu0 }
 0x4b9   : > { %4939 = vst [vmem:[%s10601_s29 + $0x160] sm:$0xff] %v4151_v29 }
 0x4bd   : > { %v6540_v21 = vpop.f32.mrb[94].mxu1 }
 0x4be   : > { %4958 = vst [vmem:[%s10601_s29 + $0x1f8] sm:$0xff] %v6540_v21  ;;  %v4306_v3 = vpop.f32.mrb[95].mxu1 }
 0x4bf   : > { %v6484_v38 = vpop.f32.mrb[94].mxu0  ;;  %4957 = vst [vmem:[%s10601_s29 + $0x1f0] sm:$0xff] %v4306_v3 }
 0x4c0   : > { %4942 = vst [vmem:[%s10601_s29 + $0x178] sm:$0xff] %v6484_v38  ;;  %v4161_v47 = vpop.f32.mrb[95].mxu0 }
 0x4c1   : > { %4941 = vst [vmem:[%s10601_s29 + $0x170] sm:$0xff] %v4161_v47 }
 0x4c5   : > { %v6631_v36 = vpop.f32.mrb[96].mxu1 }
 0x4c6   : > { %4976 = vst [vmem:[%s10601_s29 + $0x288] sm:$0xff] %v6631_v36  ;;  %v4526_v9 = vpop.f32.mrb[97].mxu1 }
 0x4c7   : > { %v6575_v31 = vpop.f32.mrb[96].mxu0  ;;  %4975 = vst [vmem:[%s10601_s29 + $0x280] sm:$0xff] %v4526_v9 }
 0x4c8   : > { %4960 = vst [vmem:[%s10601_s29 + $0x208] sm:$0xff] %v6575_v31  ;;  %v4381_v22 = vpop.f32.mrb[97].mxu0 }
 0x4c9   : > { %4959 = vst [vmem:[%s10601_s29 + $0x200] sm:$0xff] %v4381_v22 }
 0x4cd   : > { %v6634_v53 = vpop.f32.mrb[98].mxu1 }
 0x4ce   : > { %4978 = vst [vmem:[%s10601_s29 + $0x298] sm:$0xff] %v6634_v53  ;;  %v4536_v28 = vpop.f32.mrb[99].mxu1 }
 0x4cf   : > { %v6578_v58 = vpop.f32.mrb[98].mxu0  ;;  %4977 = vst [vmem:[%s10601_s29 + $0x290] sm:$0xff] %v4536_v28 }
 0x4d0   : > { %4962 = vst [vmem:[%s10601_s29 + $0x218] sm:$0xff] %v6578_v58  ;;  %v4391_v4 = vpop.f32.mrb[99].mxu0 }
 0x4d1   : > { %4961 = vst [vmem:[%s10601_s29 + $0x210] sm:$0xff] %v4391_v4 }
 0x4d5   : > { %v6637_v42 = vpop.f32.mrb[100].mxu1 }
 0x4d6   : > { %4980 = vst [vmem:[%s10601_s29 + $0x2a8] sm:$0xff] %v6637_v42  ;;  %v4546_v7 = vpop.f32.mrb[101].mxu1 }
 0x4d7   : > { %v6581_v63 = vpop.f32.mrb[100].mxu0  ;;  %4979 = vst [vmem:[%s10601_s29 + $0x2a0] sm:$0xff] %v4546_v7 }
 0x4d8   : > { %4964 = vst [vmem:[%s10601_s29 + $0x228] sm:$0xff] %v6581_v63  ;;  %v4401_v59 = vpop.f32.mrb[101].mxu0 }
 0x4d9   : > { %4963 = vst [vmem:[%s10601_s29 + $0x220] sm:$0xff] %v4401_v59 }
 0x4dd   : > { %v6640_v11 = vpop.f32.mrb[102].mxu1 }
 0x4de   : > { %4982 = vst [vmem:[%s10601_s29 + $0x2b8] sm:$0xff] %v6640_v11  ;;  %v4556_v23 = vpop.f32.mrb[103].mxu1 }
 0x4df   : > { %v6584_v37 = vpop.f32.mrb[102].mxu0  ;;  %4981 = vst [vmem:[%s10601_s29 + $0x2b0] sm:$0xff] %v4556_v23 }
 0x4e0   : > { %4966 = vst [vmem:[%s10601_s29 + $0x238] sm:$0xff] %v6584_v37  ;;  %v4411_v26 = vpop.f32.mrb[103].mxu0 }
 0x4e1   : > { %4965 = vst [vmem:[%s10601_s29 + $0x230] sm:$0xff] %v4411_v26 }
 0x4e5   : > { %v6643_v55 = vpop.f32.mrb[104].mxu1 }
 0x4e6   : > { %4984 = vst [vmem:[%s10601_s29 + $0x2c8] sm:$0xff] %v6643_v55  ;;  %v4566_v13 = vpop.f32.mrb[105].mxu1 }
 0x4e7   : > { %4983 = vst [vmem:[%s10601_s29 + $0x2c0] sm:$0xff] %v4566_v13 }
 0x4e8   : > { %v6587_v57 = vpop.f32.mrb[104].mxu0 }
 0x4e9   : > { %4968 = vst [vmem:[%s10601_s29 + $0x248] sm:$0xff] %v6587_v57  ;;  %v4421_v61 = vpop.f32.mrb[105].mxu0 }
 0x4ea   : > { %4967 = vst [vmem:[%s10601_s29 + $0x240] sm:$0xff] %v4421_v61 }
 0x4ed   : > { %v6646_v52 = vpop.f32.mrb[106].mxu1 }
 0x4ee   : > { %4986 = vst [vmem:[%s10601_s29 + $0x2d8] sm:$0xff] %v6646_v52  ;;  %v4576_v30 = vpop.f32.mrb[107].mxu1 }
 0x4ef   : > { %4985 = vst [vmem:[%s10601_s29 + $0x2d0] sm:$0xff] %v4576_v30 }
 0x4f0   : > { %v6590_v50 = vpop.f32.mrb[106].mxu0 }
 0x4f1   : > { %4970 = vst [vmem:[%s10601_s29 + $0x258] sm:$0xff] %v6590_v50  ;;  %v4431_v56 = vpop.f32.mrb[107].mxu0 }
 0x4f2   : > { %4969 = vst [vmem:[%s10601_s29 + $0x250] sm:$0xff] %v4431_v56 }
 0x4f7   : > { %v6649_v27 = vpop.f32.mrb[108].mxu1 }
 0x4f8   : > { %4988 = vst [vmem:[%s10601_s29 + $0x2e8] sm:$0xff] %v6649_v27  ;;  %v4586_v41 = vpop.f32.mrb[109].mxu1 }
 0x4f9   : > { %v6593_v60 = vpop.f32.mrb[108].mxu0  ;;  %4987 = vst [vmem:[%s10601_s29 + $0x2e0] sm:$0xff] %v4586_v41 }
 0x4fa   : > { %4972 = vst [vmem:[%s10601_s29 + $0x268] sm:$0xff] %v6593_v60  ;;  %v4441_v46 = vpop.f32.mrb[109].mxu0 }
 0x4fb   : > { %4971 = vst [vmem:[%s10601_s29 + $0x260] sm:$0xff] %v4441_v46 }
 0x4ff   : > { %v6652_v12 = vpop.f32.mrb[110].mxu1 }
 0x500   : > { %4990 = vst [vmem:[%s10601_s29 + $0x2f8] sm:$0xff] %v6652_v12  ;;  %v4596_v2 = vpop.f32.mrb[111].mxu1 }
 0x501   : > { %v6596_v25 = vpop.f32.mrb[110].mxu0  ;;  %4989 = vst [vmem:[%s10601_s29 + $0x2f0] sm:$0xff] %v4596_v2 }
 0x502   : > { %4974 = vst [vmem:[%s10601_s29 + $0x278] sm:$0xff] %v6596_v25  ;;  %v4451_v19 = vpop.f32.mrb[111].mxu0 }
 0x503   : > { %4973 = vst [vmem:[%s10601_s29 + $0x270] sm:$0xff] %v4451_v19 }
 0x507   : > { %v6743_v8 = vpop.f32.mrb[112].mxu1 }
 0x508   : > { %5008 = vst [vmem:[%s10601_s29 + $0x388] sm:$0xff] %v6743_v8  ;;  %v4816_v0 = vpop.f32.mrb[113].mxu1 }
 0x509   : > { %v6687_v24 = vpop.f32.mrb[112].mxu0  ;;  %5007 = vst [vmem:[%s10601_s29 + $0x380] sm:$0xff] %v4816_v0 }
 0x50a   : > { %4992 = vst [vmem:[%s10601_s29 + $0x308] sm:$0xff] %v6687_v24  ;;  %v4671_v48 = vpop.f32.mrb[113].mxu0 }
 0x50b   : > { %4991 = vst [vmem:[%s10601_s29 + $0x300] sm:$0xff] %v4671_v48 }
 0x50f   : > { %v6746_v33 = vpop.f32.mrb[114].mxu1 }
 0x510   : > { %5010 = vst [vmem:[%s10601_s29 + $0x398] sm:$0xff] %v6746_v33  ;;  %v4826_v16 = vpop.f32.mrb[115].mxu1 }
 0x511   : > { %v6690_v40 = vpop.f32.mrb[114].mxu0  ;;  %5009 = vst [vmem:[%s10601_s29 + $0x390] sm:$0xff] %v4826_v16 }
 0x512   : > { %4994 = vst [vmem:[%s10601_s29 + $0x318] sm:$0xff] %v6690_v40  ;;  %v4681_v15 = vpop.f32.mrb[115].mxu0 }
 0x513   : > { %4993 = vst [vmem:[%s10601_s29 + $0x310] sm:$0xff] %v4681_v15 }
 0x517   : > { %v6749_v45 = vpop.f32.mrb[116].mxu1 }
 0x518   : > { %5012 = vst [vmem:[%s10601_s29 + $0x3a8] sm:$0xff] %v6749_v45  ;;  %v4836_v51 = vpop.f32.mrb[117].mxu1 }
 0x519   : > { %v6693_v35 = vpop.f32.mrb[116].mxu0  ;;  %5011 = vst [vmem:[%s10601_s29 + $0x3a0] sm:$0xff] %v4836_v51 }
 0x51a   : > { %4996 = vst [vmem:[%s10601_s29 + $0x328] sm:$0xff] %v6693_v35  ;;  %v4691_v62 = vpop.f32.mrb[117].mxu0 }
 0x51b   : > { %4995 = vst [vmem:[%s10601_s29 + $0x320] sm:$0xff] %v4691_v62 }
 0x51f   : > { %v6752_v17 = vpop.f32.mrb[118].mxu1 }
 0x520   : > { %5014 = vst [vmem:[%s10601_s29 + $0x3b8] sm:$0xff] %v6752_v17  ;;  %v4846_v43 = vpop.f32.mrb[119].mxu1 }
 0x521   : > { %v6696_v1 = vpop.f32.mrb[118].mxu0  ;;  %5013 = vst [vmem:[%s10601_s29 + $0x3b0] sm:$0xff] %v4846_v43 }
 0x522   : > { %4998 = vst [vmem:[%s10601_s29 + $0x338] sm:$0xff] %v6696_v1  ;;  %v4701_v6 = vpop.f32.mrb[119].mxu0 }
 0x523   : > { %4997 = vst [vmem:[%s10601_s29 + $0x330] sm:$0xff] %v4701_v6 }
 0x527   : > { %v6755_v5 = vpop.f32.mrb[120].mxu1 }
 0x528   : > { %5016 = vst [vmem:[%s10601_s29 + $0x3c8] sm:$0xff] %v6755_v5  ;;  %v4856_v34 = vpop.f32.mrb[121].mxu1 }
 0x529   : > { %5015 = vst [vmem:[%s10601_s29 + $0x3c0] sm:$0xff] %v4856_v34  ;;  %v6699_v14 = vpop.f32.mrb[120].mxu0 }
 0x52a   : > { %5000 = vst [vmem:[%s10601_s29 + $0x348] sm:$0xff] %v6699_v14  ;;  %v4711_v20 = vpop.f32.mrb[121].mxu0 }
 0x52b   : > { %4999 = vst [vmem:[%s10601_s29 + $0x340] sm:$0xff] %v4711_v20 }
 0x52f   : > { %v6758_v10 = vpop.f32.mrb[122].mxu1 }
 0x530   : > { %5018 = vst [vmem:[%s10601_s29 + $0x3d8] sm:$0xff] %v6758_v10  ;;  %v4866_v54 = vpop.f32.mrb[123].mxu1 }
 0x531   : > { %5017 = vst [vmem:[%s10601_s29 + $0x3d0] sm:$0xff] %v4866_v54  ;;  %v6702_v32 = vpop.f32.mrb[122].mxu0 }
 0x532   : > { %5002 = vst [vmem:[%s10601_s29 + $0x358] sm:$0xff] %v6702_v32  ;;  %v4721_v18 = vpop.f32.mrb[123].mxu0 }
 0x533   : > { %5001 = vst [vmem:[%s10601_s29 + $0x350] sm:$0xff] %v4721_v18 }
 0x537   : > { %v6761_v39 = vpop.f32.mrb[124].mxu1 }
 0x538   : > { %5020 = vst [vmem:[%s10601_s29 + $0x3e8] sm:$0xff] %v6761_v39  ;;  %v4876_v44 = vpop.f32.mrb[125].mxu1 }
 0x539   : > { %5019 = vst [vmem:[%s10601_s29 + $0x3e0] sm:$0xff] %v4876_v44  ;;  %v6705_v49 = vpop.f32.mrb[124].mxu0 }
 0x53a   : > { %5004 = vst [vmem:[%s10601_s29 + $0x368] sm:$0xff] %v6705_v49  ;;  %v4731_v29 = vpop.f32.mrb[125].mxu0 }
 0x53b   : > { %5003 = vst [vmem:[%s10601_s29 + $0x360] sm:$0xff] %v4731_v29 }
 0x53e   : > { %v6764_v21 = vpop.f32.mrb[126].mxu1 }
 0x53f   : > { %5022 = vst [vmem:[%s10601_s29 + $0x3f8] sm:$0xff] %v6764_v21  ;;  %v4886_v3 = vpop.f32.mrb[127].mxu1  ;;  %v6708_v38 = vpop.f32.mrb[126].mxu0 }
 0x540   : > { %5021 = vst [vmem:[%s10601_s29 + $0x3f0] sm:$0xff] %v4886_v3  ;;  %5006 = vst [vmem:[%s10601_s29 + $0x378] sm:$0xff] %v6708_v38  ;;  %v4741_v47 = vpop.f32.mrb[127].mxu0 }
 0x541   : > { %5005 = vst [vmem:[%s10601_s29 + $0x370] sm:$0xff] %v4741_v47 }
 0x542   : > { %8042 = shalt.err (!%p8039_p13)
}
 0x543   : > { %s8043_s27 = scalar_lea.hbm %s10842_s26, 16384  ;;  %s8047_s7 = scalar_lea.hbm %s10895_s5, 32768 }
 0x544   : > { %p8044_p3 = scmp.ne.s32.totalorder %s10842_s26, %s8043_s27  ;;  %p8048_p0 = scmp.lt.u32.totalorder %s10842_s26, %s10895_s5 }
 0x545   : > { %p8049_p6 = scmp.lt.u32.totalorder %s8047_s7, %s8043_s27  ;;  %p8051_p9 = scmp.lt.u32.totalorder %s8043_s27, %s10842_s26 }
 0x546   : > { %p8045_p2 = pnand %p8044_p3, %p11539_p10 }
 0x547   : > { %p8050_p7 = por %p8049_p6, %p8048_p0 }
 0x548   : > { %p8046_p12 = pneg %p8045_p2 }
 0x549   : > { %p8052_p8 = por %p8051_p9, %p8050_p7 }
 0x54b   : > { %p8053_p1 = pnand %p8052_p8, %p8046_p12 }
 0x54d   : > { %8056 = shalt.err (!%p8053_p1)
}
 0x54e   : > { %s8117_s23 = smov 128   ;;  %s8118_s24 = smov 8  }
 0x54f   : > { %7289 = dma.vmem_to_hbm [thread:$0]  (%p11539_p10), %s10844_s9, 16384, %s10842_s26, %s5024_s22, %s8117_s23, %s8117_s23, %s8118_s24  }
 0x550 PF: > { %s5053_s14 = sand.u32 1, %s8095_s18   ;;  %p11540_p5 = scmp.ne.s32.totalorder %s11108_s6, 0 }
 0x551   : > { %p11541_p11 = scmp.ge.s32.totalorder %s8107_s21, 2  ;;  %s5054_s29 = scalar_lea.sflag [#allocation4], %s5053_s14 }
 0x553   : > { %p7309_p4 = pnand %p11541_p11, %p11540_p5 }
 0x555   : > { %8090 = dma.done.wait (!%p7309_p4), %s5054_s29, 16384  }
 0x556   : > { %8092 = vsyncadd (!%p7309_p4), %s5054_s29, 4294950912  ;;  %s11542_s21 = sld [smem:[#allocation17_spill]]  ;;  %s11543_s28 = sld [smem:[#allocation18_spill]] }
 0x557   : > { %s11544_s18 = smov %s8099_s19  ;;  %s11545_s19 = smov %s8103_s20 }
 0x55c   : > { %p24_p13 = scmp.ge.s32.totalorder %s11542_s21, 4   ;;  %s11546_s20 = smov %s11543_s28 }
 0x55e   :  { %26 = sbr.rel (!%p24_p13) target bundleno = 12 (0xc), region = 126 }
 0x565   :  { %5059 = vsyncpa [#allocation3], 1 }
 0x566   :  { %5061 = vsyncpa [#allocation3 + $0x1], 1 }
 0x567   :  { %5062 = vsyncpa [#allocation6], 1 }
 0x568   :  { %5064 = vsyncpa [#allocation6 + $0x1], 1 }
 0x569   :  { %5065 = vsyncpa [#allocation9], 1 }
 0x56a   :  { %5067 = vsyncpa [#allocation9 + $0x1], 1 }
 0x56b   :  { %5068 = vsyncpa [#allocation4], 1 }
 0x56c   :  { %5070 = vsyncpa [#allocation4 + $0x1], 1 }

</bundles_post_ra>
